<compile_context>
chip_gen: v6e
topology: v6e:2x2x1
jax: 0.10.0
libtpu: 0.0.40
codegen_flags: <defaults>
</compile_context>

<pallas_src>
import functools

import jax
import jax.numpy as jnp
from jax.experimental import pallas as pl
from jax.experimental.pallas import tpu as pltpu


def _agg_kernel(nidx_ref,   # SMEM  (n_pad*S,) int32   scalar-prefetched neighbor ids
                feat_ref,   # HBM   (num_total, D) f32 raw ref (memory_space=pl.ANY)
                w_ref,      # VMEM  (D, D) bf16        fc1 weight, pre-transposed
                b_ref,      # VMEM  (1, D) f32         fc1 bias
                o_ref,      # VMEM  (tn, D) f32        mean-pooled output block
                x_buf,      # VMEM  (tn*S, D) f32      gather destination scratch
                sem,        # DMA semaphore (1,)
                *, tn, S):
    D = o_ref.shape[-1]
    rows = tn * S
    base = pl.program_id(0) * rows

    # ---- Fused gather: one row DMA per (node, neighbor) from the HBM table ----
    @pl.loop(0, rows)
    def _start(r):
        idx = nidx_ref[base + r]
        pltpu.make_async_copy(
            feat_ref.at[pl.ds(idx, 1), :],
            x_buf.at[pl.ds(r, 1), :],
            sem.at[0],
        ).start()

    # Wait for every row copy.  wait() only needs the semaphore + transfer size,
    # and all copies above have the same (1, D) f32 size.
    @pl.loop(0, rows)
    def _wait(r):
        pltpu.make_async_copy(
            feat_ref.at[pl.ds(0, 1), :],
            x_buf.at[pl.ds(0, 1), :],
            sem.at[0],
        ).wait()

    # ---- Fused fc1 + ReLU + neighbor mean (MXU matmul + f32 epilogue) ----
    x = x_buf[...].astype(jnp.bfloat16)                          # (tn*S, D) bf16
    h = jnp.dot(x, w_ref[...], preferred_element_type=jnp.float32)
    h = jnp.maximum(h + b_ref[...], 0.0)                         # bias + ReLU, f32
    o_ref[...] = jnp.mean(h.reshape(tn, S, D), axis=1)           # mean over neighbors


def mean_pool_aggregate(features, neigh_idx, w_t_bf16, bias, *, tn=256):
    """Fused neighbor-gather + fc1 + ReLU + mean-pool.

    features  : (num_total, D) float32 feature/embedding table (stays in HBM)
    neigh_idx : (n, S) int32 sampled neighbor indices per node (S multiple of 8)
    w_t_bf16  : (D, D) bfloat16, pre-transposed fc1 weight (x @ w_t == x @ W.T)
    bias      : (D,) float32 fc1 bias
    returns   : (n, D) float32
    """
    n, S = neigh_idx.shape
    num_total, D = features.shape
    assert S % 8 == 0, "pad the neighbor sample to a multiple of 8"

    n_pad = pl.cdiv(n, tn) * tn
    if n_pad != n:
        # Padded nodes gather row 0 (valid index); their outputs are sliced off.
        neigh_idx = jnp.pad(neigh_idx, ((0, n_pad - n), (0, 0)))
    nidx_flat = neigh_idx.reshape(-1).astype(jnp.int32)
    b2 = bias.reshape(1, D).astype(jnp.float32)

    kernel = functools.partial(_agg_kernel, tn=tn, S=S)

    out = pl.pallas_call(
        kernel,
        out_shape=jax.ShapeDtypeStruct((n_pad, D), jnp.float32),
        grid_spec=pltpu.PrefetchScalarGridSpec(
            num_scalar_prefetch=1,                    # nidx_flat -> SMEM
            grid=(n_pad // tn,),
            in_specs=[
                pl.BlockSpec(memory_space=pl.ANY),            # features: raw HBM ref
                pl.BlockSpec((D, D), lambda i, nidx: (0, 0)),  # W resident in VMEM
                pl.BlockSpec((1, D), lambda i, nidx: (0, 0)),  # bias
            ],
            out_specs=pl.BlockSpec((tn, D), lambda i, nidx: (i, 0)),
            scratch_shapes=[
                pltpu.VMEM((tn * S, D), jnp.float32),
                pltpu.SemaphoreType.DMA((1,)),
            ],
        ),
        compiler_params=pltpu.CompilerParams(
            dimension_semantics=("parallel",),
        ),
        cost_estimate=pl.CostEstimate(
            flops=2 * n_pad * S * D * D,
            transcendentals=0,
            bytes_accessed=n_pad * S * D * 4 + n_pad * D * 4
            + D * D * 2 + D * 4 + n_pad * S * 4,
        ),
    )(nidx_flat, features, w_t_bf16, b2)

    return out[:n]


if __name__ == "__main__":
    # Small, module-consistent shapes (feat_dim=128, num_sample=8).
    num_total_nodes = 1024    # size of the feature lookup table
    feat_dim = 128
    num_sample = 8            # multiple of 8 -> tile-aligned neighbor axis
    n_nodes = 500             # deliberately NOT a multiple of tn (exercises padding)
    tn = 256                  # node tile -> grid of 2 parallel steps

    key = jax.random.PRNGKey(0)
    k_feat, k_w, k_b, k_neigh = jax.random.split(key, 4)

    # "features" lookup table (stands in for the features callable / nn.Embedding).
    features = jax.random.normal(k_feat, (num_total_nodes, feat_dim), jnp.float32)

    # Deterministic fc1 parameters (PyTorch Linear: weight (out,in), bias (out,)).
    bound = 1.0 / jnp.sqrt(jnp.float32(feat_dim))
    weight = jax.random.uniform(k_w, (feat_dim, feat_dim), jnp.float32, -bound, bound)
    bias = jax.random.uniform(k_b, (feat_dim,), jnp.float32, -bound, bound)
    w_t = weight.T.astype(jnp.bfloat16)   # pre-transpose + bf16 for the MXU

    # TODO(synk): host-side Python set()/random.sample neighbor selection (and the
    # len(to_neigh) < num_sample variable-size case) has no Pallas equivalent; a
    # deterministic fixed-size int32 neighbor-index table stands in for it.
    neigh_idx = jax.random.randint(
        k_neigh, (n_nodes, num_sample), 0, num_total_nodes, jnp.int32)

    out = mean_pool_aggregate(features, neigh_idx, w_t, bias, tn=tn)
    out = jax.block_until_ready(out)

    # Reference (pure JAX) with the same bf16 rounding of the matmul operands;
    # accumulation / bias / ReLU / mean in f32, like the kernel.
    x = jnp.take(features, neigh_idx, axis=0)
    xb = x.astype(jnp.bfloat16).astype(jnp.float32)
    wb = w_t.astype(jnp.float32)
    ref = jnp.mean(jnp.maximum(jnp.einsum("nsd,df->nsf", xb, wb) + bias, 0.0), axis=1)

    assert out.shape == (n_nodes, feat_dim)
    assert jnp.allclose(out, ref, atol=1e-3, rtol=1e-3), float(jnp.max(jnp.abs(out - ref)))

    print("KERNEL_OK")
</pallas_src>

<mosaic_0001>
module attributes {stable_mosaic.version = 11 : i64} {
  func.func @_agg_kernel(%arg0: i32, %arg1: memref<4096xi32, #tpu.memory_space<smem>>, %arg2: memref<1024x128xf32, #tpu.memory_space<any>>, %arg3: memref<128x128xbf16, #tpu.memory_space<vmem>>, %arg4: memref<1x128xf32, #tpu.memory_space<vmem>>, %arg5: memref<256x128xf32, #tpu.memory_space<vmem>>, %arg6: memref<2048x128xf32, #tpu.memory_space<vmem>>, %arg7: memref<1x!tpu.dma_semaphore, #tpu.memory_space<semaphore_mem>>) attributes {dimension_semantics = [#tpu.dimension_semantics<parallel>], iteration_bounds = array<i64: 2>, scalar_prefetch = 1 : i64, scratch_operands = 2 : i64, tpu.core_type = #tpu.core_type<tc>, window_params = [{}, {pipeline_mode = #tpu.pipeline_mode<synchronous>, transform_indices = @transform_1, window_bounds = array<i64: 128, 128>}, {pipeline_mode = #tpu.pipeline_mode<synchronous>, transform_indices = @transform_2, window_bounds = array<i64: 1, 128>}, {transform_indices = @transform_3, window_bounds = array<i64: 256, 128>}]} {
    %c2048_i32 = arith.constant 2048 : i32
    %0 = arith.muli %arg0, %c2048_i32 : i32
    %c0_i32 = arith.constant 0 : i32
    %c2048_i32_0 = arith.constant 2048 : i32
    %1 = arith.addi %c0_i32, %c2048_i32_0 : i32
    %c1_i32 = arith.constant 1 : i32
    scf.for %arg8 = %c0_i32 to %1 step %c1_i32  : i32 {
      %c1_i32_15 = arith.constant 1 : i32
      %17 = arith.muli %arg8, %c1_i32_15 : i32
      %c0_i32_16 = arith.constant 0 : i32
      %18 = arith.addi %c0_i32_16, %17 : i32
      %19 = arith.addi %0, %18 : i32
      %20 = arith.index_cast %19 : i32 to index
      %21 = memref.load %arg1[%20] : memref<4096xi32, #tpu.memory_space<smem>>
      %c0_i32_17 = arith.constant 0 : i32
      %c0_i32_18 = arith.constant 0 : i32
      %22 = tpu.memref_slice %arg2[%21, %c0_i32_18] : memref<1024x128xf32, #tpu.memory_space<any>> -> memref<1x128xf32, #tpu.memory_space<any>>
      %c0_i32_19 = arith.constant 0 : i32
      %23 = tpu.memref_slice %arg6[%18, %c0_i32_19] : memref<2048x128xf32, #tpu.memory_space<vmem>> -> memref<1x128xf32, #tpu.memory_space<vmem>>
      %24 = tpu.memref_slice %arg7[%c0_i32_17] : memref<1x!tpu.dma_semaphore, #tpu.memory_space<semaphore_mem>> -> memref<1x!tpu.dma_semaphore, #tpu.memory_space<semaphore_mem>>
      %25 = tpu.memref_squeeze %24 : memref<1x!tpu.dma_semaphore, #tpu.memory_space<semaphore_mem>> -> memref<!tpu.dma_semaphore, #tpu.memory_space<semaphore_mem>>
      tpu.enqueue_dma source(%22 : memref<1x128xf32, #tpu.memory_space<any>>) target(%23 : memref<1x128xf32, #tpu.memory_space<vmem>>) target_semaphore(%25 : memref<!tpu.dma_semaphore, #tpu.memory_space<semaphore_mem>>)
    }
    %c2048_i32_1 = arith.constant 2048 : i32
    %c0_i32_2 = arith.constant 0 : i32
    %c2048_i32_3 = arith.constant 2048 : i32
    %2 = arith.addi %c0_i32_2, %c2048_i32_3 : i32
    %c1_i32_4 = arith.constant 1 : i32
    scf.for %arg8 = %c0_i32_2 to %2 step %c1_i32_4  : i32 {
      %c0_i32_15 = arith.constant 0 : i32
      %c0_i32_16 = arith.constant 0 : i32
      %c0_i32_17 = arith.constant 0 : i32
      %17 = tpu.memref_slice %arg2[%c0_i32_16, %c0_i32_17] : memref<1024x128xf32, #tpu.memory_space<any>> -> memref<1x128xf32, #tpu.memory_space<any>>
      %c0_i32_18 = arith.constant 0 : i32
      %c0_i32_19 = arith.constant 0 : i32
      %18 = tpu.memref_slice %arg6[%c0_i32_18, %c0_i32_19] : memref<2048x128xf32, #tpu.memory_space<vmem>> -> memref<1x128xf32, #tpu.memory_space<vmem>>
      %19 = tpu.memref_slice %arg7[%c0_i32_15] : memref<1x!tpu.dma_semaphore, #tpu.memory_space<semaphore_mem>> -> memref<1x!tpu.dma_semaphore, #tpu.memory_space<semaphore_mem>>
      %20 = tpu.memref_squeeze %19 : memref<1x!tpu.dma_semaphore, #tpu.memory_space<semaphore_mem>> -> memref<!tpu.dma_semaphore, #tpu.memory_space<semaphore_mem>>
      tpu.wait_dma2 semaphore(%20 : memref<!tpu.dma_semaphore, #tpu.memory_space<semaphore_mem>>) src(%17 : memref<1x128xf32, #tpu.memory_space<any>>) dst(%18 : memref<1x128xf32, #tpu.memory_space<vmem>>)
    }
    %c0 = arith.constant 0 : index
    %c0_5 = arith.constant 0 : index
    %3 = vector.load %arg6[%c0, %c0_5] : memref<2048x128xf32, #tpu.memory_space<vmem>>, vector<2048x128xf32>
    %4 = arith.truncf %3 : vector<2048x128xf32> to vector<2048x128xbf16>
    %c0_6 = arith.constant 0 : index
    %c0_7 = arith.constant 0 : index
    %5 = vector.load %arg3[%c0_6, %c0_7] : memref<128x128xbf16, #tpu.memory_space<vmem>>, vector<128x128xbf16>
    %cst = arith.constant dense<0.000000e+00> : vector<2048x128xf32>
    %6 = tpu.matmul %4, %5, %cst {dimension_numbers = #tpu.dot_dimension_numbers<[1], [0], [0], [1], [0, 0, 1, 1], [], []>} : vector<2048x128xbf16>, vector<128x128xbf16>, vector<2048x128xf32> -> vector<2048x128xf32>
    %c0_8 = arith.constant 0 : index
    %c0_9 = arith.constant 0 : index
    %7 = vector.load %arg4[%c0_8, %c0_9] : memref<1x128xf32, #tpu.memory_space<vmem>>, vector<1x128xf32>
    %8 = vector.broadcast %7 : vector<1x128xf32> to vector<2048x128xf32>
    %9 = arith.addf %6, %8 : vector<2048x128xf32>
    %cst_10 = arith.constant 0.000000e+00 : f32
    %10 = vector.broadcast %cst_10 : f32 to vector<2048x128xf32>
    %11 = arith.maximumf %9, %10 : vector<2048x128xf32>
    %12 = vector.shape_cast %11 : vector<2048x128xf32> to vector<256x8x128xf32>
    %cst_11 = arith.constant dense<0.000000e+00> : vector<256x128xf32>
    %13 = vector.multi_reduction <add>, %12, %cst_11 [1] : vector<256x8x128xf32> to vector<256x128xf32>
    %cst_12 = arith.constant 8.000000e+00 : f32
    %14 = vector.broadcast %cst_12 : f32 to vector<256x128xf32>
    %15 = arith.divf %13, %14 : vector<256x128xf32>
    %c0_13 = arith.constant 0 : index
    %c0_14 = arith.constant 0 : index
    %16 = vector.load %arg5[%c0_13, %c0_14] : memref<256x128xf32, #tpu.memory_space<vmem>>, vector<256x128xf32>
    tpu.vector_store %arg5[%c0_13, %c0_14], %15 {strides = array<i32>} : memref<256x128xf32, #tpu.memory_space<vmem>>, vector<256x128xf32>,
    return
  }
  func.func @transform_1(%arg0: i32, %arg1: memref<4096xi32, #tpu.memory_space<smem>>) -> (i32, i32) {
    %c0_i32 = arith.constant 0 : i32
    %c0_i32_0 = arith.constant 0 : i32
    %c0_i32_1 = arith.constant 0 : i32
    return %c0_i32, %c0_i32_0 : i32, i32
  }
  func.func @transform_2(%arg0: i32, %arg1: memref<4096xi32, #tpu.memory_space<smem>>) -> (i32, i32) {
    %c0_i32 = arith.constant 0 : i32
    %c0_i32_0 = arith.constant 0 : i32
    %c0_i32_1 = arith.constant 0 : i32
    return %c0_i32, %c0_i32_0 : i32, i32
  }
  func.func @transform_3(%arg0: i32, %arg1: memref<4096xi32, #tpu.memory_space<smem>>) -> (i32, i32) {
    %c0_i32 = arith.constant 0 : i32
    %c0_i32_0 = arith.constant 0 : i32
    return %arg0, %c0_i32 : i32, i32
  }
}

</mosaic_0001>

<bundles_post_ra>
// kernel: tpu_custom_call.1
= control target key start
LH: loop header
LB: loop body
LE: loop exit
PB: predicated region body
PF: predicated region fallthrough
CT: control target
= control target key end

     0   :  { %s5058_s15 = smov [#allocation5]   ;;  %s6368_s0 = inlined_call_operand.hbm [shape: s32[4096], index: 0, kind: input, shape index: {}]   ;;  %s6369_s1 = inlined_call_operand.hbm [shape: f32[1024,128], index: 1, kind: input, shape index: {}]   ;;  %s6370_s2 = inlined_call_operand.hbm [shape: bf16[128,128], index: 2, kind: input, shape index: {}]   ;;  %s6371_s3 = inlined_call_operand.vmem [shape: f32[1,128], index: 3, kind: input, shape index: {}]   ;;  %s6372_s4 = inlined_call_operand.hbm [shape: f32[512,128], index: 4, kind: output, shape index: {}]  }
   0x1   :  { %10 = dma.hbm_to_smem %s6368_s0, 512, %s5058_s15, [#allocation4] }
   0x2   :  { %5022 = dma.done.wait [#allocation4], 512 }
   0x3   :  { %5023 = vsyncadd [#allocation4], 4294966784 }
   0x4   :  { %12 = sfence }
   0x5   :  { %13 = vsyncpa [#allocation7], 0 }
   0x6   :  { %14 = vsyncpa [#allocation8], 0 }
   0x7   :  { %16 = vsyncpa [#allocation8 + $0x1], 0  ;;  %s5094_s18 = smov 0   ;;  %s5096_s19 = smov 0  }
   0x8   :  { %s5098_s20 = smov 0   ;;  %s5100_s21 = smov 0  }
   0x9 LB: > { %s5115_s0 = sadd.s32 4294967295, %s5048_s21   ;;  %s4384_s22 = sadd.s32 4294967294, %s5048_s21   ;;  %s5048_s21 = sphi %s5100_s21, %s6417_s21   ;;  %s5044_s20 = sphi %s5098_s20, %s6416_s20   ;;  %s5040_s19 = sphi %s5096_s19, %s6415_s19   ;;  %s5036_s18 = sphi %s5094_s18, %s6414_s18  }
   0xa   : > { %s5119_s23 = sadd.s32 1, %s5048_s21   ;;  %s71_s24 = sadd.s32 1, %s5044_s20 }
   0xb   : > { %s68_s25 = ssub.s32 %s5048_s21, %s5119_s23  ;;  %p81_p0 = scmp.ne.s32.totalorder %s5044_s20, %s5040_s19 }
   0xc   : > { %p69_p1 = scmp.eq.s32.totalorder %s68_s25, 0  ;;  %p82_p2 = scmp.eq.s32.totalorder %s5115_s0, 1 }
   0xd   : > { %p87_p3 = scmp.ne.s32.totalorder %s5040_s19, %s5036_s18  ;;  %p88_p4 = scmp.eq.s32.totalorder %s4384_s22, 1 }
   0xe   : > { %s5130_s26 = scalar_select %p69_p1, %s5044_s20, %s71_s24  }
   0xf   : > { %p5132_p5 = por %p82_p2, %p81_p0  ;;  %p5136_p6 = por %p88_p4, %p87_p3 }
  0x10   : > { %p4385_p7 = scmp.ge.s32.totalorder %s5048_s21, 1  ;;  %p95_p8 = scmp.lt.s32.totalorder %s5048_s21, 3 }
  0x11   : > { %s6379_s28 = scalar_select %p5136_p6, 1, 0 }
  0x12   : > { %p4846_p9 = scmp.eq.s32.totalorder %s5115_s0, 0  ;;  %p5143_p10 = pnand %p4385_p7, %p95_p8 }
  0x13   : > { %s5059_s30 = smov [#allocation6]  }
  0x14   : > { %s107_s5 = sshll.u32 %s5059_s30, 4  ;;  %p4838_p11 = pneg %p5143_p10  ;;  %s108_s5 = int_to_ptr.vmem [resolvable:$true] %s107_s5 }
  0x15   : > { %s4935_s6 = scalar_lea.vmem %s108_s5, 1024  ;;  %p4943_p3 = scmp.lt.s32.totalorder %s108_s5, %s108_s5 }
  0x16   : > { %p4839_p12 = pnand %p4846_p9, %p4838_p11  ;;  %p4936_p0 = scmp.ne.s32.totalorder %s108_s5, %s4935_s6 }
  0x17   : > { %p4944_p4 = scmp.lt.s32.totalorder %s4935_s6, %s4935_s6 }
  0x18   : > { %p4926_p13 = pneg %p4839_p12 }
  0x19   : > { %p4945_p6 = por %p4944_p4, %p4943_p3 }
  0x1a   : > { %p4938_p1 = pnand %p4936_p0, %p4926_p13 }
  0x1c   : > { %p4939_p2 = pneg %p4938_p1 }
  0x1e   : > { %p4946_p7 = pnand %p4945_p6, %p4939_p2 }
  0x20   : > { %4949 = shalt.err (!%p4946_p7)
}
  0x21   : > { %s5060_s7 = smov 64   ;;  %s5061_s8 = smov 4  }
  0x22   : > { %4841 = dma.hbm_to_vmem [thread:$0]  (!%p4839_p12), %s6370_s2, 1024, %s108_s5, [#allocation7], %s5060_s7, %s5060_s7, %s5061_s8  }
  0x23   : > { %126 = sbr.rel (%p5143_p10) target bundleno = 969 (0x3c9), region = 28 }
  0x28   : > { %5025 = dma.done.wait (%p4846_p9), [#allocation7], 1024  }
  0x29   : > { %5027 = vsyncadd (%p4846_p9), [#allocation7], 4294966272  ;;  %s140_s11 = sand.u32 1, %s5040_s19   ;;  %s4390_s12 = sshll.u32 %s5115_s0, 11 }
  0x2a   : > { %s4389_s13 = sshll.u32 %s140_s11, 8  ;;  %s5166_s15 = smov 0  }
  0x2b   : > { %s5164_s14 = scalar_lea.vmem [#allocation9], %s4389_s13 }
  0x2c LB: >> { %s152_s16 = sadd.s32 %s5052_s15, %s4390_s12  ;;  %s156_s22 = scalar_lea.vmem [#allocation2], %s5052_s15  ;;  %s5052_s15 = sphi %s5166_s15, %s151_s15  }
  0x2d   : >> { %s153_s17 = sld [smem:[#allocation5 + %s152_s16]]  ;;  %s164_s24 = sshll.u32 %s156_s22, 4  ;;  %s165_s24 = int_to_ptr.vmem [resolvable:$true] %s164_s24 }
  0x2e   : >> { %s4952_s9 = scalar_lea.hbm %s6369_s1, 16384 }
  0x33   : >> { %s4391_s25 = sshll.u32 %s153_s17, 4 }
  0x34   : >> { %s155_s5 = scalar_lea.hbm %s6369_s1, %s4391_s25 }
  0x35   : >> { %s4950_s6 = scalar_lea.hbm %s155_s5, 16  ;;  %p4953_p8 = scmp.lt.s32.totalorder %s155_s5, %s6369_s1 }
  0x36   : >> { %p4951_p6 = scmp.ne.s32.totalorder %s155_s5, %s4950_s6  ;;  %p4954_p9 = scmp.lt.s32.totalorder %s4952_s9, %s4950_s6 }
  0x38   : >> { %p4955_p10 = por %p4954_p9, %p4953_p8 }
  0x3a   : >> { %p4956_p11 = pnand %p4955_p10, %p4951_p6 }
  0x3c   : >> { %4959 = shalt.err (!%p4956_p11)  }
  0x3d   : >> { %s4960_s16 = scalar_lea.vmem %s165_s24, 16  ;;  %s5062_s17 = smov [#allocation2]  }
  0x3e   : >> { %p4961_p12 = scmp.ne.s32.totalorder %s165_s24, %s4960_s16  ;;  %s4962_s22 = sshll.u32 %s5062_s17, 4  ;;  %s4963_s22 = int_to_ptr.vmem [resolvable:$false] %s4962_s22 }
  0x3f   : >> { %s4964_s25 = scalar_lea.vmem %s4963_s22, 32768  ;;  %p4965_p13 = scmp.lt.s32.totalorder %s165_s24, %s4963_s22 }
  0x40   : >> { %p4966_p0 = scmp.lt.s32.totalorder %s4964_s25, %s4960_s16 }
  0x42   : >> { %p4967_p1 = por %p4966_p0, %p4965_p13 }
  0x44   : >> { %p4968_p2 = pnand %p4967_p1, %p4961_p12 }
  0x46   : >> { %4971 = shalt.err (!%p4968_p2)  }
  0x47   : >> { %167 = dma.hbm_to_vmem [thread:$0]  %s155_s5, 16, %s165_s24, [#allocation3] }
  0x48   : >> { %s151_s15 = sadd.s32 1, %s5052_s15  }
  0x49   : >> { %p148_p3 = scmp.ge.s32.totalorder %s151_s15, 2048  }
  0x4a   : > { %s5054_s29 = smov (%p148_p3), 0  }
  0x4b   : > { %150 = sbr.rel (!%p148_p3) target bundleno = 44 (0x2c), region = 85 }
  0x50 LB: >> { %5028 = dma.done.wait [#allocation3], 16  ;;  %s5056_s29 = sphi %s5054_s29, %s173_s29  }
  0x51   : >> { %5029 = vsyncadd [#allocation3], 4294967280  ;;  %s173_s29 = sadd.s32 1, %s5056_s29  }
  0x52   : >> { %p170_p4 = scmp.ge.s32.totalorder %s173_s29, 2048  }
  0x53   : > { %v4903_v0 = vld [vmem:[#allocation6 + $0x38] sm:$0xff] (%p170_p4)   ;;  %v4904_v1 = vld [vmem:[#allocation6 + $0x30] sm:$0xff] (%p170_p4)   ;;  %v4905_v2 = vld [vmem:[#allocation6 + $0x28] sm:$0xff] (%p170_p4)   ;;  %vm3994_vm0 = vcmask (%p170_p4), 1041409   ;;  %vm3996_vm1 = vcmask (%p170_p4), 1042434   ;;  %vm3998_vm2 = vcmask (%p170_p4), 1043459  }
  0x54   : > { %172 = sbr.rel (!%p170_p4) target bundleno = 80 (0x50), region = 96  ;;  %4544 = vmatprep.subr.bf16.mxu0 (%p170_p4), %v4903_v0  ;;  %4816 = vmatprep.subr.bf16.mxu1 (%p170_p4), %v4903_v0  ;;  %v4906_v3 = vld [vmem:[#allocation6 + $0x20] sm:$0xff] (%p170_p4)   ;;  %v178_v5 = vld [vmem:[#allocation2 + $0x8] sm:$0xff] (%p170_p4)  ;;  %v4907_v10 = vld [vmem:[#allocation6 + $0x18] sm:$0xff] (%p170_p4)   ;;  %vm4000_vm3 = vcmask (%p170_p4), 1044484   ;;  %vm4002_vm4 = vcmask (%p170_p4), 1045509  }
  0x55   : > { %4545 = vmatpush3.bf16.msra.mxu0 (%p170_p4), %v4903_v0  ;;  %4824 = vmatpush3.bf16.msra.mxu1 (%p170_p4), %v4903_v0  ;;  %v177_v4 = vld [vmem:[#allocation2] sm:$0xff] (%p170_p4)  ;;  %v306_v8 = vld [vmem:[#allocation2 + $0x408] sm:$0xff] (%p170_p4)  ;;  %v4908_v11 = vld [vmem:[#allocation6 + $0x10] sm:$0xff] (%p170_p4)   ;;  %vm4004_vm5 = vcmask (%p170_p4), 1046534   ;;  %vm4006_vm6 = vcmask (%p170_p4), 1047559   ;;  %s4407_s17 = sshll.u32 (%p170_p4), %s5115_s0, 12 }
  0x56   : > { %4546 = vmatprep.subr.bf16.mxu0 (%p170_p4), %v4904_v1  ;;  %4817 = vmatprep.subr.bf16.mxu1 (%p170_p4), %v4904_v1  ;;  %v305_v6 = vld [vmem:[#allocation2 + $0x400] sm:$0xff] (%p170_p4)  ;;  %v433_v7 = vpack.c.bf16 (%p170_p4), %v178_v5, %v177_v4  ;;  %v4909_v12 = vld [vmem:[#allocation6 + $0x8] sm:$0xff] (%p170_p4)   ;;  %v179_v14 = vld [vmem:[#allocation2 + $0x10] sm:$0xff] (%p170_p4)  ;;  %s4303_s22 = sshll.u32 (%p170_p4), %s5164_s14, 4  ;;  %s6316_s29 = scalar_lea.hbm (%p170_p4), %s6372_s4, %s4407_s17  ;;  %s6318_s22 = int_to_ptr.vmem [resolvable:$true] %s4303_s22 }
  0x57   : > { %v497_v9 = vpack.c.bf16 (%p170_p4), %v306_v8, %v305_v6  ;;  %v4910_v13 = vld [vmem:[#allocation6] sm:$0xff] (%p170_p4)   ;;  %v180_v15 = vld [vmem:[#allocation2 + $0x18] sm:$0xff] (%p170_p4)  ;;  %v307_v16 = vld [vmem:[#allocation2 + $0x410] sm:$0xff] (%p170_p4)  ;;  %s6328_s12 = scalar_lea.sflag (%p170_p4), [#allocation8], %s140_s11  ;;  %s4972_s15 = scalar_lea.vmem (%p170_p4), %s6318_s22, 4096 }
  0x58   : > { %4560 = vmatprep.mubr.bf16.mxu0 (%p170_p4), %v433_v7  ;;  %v308_v17 = vld [vmem:[#allocation2 + $0x418] sm:$0xff] (%p170_p4)  ;;  %v181_v18 = vld [vmem:[#allocation2 + $0x20] sm:$0xff] (%p170_p4)  ;;  %v182_v19 = vld [vmem:[#allocation2 + $0x28] sm:$0xff] (%p170_p4)  ;;  %v434_v22 = vpack.c.bf16 (%p170_p4), %v180_v15, %v179_v14  ;;  %p4973_p7 = scmp.ne.s32.totalorder (%p170_p4), %s6318_s22, %s4972_s15  ;;  %s5063_s24 = smov (%p170_p4), [#allocation9]  }
  0x59   : > { %4547 = vmatpush3.bf16.msra.mxu0 %v4904_v1  ;;  %4825 = vmatpush3.bf16.msra.mxu1 %v4904_v1  ;;  %v309_v20 = vld [vmem:[#allocation2 + $0x420] sm:$0xff]  ;;  %v310_v21 = vld [vmem:[#allocation2 + $0x428] sm:$0xff]  ;;  %v498_v23 = vpack.c.bf16 %v308_v17, %v307_v16  ;;  %v435_v24 = vpack.c.bf16 %v182_v19, %v181_v18  ;;  %v183_v26 = vld [vmem:[#allocation2 + $0x30] sm:$0xff]  ;;  %s4976_s30 = sshll.u32 %s5063_s24, 4  ;;  %s4977_s30 = int_to_ptr.vmem [resolvable:$false] %s4976_s30 }
  0x5a   : > { %4548 = vmatprep.subr.bf16.mxu0 %v4905_v2  ;;  %4818 = vmatprep.subr.bf16.mxu1 %v4905_v2  ;;  %v499_v25 = vpack.c.bf16 %v310_v21, %v309_v20  ;;  %v184_v27 = vld [vmem:[#allocation2 + $0x38] sm:$0xff]  ;;  %v311_v28 = vld [vmem:[#allocation2 + $0x430] sm:$0xff]  ;;  %v185_v30 = vld [vmem:[#allocation2 + $0x40] sm:$0xff]  ;;  %p4974_p6 = pnand %p4973_p7, %p5132_p5  ;;  %s4978_s5 = scalar_lea.vmem %s4977_s30, 8192 }
  0x5b   : > { %4688 = vmatprep.mubr.bf16.mxu1 %v497_v9  ;;  %v312_v29 = vld [vmem:[#allocation2 + $0x438] sm:$0xff]  ;;  %v186_v31 = vld [vmem:[#allocation2 + $0x48] sm:$0xff]  ;;  %v313_v32 = vld [vmem:[#allocation2 + $0x440] sm:$0xff]  ;;  %v436_v34 = vpack.c.bf16 %v184_v27, %v183_v26  ;;  %p4979_p9 = scmp.lt.s32.totalorder %s6318_s22, %s4977_s30  ;;  %p4980_p10 = scmp.lt.s32.totalorder %s4978_s5, %s4972_s15 }
  0x5c   : > { %v314_v33 = vld [vmem:[#allocation2 + $0x448] sm:$0xff]  ;;  %v500_v35 = vpack.c.bf16 %v312_v29, %v311_v28  ;;  %v437_v36 = vpack.c.bf16 %v186_v31, %v185_v30  ;;  %v187_v38 = vld [vmem:[#allocation2 + $0x50] sm:$0xff]  ;;  %v188_v39 = vld [vmem:[#allocation2 + $0x58] sm:$0xff]  ;;  %p4975_p8 = pneg %p4974_p6 }
  0x5d   : > { %4549 = vmatpush3.bf16.msra.mxu0 %v4905_v2  ;;  %4826 = vmatpush3.bf16.msra.mxu1 %v4905_v2  ;;  %v501_v37 = vpack.c.bf16 %v314_v33, %v313_v32  ;;  %v315_v40 = vld [vmem:[#allocation2 + $0x450] sm:$0xff]  ;;  %v316_v41 = vld [vmem:[#allocation2 + $0x458] sm:$0xff]  ;;  %v189_v42 = vld [vmem:[#allocation2 + $0x60] sm:$0xff]  ;;  %v438_v46 = vpack.c.bf16 %v188_v39, %v187_v38  ;;  %p4981_p11 = por %p4980_p10, %p4979_p9 }
  0x5e   : > { %4550 = vmatprep.subr.bf16.mxu0 %v4906_v3  ;;  %4819 = vmatprep.subr.bf16.mxu1 %v4906_v3  ;;  %v190_v43 = vld [vmem:[#allocation2 + $0x68] sm:$0xff]  ;;  %v317_v44 = vld [vmem:[#allocation2 + $0x460] sm:$0xff]  ;;  %v502_v47 = vpack.c.bf16 %v316_v41, %v315_v40  ;;  %v191_v50 = vld [vmem:[#allocation2 + $0x70] sm:$0xff] }
  0x5f   : > { %v318_v45 = vld [vmem:[#allocation2 + $0x468] sm:$0xff]  ;;  %v439_v48 = vpack.c.bf16 %v190_v43, %v189_v42  ;;  %v192_v51 = vld [vmem:[#allocation2 + $0x78] sm:$0xff]  ;;  %v319_v52 = vld [vmem:[#allocation2 + $0x470] sm:$0xff]  ;;  %p4982_p12 = pnand %p4981_p11, %p4975_p8 }
  0x60   : > { %v503_v49 = vpack.c.bf16 %v318_v45, %v317_v44  ;;  %v320_v53 = vld [vmem:[#allocation2 + $0x478] sm:$0xff]  ;;  %v193_v54 = vld [vmem:[#allocation2 + $0x80] sm:$0xff]  ;;  %v194_v55 = vld [vmem:[#allocation2 + $0x88] sm:$0xff]  ;;  %v440_v58 = vpack.c.bf16 %v192_v51, %v191_v50 }
  0x61   : > { %4551 = vmatpush3.bf16.msra.mxu0 %v4906_v3  ;;  %4827 = vmatpush3.bf16.msra.mxu1 %v4906_v3  ;;  %v321_v56 = vld [vmem:[#allocation2 + $0x480] sm:$0xff]  ;;  %v322_v57 = vld [vmem:[#allocation2 + $0x488] sm:$0xff]  ;;  %v504_v59 = vpack.c.bf16 %v320_v53, %v319_v52  ;;  %v441_v60 = vpack.c.bf16 %v194_v55, %v193_v54  ;;  %v195_v62 = vld [vmem:[#allocation2 + $0x90] sm:$0xff] }
  0x62   : > { %4552 = vmatprep.subr.bf16.mxu0 %v4907_v10  ;;  %4820 = vmatprep.subr.bf16.mxu1 %v4907_v10  ;;  %v505_v61 = vpack.c.bf16 %v322_v57, %v321_v56  ;;  %v196_v63 = vld [vmem:[#allocation2 + $0x98] sm:$0xff]  ;;  %v323_v0 = vld [vmem:[#allocation2 + $0x490] sm:$0xff]  ;;  %v197_v2 = vld [vmem:[#allocation2 + $0xa0] sm:$0xff] }
  0x63   : > { %v324_v1 = vld [vmem:[#allocation2 + $0x498] sm:$0xff]  ;;  %v198_v3 = vld [vmem:[#allocation2 + $0xa8] sm:$0xff]  ;;  %v325_v4 = vld [vmem:[#allocation2 + $0x4a0] sm:$0xff]  ;;  %v442_v6 = vpack.c.bf16 %v196_v63, %v195_v62 }
  0x64   : > { %v326_v5 = vld [vmem:[#allocation2 + $0x4a8] sm:$0xff]  ;;  %v506_v7 = vpack.c.bf16 %v324_v1, %v323_v0  ;;  %v443_v8 = vpack.c.bf16 %v198_v3, %v197_v2  ;;  %v201_v14 = vld [vmem:[#allocation2 + $0xc0] sm:$0xff] }
  0x65   : > { %4553 = vmatpush3.bf16.msra.mxu0 %v4907_v10  ;;  %4828 = vmatpush3.bf16.msra.mxu1 %v4907_v10  ;;  %v507_v9 = vpack.c.bf16 %v326_v5, %v325_v4  ;;  %v199_v10 = vld [vmem:[#allocation2 + $0xb0] sm:$0xff]  ;;  %v202_v15 = vld [vmem:[#allocation2 + $0xc8] sm:$0xff]  ;;  %v329_v16 = vld [vmem:[#allocation2 + $0x4c0] sm:$0xff] }
  0x66   : > { %4554 = vmatprep.subr.bf16.mxu0 %v4908_v11  ;;  %4821 = vmatprep.subr.bf16.mxu1 %v4908_v11  ;;  %v330_v17 = vld [vmem:[#allocation2 + $0x4c8] sm:$0xff]  ;;  %v445_v20 = vpack.c.bf16 %v202_v15, %v201_v14  ;;  %v205_v26 = vld [vmem:[#allocation2 + $0xe0] sm:$0xff] }
  0x67   : > { %v509_v21 = vpack.c.bf16 %v330_v17, %v329_v16  ;;  %v206_v27 = vld [vmem:[#allocation2 + $0xe8] sm:$0xff]  ;;  %v333_v28 = vld [vmem:[#allocation2 + $0x4e0] sm:$0xff] }
  0x68   : > { %v334_v29 = vld [vmem:[#allocation2 + $0x4e8] sm:$0xff]  ;;  %v447_v32 = vpack.c.bf16 %v206_v27, %v205_v26  ;;  %v209_v38 = vld [vmem:[#allocation2 + $0x100] sm:$0xff] }
  0x69   : > { %4555 = vmatpush3.bf16.msra.mxu0 %v4908_v11  ;;  %4829 = vmatpush3.bf16.msra.mxu1 %v4908_v11  ;;  %v200_v11 = vld [vmem:[#allocation2 + $0xb8] sm:$0xff]  ;;  %v511_v33 = vpack.c.bf16 %v334_v29, %v333_v28  ;;  %v210_v39 = vld [vmem:[#allocation2 + $0x108] sm:$0xff]  ;;  %v337_v40 = vld [vmem:[#allocation2 + $0x500] sm:$0xff] }
  0x6a   : > { %4556 = vmatprep.subr.bf16.mxu0 %v4909_v12  ;;  %4822 = vmatprep.subr.bf16.mxu1 %v4909_v12  ;;  %v444_v18 = vpack.c.bf16 %v200_v11, %v199_v10  ;;  %v338_v41 = vld [vmem:[#allocation2 + $0x508] sm:$0xff]  ;;  %v449_v44 = vpack.c.bf16 %v210_v39, %v209_v38  ;;  %v213_v50 = vld [vmem:[#allocation2 + $0x120] sm:$0xff] }
  0x6b   : > { %v513_v45 = vpack.c.bf16 %v338_v41, %v337_v40  ;;  %v214_v51 = vld [vmem:[#allocation2 + $0x128] sm:$0xff]  ;;  %v341_v52 = vld [vmem:[#allocation2 + $0x520] sm:$0xff] }
  0x6c   : > { %v342_v53 = vld [vmem:[#allocation2 + $0x528] sm:$0xff]  ;;  %v451_v56 = vpack.c.bf16 %v214_v51, %v213_v50  ;;  %v217_v62 = vld [vmem:[#allocation2 + $0x140] sm:$0xff] }
  0x6d   : > { %4557 = vmatpush3.bf16.msra.mxu0 %v4909_v12  ;;  %4830 = vmatpush3.bf16.msra.mxu1 %v4909_v12  ;;  %v327_v12 = vld [vmem:[#allocation2 + $0x4b0] sm:$0xff]  ;;  %v515_v57 = vpack.c.bf16 %v342_v53, %v341_v52  ;;  %v218_v63 = vld [vmem:[#allocation2 + $0x148] sm:$0xff]  ;;  %v345_v0 = vld [vmem:[#allocation2 + $0x540] sm:$0xff] }
  0x6e   : > { %4558 = vmatprep.subr.bf16.mxu0 %v4910_v13  ;;  %4823 = vmatprep.subr.bf16.mxu1 %v4910_v13  ;;  %v346_v1 = vld [vmem:[#allocation2 + $0x548] sm:$0xff]  ;;  %v453_v4 = vpack.c.bf16 %v218_v63, %v217_v62  ;;  %v221_v10 = vld [vmem:[#allocation2 + $0x160] sm:$0xff] }
  0x6f   : > { %v517_v5 = vpack.c.bf16 %v346_v1, %v345_v0  ;;  %v222_v11 = vld [vmem:[#allocation2 + $0x168] sm:$0xff] }
  0x70   : > { %v455_v16 = vpack.c.bf16 %v222_v11, %v221_v10 }
  0x71   : > { %4559 = vmatpush3.bf16.msra.mxu0 %v4910_v13  ;;  %4831 = vmatpush3.bf16.msra.mxu1 %v4910_v13  ;;  %v328_v13 = vld [vmem:[#allocation2 + $0x4b8] sm:$0xff] }
  0x72   : > { %v508_v19 = vpack.c.bf16 %v328_v13, %v327_v12  ;;  %v349_v12 = vld [vmem:[#allocation2 + $0x560] sm:$0xff]  ;;  %v350_v13 = vld [vmem:[#allocation2 + $0x568] sm:$0xff] }
  0x73   : > { %v519_v17 = vpack.c.bf16 %v350_v13, %v349_v12 }
  0x74   : > { %4561 = vmatmul.mubr.bf16.vlgmr.msra.gmra.mxu0 %v434_v22  ;;  %4689 = vmatmul.mubr.bf16.vlgmr.msra.gmra.mxu1 %v498_v23  ;;  %v203_v22 = vld [vmem:[#allocation2 + $0xd0] sm:$0xff]  ;;  %v204_v23 = vld [vmem:[#allocation2 + $0xd8] sm:$0xff] }
  0x75   : > { %4564 = vmatprep.mubr.bf16.mxu0 %v435_v24  ;;  %4692 = vmatprep.mubr.bf16.mxu1 %v499_v25  ;;  %v331_v24 = vld [vmem:[#allocation2 + $0x4d0] sm:$0xff]  ;;  %v332_v25 = vld [vmem:[#allocation2 + $0x4d8] sm:$0xff]  ;;  %v446_v30 = vpack.c.bf16 %v204_v23, %v203_v22  ;;  %v225_v22 = vld [vmem:[#allocation2 + $0x180] sm:$0xff] }
  0x76   : > { %v510_v31 = vpack.c.bf16 %v332_v25, %v331_v24  ;;  %v226_v23 = vld [vmem:[#allocation2 + $0x188] sm:$0xff]  ;;  %v353_v24 = vld [vmem:[#allocation2 + $0x580] sm:$0xff] }
  0x77   : > { %v354_v25 = vld [vmem:[#allocation2 + $0x588] sm:$0xff]  ;;  %v457_v28 = vpack.c.bf16 %v226_v23, %v225_v22 }
  0x78   : > { %v521_v29 = vpack.c.bf16 %v354_v25, %v353_v24 }
  0x7c   : > { %4565 = vmatmul.mubr.bf16.gmra.mxu0 %v436_v34  ;;  %4693 = vmatmul.mubr.bf16.gmra.mxu1 %v500_v35  ;;  %v207_v34 = vld [vmem:[#allocation2 + $0xf0] sm:$0xff]  ;;  %v208_v35 = vld [vmem:[#allocation2 + $0xf8] sm:$0xff] }
  0x7d   : > { %4568 = vmatprep.mubr.bf16.mxu0 %v437_v36  ;;  %4696 = vmatprep.mubr.bf16.mxu1 %v501_v37  ;;  %v335_v36 = vld [vmem:[#allocation2 + $0x4f0] sm:$0xff]  ;;  %v336_v37 = vld [vmem:[#allocation2 + $0x4f8] sm:$0xff]  ;;  %v448_v42 = vpack.c.bf16 %v208_v35, %v207_v34  ;;  %v229_v34 = vld [vmem:[#allocation2 + $0x1a0] sm:$0xff] }
  0x7e   : > { %v512_v43 = vpack.c.bf16 %v336_v37, %v335_v36  ;;  %v230_v35 = vld [vmem:[#allocation2 + $0x1a8] sm:$0xff]  ;;  %v357_v36 = vld [vmem:[#allocation2 + $0x5a0] sm:$0xff] }
  0x7f   : > { %v358_v37 = vld [vmem:[#allocation2 + $0x5a8] sm:$0xff]  ;;  %v459_v40 = vpack.c.bf16 %v230_v35, %v229_v34 }
  0x80   : > { %v523_v41 = vpack.c.bf16 %v358_v37, %v357_v36 }
  0x84   : > { %4569 = vmatmul.mubr.bf16.gmra.mxu0 %v438_v46  ;;  %4697 = vmatmul.mubr.bf16.gmra.mxu1 %v502_v47  ;;  %v211_v46 = vld [vmem:[#allocation2 + $0x110] sm:$0xff]  ;;  %v212_v47 = vld [vmem:[#allocation2 + $0x118] sm:$0xff] }
  0x85   : > { %4572 = vmatprep.mubr.bf16.mxu0 %v439_v48  ;;  %4700 = vmatprep.mubr.bf16.mxu1 %v503_v49  ;;  %v339_v48 = vld [vmem:[#allocation2 + $0x510] sm:$0xff]  ;;  %v340_v49 = vld [vmem:[#allocation2 + $0x518] sm:$0xff]  ;;  %v450_v54 = vpack.c.bf16 %v212_v47, %v211_v46  ;;  %v233_v46 = vld [vmem:[#allocation2 + $0x1c0] sm:$0xff] }
  0x86   : > { %v514_v55 = vpack.c.bf16 %v340_v49, %v339_v48  ;;  %v234_v47 = vld [vmem:[#allocation2 + $0x1c8] sm:$0xff]  ;;  %v361_v48 = vld [vmem:[#allocation2 + $0x5c0] sm:$0xff] }
  0x87   : > { %v362_v49 = vld [vmem:[#allocation2 + $0x5c8] sm:$0xff]  ;;  %v461_v52 = vpack.c.bf16 %v234_v47, %v233_v46 }
  0x88   : > { %v525_v53 = vpack.c.bf16 %v362_v49, %v361_v48 }
  0x8c   : > { %4573 = vmatmul.mubr.bf16.gmra.mxu0 %v440_v58  ;;  %4701 = vmatmul.mubr.bf16.gmra.mxu1 %v504_v59  ;;  %v215_v58 = vld [vmem:[#allocation2 + $0x130] sm:$0xff]  ;;  %v216_v59 = vld [vmem:[#allocation2 + $0x138] sm:$0xff] }
  0x8d   : > { %4576 = vmatprep.mubr.bf16.mxu0 %v441_v60  ;;  %4704 = vmatprep.mubr.bf16.mxu1 %v505_v61  ;;  %v343_v60 = vld [vmem:[#allocation2 + $0x530] sm:$0xff]  ;;  %v344_v61 = vld [vmem:[#allocation2 + $0x538] sm:$0xff]  ;;  %v452_v2 = vpack.c.bf16 %v216_v59, %v215_v58  ;;  %v237_v58 = vld [vmem:[#allocation2 + $0x1e0] sm:$0xff] }
  0x8e   : > { %v516_v3 = vpack.c.bf16 %v344_v61, %v343_v60  ;;  %v238_v59 = vld [vmem:[#allocation2 + $0x1e8] sm:$0xff]  ;;  %v365_v60 = vld [vmem:[#allocation2 + $0x5e0] sm:$0xff] }
  0x8f   : > { %v366_v61 = vld [vmem:[#allocation2 + $0x5e8] sm:$0xff]  ;;  %v463_v0 = vpack.c.bf16 %v238_v59, %v237_v58 }
  0x90   : > { %v527_v1 = vpack.c.bf16 %v366_v61, %v365_v60 }
  0x94   : > { %4577 = vmatmul.mubr.bf16.gmra.mxu0 %v442_v6  ;;  %4705 = vmatmul.mubr.bf16.gmra.mxu1 %v506_v7  ;;  %v219_v6 = vld [vmem:[#allocation2 + $0x150] sm:$0xff]  ;;  %v220_v7 = vld [vmem:[#allocation2 + $0x158] sm:$0xff] }
  0x95   : > { %4580 = vmatprep.mubr.bf16.mxu0 %v443_v8  ;;  %4708 = vmatprep.mubr.bf16.mxu1 %v507_v9  ;;  %v347_v8 = vld [vmem:[#allocation2 + $0x550] sm:$0xff]  ;;  %v348_v9 = vld [vmem:[#allocation2 + $0x558] sm:$0xff]  ;;  %v454_v14 = vpack.c.bf16 %v220_v7, %v219_v6  ;;  %v241_v6 = vld [vmem:[#allocation2 + $0x200] sm:$0xff] }
  0x96   : > { %v518_v15 = vpack.c.bf16 %v348_v9, %v347_v8  ;;  %v242_v7 = vld [vmem:[#allocation2 + $0x208] sm:$0xff]  ;;  %v369_v8 = vld [vmem:[#allocation2 + $0x600] sm:$0xff] }
  0x97   : > { %v370_v9 = vld [vmem:[#allocation2 + $0x608] sm:$0xff]  ;;  %v465_v12 = vpack.c.bf16 %v242_v7, %v241_v6 }
  0x98   : > { %v529_v13 = vpack.c.bf16 %v370_v9, %v369_v8 }
  0x9c   : > { %4581 = vmatmul.mubr.bf16.gmra.mxu0 %v444_v18  ;;  %4709 = vmatmul.mubr.bf16.gmra.mxu1 %v508_v19  ;;  %v223_v18 = vld [vmem:[#allocation2 + $0x170] sm:$0xff]  ;;  %v224_v19 = vld [vmem:[#allocation2 + $0x178] sm:$0xff] }
  0x9d   : > { %4584 = vmatprep.mubr.bf16.mxu0 %v445_v20  ;;  %4712 = vmatprep.mubr.bf16.mxu1 %v509_v21  ;;  %v351_v20 = vld [vmem:[#allocation2 + $0x570] sm:$0xff]  ;;  %v352_v21 = vld [vmem:[#allocation2 + $0x578] sm:$0xff]  ;;  %v456_v26 = vpack.c.bf16 %v224_v19, %v223_v18  ;;  %v245_v18 = vld [vmem:[#allocation2 + $0x220] sm:$0xff] }
  0x9e   : > { %v520_v27 = vpack.c.bf16 %v352_v21, %v351_v20  ;;  %v246_v19 = vld [vmem:[#allocation2 + $0x228] sm:$0xff]  ;;  %v373_v20 = vld [vmem:[#allocation2 + $0x620] sm:$0xff] }
  0x9f   : > { %v374_v21 = vld [vmem:[#allocation2 + $0x628] sm:$0xff]  ;;  %v467_v24 = vpack.c.bf16 %v246_v19, %v245_v18 }
  0xa0   : > { %v531_v25 = vpack.c.bf16 %v374_v21, %v373_v20 }
  0xa4   : > { %4585 = vmatmul.mubr.bf16.gmra.mxu0 %v446_v30  ;;  %4713 = vmatmul.mubr.bf16.gmra.mxu1 %v510_v31  ;;  %v227_v30 = vld [vmem:[#allocation2 + $0x190] sm:$0xff]  ;;  %v228_v31 = vld [vmem:[#allocation2 + $0x198] sm:$0xff] }
  0xa5   : > { %4588 = vmatprep.mubr.bf16.mxu0 %v447_v32  ;;  %4716 = vmatprep.mubr.bf16.mxu1 %v511_v33  ;;  %v355_v32 = vld [vmem:[#allocation2 + $0x590] sm:$0xff]  ;;  %v356_v33 = vld [vmem:[#allocation2 + $0x598] sm:$0xff]  ;;  %v458_v38 = vpack.c.bf16 %v228_v31, %v227_v30  ;;  %v249_v30 = vld [vmem:[#allocation2 + $0x240] sm:$0xff] }
  0xa6   : > { %v522_v39 = vpack.c.bf16 %v356_v33, %v355_v32  ;;  %v250_v31 = vld [vmem:[#allocation2 + $0x248] sm:$0xff]  ;;  %v377_v32 = vld [vmem:[#allocation2 + $0x640] sm:$0xff] }
  0xa7   : > { %v378_v33 = vld [vmem:[#allocation2 + $0x648] sm:$0xff]  ;;  %v469_v36 = vpack.c.bf16 %v250_v31, %v249_v30 }
  0xa8   : > { %v533_v37 = vpack.c.bf16 %v378_v33, %v377_v32 }
  0xac   : > { %4589 = vmatmul.mubr.bf16.gmra.mxu0 %v448_v42  ;;  %4717 = vmatmul.mubr.bf16.gmra.mxu1 %v512_v43  ;;  %v231_v42 = vld [vmem:[#allocation2 + $0x1b0] sm:$0xff]  ;;  %v232_v43 = vld [vmem:[#allocation2 + $0x1b8] sm:$0xff] }
  0xad   : > { %4592 = vmatprep.mubr.bf16.mxu0 %v449_v44  ;;  %4720 = vmatprep.mubr.bf16.mxu1 %v513_v45  ;;  %v359_v44 = vld [vmem:[#allocation2 + $0x5b0] sm:$0xff]  ;;  %v360_v45 = vld [vmem:[#allocation2 + $0x5b8] sm:$0xff]  ;;  %v460_v50 = vpack.c.bf16 %v232_v43, %v231_v42  ;;  %v253_v42 = vld [vmem:[#allocation2 + $0x260] sm:$0xff] }
  0xae   : > { %v524_v51 = vpack.c.bf16 %v360_v45, %v359_v44  ;;  %v254_v43 = vld [vmem:[#allocation2 + $0x268] sm:$0xff]  ;;  %v381_v44 = vld [vmem:[#allocation2 + $0x660] sm:$0xff] }
  0xaf   : > { %v382_v45 = vld [vmem:[#allocation2 + $0x668] sm:$0xff]  ;;  %v471_v48 = vpack.c.bf16 %v254_v43, %v253_v42 }
  0xb0   : > { %v535_v49 = vpack.c.bf16 %v382_v45, %v381_v44 }
  0xb4   : > { %4593 = vmatmul.mubr.bf16.gmra.mxu0 %v450_v54  ;;  %4721 = vmatmul.mubr.bf16.gmra.mxu1 %v514_v55  ;;  %v235_v54 = vld [vmem:[#allocation2 + $0x1d0] sm:$0xff]  ;;  %v236_v55 = vld [vmem:[#allocation2 + $0x1d8] sm:$0xff] }
  0xb5   : > { %4596 = vmatprep.mubr.bf16.mxu0 %v451_v56  ;;  %4724 = vmatprep.mubr.bf16.mxu1 %v515_v57  ;;  %v363_v56 = vld [vmem:[#allocation2 + $0x5d0] sm:$0xff]  ;;  %v364_v57 = vld [vmem:[#allocation2 + $0x5d8] sm:$0xff]  ;;  %v462_v62 = vpack.c.bf16 %v236_v55, %v235_v54  ;;  %v257_v54 = vld [vmem:[#allocation2 + $0x280] sm:$0xff] }
  0xb6   : > { %v526_v63 = vpack.c.bf16 %v364_v57, %v363_v56  ;;  %v258_v55 = vld [vmem:[#allocation2 + $0x288] sm:$0xff]  ;;  %v385_v56 = vld [vmem:[#allocation2 + $0x680] sm:$0xff] }
  0xb7   : > { %v386_v57 = vld [vmem:[#allocation2 + $0x688] sm:$0xff]  ;;  %v473_v60 = vpack.c.bf16 %v258_v55, %v257_v54  ;;  %v5195_v54 = vld [vmem:[#allocation2 + $0x330] sm:$0xff]  ;;  %v5197_v55 = vld [vmem:[#allocation2 + $0x338] sm:$0xff] }
  0xb8   : > { %v537_v61 = vpack.c.bf16 %v386_v57, %v385_v56  ;;  %v5199_v56 = vld [vmem:[#allocation2 + $0x730] sm:$0xff]  ;;  %v5201_v57 = vld [vmem:[#allocation2 + $0x738] sm:$0xff] }
  0xbc   : > { %4597 = vmatmul.mubr.bf16.gmra.mxu0 %v452_v2  ;;  %4725 = vmatmul.mubr.bf16.gmra.mxu1 %v516_v3  ;;  %v239_v2 = vld [vmem:[#allocation2 + $0x1f0] sm:$0xff]  ;;  %v240_v3 = vld [vmem:[#allocation2 + $0x1f8] sm:$0xff] }
  0xbd   : > { %4600 = vmatprep.mubr.bf16.mxu0 %v453_v4  ;;  %4728 = vmatprep.mubr.bf16.mxu1 %v517_v5  ;;  %v367_v4 = vld [vmem:[#allocation2 + $0x5f0] sm:$0xff]  ;;  %v368_v5 = vld [vmem:[#allocation2 + $0x5f8] sm:$0xff]  ;;  %v464_v10 = vpack.c.bf16 %v240_v3, %v239_v2  ;;  %v261_v2 = vld [vmem:[#allocation2 + $0x2a0] sm:$0xff] }
  0xbe   : > { %v528_v11 = vpack.c.bf16 %v368_v5, %v367_v4  ;;  %v262_v3 = vld [vmem:[#allocation2 + $0x2a8] sm:$0xff]  ;;  %v389_v4 = vld [vmem:[#allocation2 + $0x6a0] sm:$0xff] }
  0xbf   : > { %v390_v5 = vld [vmem:[#allocation2 + $0x6a8] sm:$0xff]  ;;  %v475_v8 = vpack.c.bf16 %v262_v3, %v261_v2  ;;  %v5219_v2 = vld [vmem:[#allocation2 + $0x360] sm:$0xff] }
  0xc0   : > { %v539_v9 = vpack.c.bf16 %v390_v5, %v389_v4  ;;  %v5221_v3 = vld [vmem:[#allocation2 + $0x368] sm:$0xff]  ;;  %v5223_v4 = vld [vmem:[#allocation2 + $0x760] sm:$0xff] }
  0xc1   : > { %v5225_v5 = vld [vmem:[#allocation2 + $0x768] sm:$0xff] }
  0xc4   : > { %4601 = vmatmul.mubr.bf16.gmra.mxu0 %v454_v14  ;;  %4729 = vmatmul.mubr.bf16.gmra.mxu1 %v518_v15  ;;  %v243_v14 = vld [vmem:[#allocation2 + $0x210] sm:$0xff]  ;;  %v244_v15 = vld [vmem:[#allocation2 + $0x218] sm:$0xff] }
  0xc5   : > { %4604 = vmatprep.mubr.bf16.mxu0 %v455_v16  ;;  %4732 = vmatprep.mubr.bf16.mxu1 %v519_v17  ;;  %v371_v16 = vld [vmem:[#allocation2 + $0x610] sm:$0xff]  ;;  %v372_v17 = vld [vmem:[#allocation2 + $0x618] sm:$0xff]  ;;  %v466_v22 = vpack.c.bf16 %v244_v15, %v243_v14  ;;  %v265_v14 = vld [vmem:[#allocation2 + $0x2c0] sm:$0xff] }
  0xc6   : > { %v530_v23 = vpack.c.bf16 %v372_v17, %v371_v16  ;;  %v266_v15 = vld [vmem:[#allocation2 + $0x2c8] sm:$0xff]  ;;  %v393_v16 = vld [vmem:[#allocation2 + $0x6c0] sm:$0xff] }
  0xc7   : > { %v394_v17 = vld [vmem:[#allocation2 + $0x6c8] sm:$0xff]  ;;  %v477_v20 = vpack.c.bf16 %v266_v15, %v265_v14  ;;  %v5244_v15 = vld [vmem:[#allocation2 + $0x780] sm:$0xff] }
  0xc8   : > { %v541_v21 = vpack.c.bf16 %v394_v17, %v393_v16  ;;  %v5242_v14 = vld [vmem:[#allocation2 + $0x388] sm:$0xff] }
  0xc9   : > { %v5246_v16 = vld [vmem:[#allocation2 + $0x788] sm:$0xff] }
  0xcc   : > { %4605 = vmatmul.mubr.bf16.gmra.mxu0 %v456_v26  ;;  %4733 = vmatmul.mubr.bf16.gmra.mxu1 %v520_v27  ;;  %v247_v26 = vld [vmem:[#allocation2 + $0x230] sm:$0xff]  ;;  %v248_v27 = vld [vmem:[#allocation2 + $0x238] sm:$0xff] }
  0xcd   : > { %4608 = vmatprep.mubr.bf16.mxu0 %v457_v28  ;;  %4736 = vmatprep.mubr.bf16.mxu1 %v521_v29  ;;  %v375_v28 = vld [vmem:[#allocation2 + $0x630] sm:$0xff]  ;;  %v376_v29 = vld [vmem:[#allocation2 + $0x638] sm:$0xff]  ;;  %v468_v34 = vpack.c.bf16 %v248_v27, %v247_v26  ;;  %v269_v26 = vld [vmem:[#allocation2 + $0x2e0] sm:$0xff] }
  0xce   : > { %v532_v35 = vpack.c.bf16 %v376_v29, %v375_v28  ;;  %v270_v27 = vld [vmem:[#allocation2 + $0x2e8] sm:$0xff]  ;;  %v397_v28 = vld [vmem:[#allocation2 + $0x6e0] sm:$0xff] }
  0xcf   : > { %v398_v29 = vld [vmem:[#allocation2 + $0x6e8] sm:$0xff]  ;;  %v479_v32 = vpack.c.bf16 %v270_v27, %v269_v26  ;;  %v5268_v27 = vld [vmem:[#allocation2 + $0x3a0] sm:$0xff] }
  0xd0   : > { %v543_v33 = vpack.c.bf16 %v398_v29, %v397_v28  ;;  %v5270_v28 = vld [vmem:[#allocation2 + $0x3a8] sm:$0xff]  ;;  %v5272_v29 = vld [vmem:[#allocation2 + $0x7a0] sm:$0xff] }
  0xd4   : > { %4609 = vmatmul.mubr.bf16.gmra.mxu0 %v458_v38  ;;  %4737 = vmatmul.mubr.bf16.gmra.mxu1 %v522_v39  ;;  %v251_v38 = vld [vmem:[#allocation2 + $0x250] sm:$0xff]  ;;  %v252_v39 = vld [vmem:[#allocation2 + $0x258] sm:$0xff] }
  0xd5   : > { %4612 = vmatprep.mubr.bf16.mxu0 %v459_v40  ;;  %4740 = vmatprep.mubr.bf16.mxu1 %v523_v41  ;;  %v379_v40 = vld [vmem:[#allocation2 + $0x650] sm:$0xff]  ;;  %v380_v41 = vld [vmem:[#allocation2 + $0x658] sm:$0xff]  ;;  %v470_v46 = vpack.c.bf16 %v252_v39, %v251_v38  ;;  %v273_v38 = vld [vmem:[#allocation2 + $0x300] sm:$0xff] }
  0xd6   : > { %v534_v47 = vpack.c.bf16 %v380_v41, %v379_v40  ;;  %v274_v39 = vld [vmem:[#allocation2 + $0x308] sm:$0xff]  ;;  %v401_v40 = vld [vmem:[#allocation2 + $0x700] sm:$0xff] }
  0xd7   : > { %v402_v41 = vld [vmem:[#allocation2 + $0x708] sm:$0xff]  ;;  %v481_v44 = vpack.c.bf16 %v274_v39, %v273_v38  ;;  %v5326_v39 = vld [vmem:[#allocation2 + $0x7d8] sm:$0xff] }
  0xd8   : > { %v545_v45 = vpack.c.bf16 %v402_v41, %v401_v40  ;;  %v5322_v40 = vld [vmem:[#allocation2 + $0x3d8] sm:$0xff]  ;;  %6385 = vst [vmem:[#allocation22_spill] sm:$0xff] %v5326_v39 }
  0xdc   : > { %4613 = vmatmul.mubr.bf16.gmra.mxu0 %v460_v50  ;;  %4741 = vmatmul.mubr.bf16.gmra.mxu1 %v524_v51  ;;  %v255_v50 = vld [vmem:[#allocation2 + $0x270] sm:$0xff]  ;;  %v256_v51 = vld [vmem:[#allocation2 + $0x278] sm:$0xff] }
  0xdd   : > { %4616 = vmatprep.mubr.bf16.mxu0 %v461_v52  ;;  %4744 = vmatprep.mubr.bf16.mxu1 %v525_v53  ;;  %v383_v52 = vld [vmem:[#allocation2 + $0x670] sm:$0xff]  ;;  %v384_v53 = vld [vmem:[#allocation2 + $0x678] sm:$0xff]  ;;  %v472_v58 = vpack.c.bf16 %v256_v51, %v255_v50  ;;  %v5187_v50 = vld [vmem:[#allocation2 + $0x320] sm:$0xff] }
  0xde   : > { %v536_v59 = vpack.c.bf16 %v384_v53, %v383_v52  ;;  %v5189_v51 = vld [vmem:[#allocation2 + $0x328] sm:$0xff]  ;;  %v5191_v52 = vld [vmem:[#allocation2 + $0x720] sm:$0xff] }
  0xdf   : > { %v5193_v53 = vld [vmem:[#allocation2 + $0x728] sm:$0xff]  ;;  %v483_v17 = vpack.c.bf16 %v5189_v51, %v5187_v50 }
  0xe0   : > { %v5308_v50 = vld [vmem:[#allocation2 + $0x7c8] sm:$0xff] }
  0xe1   : > { %6383 = vst [vmem:[#allocation20_spill] sm:$0xff] %v5308_v50 }
  0xe4   : > { %4617 = vmatmul.mubr.bf16.gmra.mxu0 %v462_v62  ;;  %4745 = vmatmul.mubr.bf16.gmra.mxu1 %v526_v63  ;;  %v259_v62 = vld [vmem:[#allocation2 + $0x290] sm:$0xff]  ;;  %v260_v63 = vld [vmem:[#allocation2 + $0x298] sm:$0xff] }
  0xe5   : > { %4620 = vmatprep.mubr.bf16.mxu0 %v463_v0  ;;  %4748 = vmatprep.mubr.bf16.mxu1 %v527_v1  ;;  %v387_v0 = vld [vmem:[#allocation2 + $0x690] sm:$0xff]  ;;  %v388_v1 = vld [vmem:[#allocation2 + $0x698] sm:$0xff]  ;;  %v474_v6 = vpack.c.bf16 %v260_v63, %v259_v62 }
  0xe6   : > { %v538_v7 = vpack.c.bf16 %v388_v1, %v387_v0  ;;  %v5211_v62 = vld [vmem:[#allocation2 + $0x350] sm:$0xff]  ;;  %v5213_v63 = vld [vmem:[#allocation2 + $0x358] sm:$0xff] }
  0xe7   : > { %v5215_v0 = vld [vmem:[#allocation2 + $0x750] sm:$0xff]  ;;  %v5217_v1 = vld [vmem:[#allocation2 + $0x758] sm:$0xff] }
  0xec   : > { %4621 = vmatmul.mubr.bf16.gmra.mxu0 %v464_v10  ;;  %4749 = vmatmul.mubr.bf16.gmra.mxu1 %v528_v11  ;;  %v263_v10 = vld [vmem:[#allocation2 + $0x2b0] sm:$0xff]  ;;  %v264_v11 = vld [vmem:[#allocation2 + $0x2b8] sm:$0xff] }
  0xed   : > { %4624 = vmatprep.mubr.bf16.mxu0 %v465_v12  ;;  %4752 = vmatprep.mubr.bf16.mxu1 %v529_v13  ;;  %v391_v12 = vld [vmem:[#allocation2 + $0x6b0] sm:$0xff]  ;;  %v392_v13 = vld [vmem:[#allocation2 + $0x6b8] sm:$0xff]  ;;  %v476_v18 = vpack.c.bf16 %v264_v11, %v263_v10  ;;  %v5235_v10 = vld [vmem:[#allocation2 + $0x380] sm:$0xff] }
  0xee   : > { %v540_v19 = vpack.c.bf16 %v392_v13, %v391_v12  ;;  %v5240_v11 = vld [vmem:[%s6371_s3] ss:$0 sm:$0xff] }
  0xf4   : > { %4625 = vmatmul.mubr.bf16.gmra.mxu0 %v466_v22  ;;  %4753 = vmatmul.mubr.bf16.gmra.mxu1 %v530_v23  ;;  %v267_v22 = vld [vmem:[#allocation2 + $0x2d0] sm:$0xff]  ;;  %v268_v23 = vld [vmem:[#allocation2 + $0x2d8] sm:$0xff] }
  0xf5   : > { %4628 = vmatprep.mubr.bf16.mxu0 %v467_v24  ;;  %4756 = vmatprep.mubr.bf16.mxu1 %v531_v25  ;;  %v395_v24 = vld [vmem:[#allocation2 + $0x6d0] sm:$0xff]  ;;  %v396_v25 = vld [vmem:[#allocation2 + $0x6d8] sm:$0xff]  ;;  %v478_v30 = vpack.c.bf16 %v268_v23, %v267_v22 }
  0xf6   : > { %v542_v31 = vpack.c.bf16 %v396_v25, %v395_v24  ;;  %v5258_v22 = vld [vmem:[#allocation2 + $0x798] sm:$0xff] }
  0xfc   : > { %4629 = vmatmul.mubr.bf16.gmra.mxu0 %v468_v34  ;;  %4757 = vmatmul.mubr.bf16.gmra.mxu1 %v532_v35  ;;  %v271_v34 = vld [vmem:[#allocation2 + $0x2f0] sm:$0xff]  ;;  %v272_v35 = vld [vmem:[#allocation2 + $0x2f8] sm:$0xff] }
  0xfd   : > { %4632 = vmatprep.mubr.bf16.mxu0 %v469_v36  ;;  %4760 = vmatprep.mubr.bf16.mxu1 %v533_v37  ;;  %v399_v36 = vld [vmem:[#allocation2 + $0x6f0] sm:$0xff]  ;;  %v400_v37 = vld [vmem:[#allocation2 + $0x6f8] sm:$0xff]  ;;  %v480_v42 = vpack.c.bf16 %v272_v35, %v271_v34  ;;  %v5282_v34 = vld [vmem:[#allocation2 + $0x7a8] sm:$0xff] }
  0xfe   : > { %v544_v43 = vpack.c.bf16 %v400_v37, %v399_v36  ;;  %v5284_v35 = vld [vmem:[#allocation2 + $0x3b0] sm:$0xff]  ;;  %v5286_v36 = vld [vmem:[#allocation2 + $0x3b8] sm:$0xff] }
 0x104   : > { %4633 = vmatmul.mubr.bf16.gmra.mxu0 %v470_v46  ;;  %4761 = vmatmul.mubr.bf16.gmra.mxu1 %v534_v47  ;;  %v275_v46 = vld [vmem:[#allocation2 + $0x310] sm:$0xff]  ;;  %v276_v47 = vld [vmem:[#allocation2 + $0x318] sm:$0xff] }
 0x105   : > { %4636 = vmatprep.mubr.bf16.mxu0 %v471_v48  ;;  %4764 = vmatprep.mubr.bf16.mxu1 %v535_v49  ;;  %v403_v48 = vld [vmem:[#allocation2 + $0x710] sm:$0xff]  ;;  %v404_v49 = vld [vmem:[#allocation2 + $0x718] sm:$0xff]  ;;  %v482_v12 = vpack.c.bf16 %v276_v47, %v275_v46 }
 0x106   : > { %v546_v13 = vpack.c.bf16 %v404_v49, %v403_v48  ;;  %v5304_v48 = vld [vmem:[#allocation2 + $0x3c8] sm:$0xff]  ;;  %v5306_v49 = vld [vmem:[#allocation2 + $0x7c0] sm:$0xff] }
 0x107   : > { %6382 = vst [vmem:[#allocation19_spill] sm:$0xff] %v5306_v49 }
 0x10c   : > { %4637 = vmatmul.mubr.bf16.gmra.mxu0 %v472_v58  ;;  %4765 = vmatmul.mubr.bf16.gmra.mxu1 %v536_v59  ;;  %v5203_v58 = vld [vmem:[#allocation2 + $0x340] sm:$0xff]  ;;  %v5205_v59 = vld [vmem:[#allocation2 + $0x348] sm:$0xff] }
 0x10d   : > { %4640 = vmatprep.mubr.bf16.mxu0 %v473_v60  ;;  %4768 = vmatprep.mubr.bf16.mxu1 %v537_v61  ;;  %v5207_v60 = vld [vmem:[#allocation2 + $0x740] sm:$0xff]  ;;  %v5209_v61 = vld [vmem:[#allocation2 + $0x748] sm:$0xff] }
 0x114   : > { %4641 = vmatmul.mubr.bf16.gmra.mxu0 %v474_v6  ;;  %4769 = vmatmul.mubr.bf16.gmra.mxu1 %v538_v7  ;;  %v5227_v6 = vld [vmem:[#allocation2 + $0x370] sm:$0xff]  ;;  %v5229_v7 = vld [vmem:[#allocation2 + $0x378] sm:$0xff] }
 0x115   : > { %4644 = vmatprep.mubr.bf16.mxu0 %v475_v8  ;;  %4772 = vmatprep.mubr.bf16.mxu1 %v539_v9  ;;  %v5231_v8 = vld [vmem:[#allocation2 + $0x770] sm:$0xff]  ;;  %v5233_v9 = vld [vmem:[#allocation2 + $0x778] sm:$0xff] }
 0x11c   : > { %4645 = vmatmul.mubr.bf16.gmra.mxu0 %v476_v18  ;;  %4773 = vmatmul.mubr.bf16.gmra.mxu1 %v540_v19  ;;  %v547_v18 = vpack.c.bf16 %v5193_v53, %v5191_v52  ;;  %v5252_v19 = vld [vmem:[#allocation2 + $0x390] sm:$0xff] }
 0x11d   : > { %4648 = vmatprep.mubr.bf16.mxu0 %v477_v20  ;;  %4776 = vmatprep.mubr.bf16.mxu1 %v541_v21  ;;  %v5254_v20 = vld [vmem:[#allocation2 + $0x398] sm:$0xff]  ;;  %v5256_v21 = vld [vmem:[#allocation2 + $0x790] sm:$0xff] }
 0x11e   : > { %v5324_v53 = vld [vmem:[#allocation2 + $0x7d0] sm:$0xff] }
 0x11f   : > { %6384 = vst [vmem:[#allocation21_spill] sm:$0xff] %v5324_v53 }
 0x124   : > { %4649 = vmatmul.mubr.bf16.gmra.mxu0 %v478_v30  ;;  %4777 = vmatmul.mubr.bf16.gmra.mxu1 %v542_v31 }
 0x125   : > { %4652 = vmatprep.mubr.bf16.mxu0 %v479_v32  ;;  %4780 = vmatprep.mubr.bf16.mxu1 %v543_v33 }
 0x12c   : > { %4653 = vmatmul.mubr.bf16.gmra.mxu0 %v480_v42  ;;  %4781 = vmatmul.mubr.bf16.gmra.mxu1 %v544_v43  ;;  %v5294_v42 = vld [vmem:[#allocation2 + $0x7b0] sm:$0xff]  ;;  %v5296_v43 = vld [vmem:[#allocation2 + $0x7b8] sm:$0xff] }
 0x12d   : > { %4656 = vmatprep.mubr.bf16.mxu0 %v481_v44  ;;  %4784 = vmatprep.mubr.bf16.mxu1 %v545_v45  ;;  %v5298_v44 = vld [vmem:[#allocation2 + $0x3c0] sm:$0xff] }
 0x12e   : > { %6381 = vst [vmem:[#allocation18_spill] sm:$0xff] %v5298_v44 }
 0x134   : > { %v4562_v37 = vpop.f32.mrf.mxu0  ;;  %4657 = vmatmul.mubr.bf16.gmra.mxu0 %v482_v12  ;;  %v4690_v38 = vpop.f32.mrf.mxu1  ;;  %4785 = vmatmul.mubr.bf16.gmra.mxu1 %v546_v13 }
 0x135   : > { %v675_v45 = vadd.f32 %v4562_v37, %v5240_v11  ;;  %v1187_v46 = vadd.f32 %v4690_v38, %v5240_v11  ;;  %4660 = vmatprep.mubr.bf16.mxu0 %v483_v17  ;;  %4788 = vmatprep.mubr.bf16.mxu1 %v547_v18  ;;  %v5318_v18 = vld [vmem:[#allocation2 + $0x3d0] sm:$0xff] }
 0x136   : > { %v666_v51 = vpop.f32.mrf.mxu0  ;;  %v1178_v52 = vpop.f32.mrf.mxu1 }
 0x137   : > { %v1691_v37 = vmax.f32 %v675_v45, 0.0  ;;  %v1819_v38 = vmax.f32 %v1187_v46, 0.0  ;;  %v667_v47 = vadd.f32 %v5240_v11, %v666_v51  ;;  %v1179_v41 = vadd.f32 %v5240_v11, %v1178_v52 }
 0x138   : > { %v4563_v12 = vpop.f32.mrf.mxu0  ;;  %v4691_v33 = vpop.f32.mrf.mxu1 }
 0x139   : > { %v1957_v51 = vrot.slane %v1691_v37, 4  ;;  %v2725_v52 = vrot.slane %v1819_v38, 4  ;;  %v1689_v32 = vmax.f32 %v667_v47, 0.0  ;;  %v1817_v31 = vmax.f32 %v1179_v41, 0.0 }
 0x13a   : > { %v678_v30 = vadd.f32 %v4563_v12, %v5240_v11  ;;  %v1190_v26 = vadd.f32 %v4691_v33, %v5240_v11  ;;  %v669_v25 = vpop.f32.mrf.mxu0  ;;  %v1181_v24 = vpop.f32.mrf.mxu1  ;;  %v6386_v33 = vpack.c.bf16 %v5197_v55, %v5195_v54  ;;  %v6387_v12 = vpack.c.bf16 %v5201_v57, %v5199_v56 }
 0x13b   : > { %v1958_v45 = vadd.f32 %v1957_v51, %v1691_v37  ;;  %v2726_v23 = vadd.f32 %v2725_v52, %v1819_v38  ;;  %v1945_v44 = vrot.slane %v1689_v32, 4  ;;  %v2713_v46 = vrot.slane %v1817_v31, 4 }
 0x13c   : > { %v1692_v49 = vmax.f32 %v678_v30, 0.0  ;;  %v1820_v50 = vmax.f32 %v1190_v26, 0.0  ;;  %v670_v41 = vadd.f32 %v5240_v11, %v669_v25  ;;  %v1182_v47 = vadd.f32 %v5240_v11, %v1181_v24  ;;  %4661 = vmatmul.mubr.bf16.gmra.mxu0 %v6386_v33  ;;  %4789 = vmatmul.mubr.bf16.gmra.mxu1 %v6387_v12  ;;  %v4694_v53 = vpop.f32.mrf.mxu1 }
 0x13d   : > { %v1959_v13 = vrot.slane %v1958_v45, 2  ;;  %v2727_v17 = vrot.slane %v2726_v23, 2  ;;  %v1946_v37 = vadd.f32 %v1945_v44, %v1689_v32  ;;  %v2714_v38 = vadd.f32 %v2713_v46, %v1817_v31 }
 0x13e   : > { %v6388_v30 = vpack.c.bf16 %v5205_v59, %v5203_v58  ;;  %v6389_v25 = vpack.c.bf16 %v5209_v61, %v5207_v60  ;;  %v1963_v24 = vrot.slane %v1692_v49, 4  ;;  %v2731_v26 = vrot.slane %v1820_v50, 4 }
 0x13f   : > { %v1690_v54 = vmax.f32 %v670_v41, 0.0  ;;  %v1818_v55 = vmax.f32 %v1182_v47, 0.0  ;;  %v1960_v51 = vadd.f32 %v1959_v13, %v1958_v45  ;;  %v2728_v52 = vadd.f32 %v2727_v17, %v2726_v23  ;;  %v5356_v41 = vld [vmem:[#allocation2 + $0x3e0] sm:$0xff]  ;;  %v5358_v13 = vld [vmem:[#allocation2 + $0x3e8] sm:$0xff] }
 0x140   : > { %4664 = vmatprep.mubr.bf16.mxu0 %v6388_v30  ;;  %4792 = vmatprep.mubr.bf16.mxu1 %v6389_v25  ;;  %v1947_v56 = vrot.slane %v1946_v37, 2  ;;  %v2715_v57 = vrot.slane %v2714_v38, 2  ;;  %v1964_v33 = vadd.f32 %v1963_v24, %v1692_v49  ;;  %v2732_v12 = vadd.f32 %v2731_v26, %v1820_v50  ;;  %v4566_v30 = vpop.f32.mrf.mxu0 }
 0x141   : > { %v1951_v32 = vrot.slane %v1690_v54, 4  ;;  %v2719_v31 = vrot.slane %v1818_v55, 4  ;;  %v1961_v44 = vrot.slane %v1960_v51, 1  ;;  %v2729_v46 = vrot.slane %v2728_v52, 1 }
 0x142   : > { %v1948_v58 = vadd.f32 %v1947_v56, %v1946_v37  ;;  %v2716_v59 = vadd.f32 %v2715_v57, %v2714_v38  ;;  %v1965_v60 = vrot.slane %v1964_v33, 2  ;;  %v2733_v61 = vrot.slane %v2732_v12, 2  ;;  %v1194_v56 = vpop.f32.mrf.mxu1 }
 0x143   : > { %v1952_v25 = vadd.f32 %v1951_v32, %v1690_v54  ;;  %v2720_v39 = vadd.f32 %v2719_v31, %v1818_v55  ;;  %v1962_v23 = vadd.f32 %v1961_v44, %v1960_v51  ;;  %v2730_v17 = vadd.f32 %v2729_v46, %v2728_v52  ;;  %v682_v52 = vpop.f32.mrf.mxu0 }
 0x144   : > { %v1949_v49 = vrot.slane %v1948_v58, 1  ;;  %v2717_v50 = vrot.slane %v2716_v59, 1  ;;  %v1966_v45 = vadd.f32 %v1965_v60, %v1964_v33  ;;  %v2734_v47 = vadd.f32 %v2733_v61, %v2732_v12 }
 0x145   : > { %v1953_v24 = vrot.slane %v1952_v25, 2  ;;  %v2721_v37 = vrot.slane %v2720_v39, 2  ;;  %v6390_v38 = vpack.c.bf16 %v5213_v63, %v5211_v62  ;;  %v6391_v26 = vpack.c.bf16 %v5217_v1, %v5215_v0 }
 0x146   : > { %v3484_v54 = vmul.f32 0.125, %v1962_v23  ;;  %v1950_v55 = vadd.f32 %v1949_v49, %v1948_v58  ;;  %v2718_v51 = vadd.f32 %v2717_v50, %v2716_v59  ;;  %v6392_v57 = vpack.c.bf16 %v5221_v3, %v5219_v2  ;;  %v4567_v23 = vpop.f32.mrf.mxu0  ;;  %v4695_v49 = vpop.f32.mrf.mxu1 }
 0x147   : > { %4665 = vmatmul.mubr.bf16.gmra.mxu0 %v6390_v38  ;;  %4793 = vmatmul.mubr.bf16.gmra.mxu1 %v6391_v26  ;;  %v6393_v33 = vpack.c.bf16 %v5225_v5, %v5223_v4  ;;  %v495_v62 = vpack.c.bf16 %v5358_v13, %v5356_v41  ;;  %v1967_v63 = vrot.slane %v1966_v45, 1  ;;  %v2735_v0 = vrot.slane %v2734_v47, 1 }
 0x148   : > { %4668 = vmatprep.mubr.bf16.mxu0 %v6392_v57  ;;  %v1954_v1 = vadd.f32 %v1953_v24, %v1952_v25  ;;  %v2722_v12 = vadd.f32 %v2721_v37, %v2720_v39  ;;  %v3612_v32 = vmul.f32 0.125, %v2730_v17  ;;  %v3482_v31 = vmul.f32 0.125, %v1950_v55 }
 0x149   : > { %4796 = vmatprep.mubr.bf16.mxu1 %v6393_v33  ;;  %v691_v44 = vadd.f32 %v4566_v30, %v5240_v11  ;;  %v1203_v46 = vadd.f32 %v4694_v53, %v5240_v11  ;;  %v3610_v58 = vmul.f32 0.125, %v2718_v51  ;;  %v1968_v2 = vadd.f32 %v1967_v63, %v1966_v45 }
 0x14a   : > { %v1955_v3 = vrot.slane %v1954_v1, 1  ;;  %v2723_v59 = vrot.slane %v2722_v12, 1  ;;  %v683_v5 = vadd.f32 %v5240_v11, %v682_v52  ;;  %v1195_v61 = vadd.f32 %v5240_v11, %v1194_v56 }
 0x14b   : > { %v1695_v60 = vmax.f32 %v691_v44, 0.0  ;;  %v1823_v4 = vmax.f32 %v1203_v46, 0.0  ;;  %v3485_v25 = vmul.f32 0.125, %v1968_v2  ;;  %v2736_v39 = vadd.f32 %v2735_v0, %v2734_v47  ;;  %v685_v2 = vpop.f32.mrf.mxu0 }
 0x14c   : > { %v1956_v17 = vadd.f32 %v1955_v3, %v1954_v1  ;;  %v2724_v50 = vadd.f32 %v2723_v59, %v2722_v12  ;;  %v1693_v37 = vmax.f32 %v683_v5, 0.0  ;;  %v1821_v53 = vmax.f32 %v1195_v61, 0.0  ;;  %v1197_v3 = vpop.f32.mrf.mxu1 }
 0x14d   : > { %v1981_v24 = vrot.slane %v1695_v60, 4  ;;  %v2749_v30 = vrot.slane %v1823_v4, 4  ;;  %v694_v26 = vadd.f32 %v4567_v23, %v5240_v11  ;;  %v1206_v55 = vadd.f32 %v4695_v49, %v5240_v11 }
 0x14e   : > { %v3483_v38 = vmul.f32 0.125, %v1956_v17  ;;  %v3611_v45 = vmul.f32 0.125, %v2724_v50  ;;  %v6394_v51 = vpack.c.bf16 %v5229_v7, %v5227_v6  ;;  %v6395_v52 = vpack.c.bf16 %v5233_v9, %v5231_v8 }
 0x14f   : > { %v1982_v47 = vadd.f32 %v1981_v24, %v1695_v60  ;;  %v2750_v56 = vadd.f32 %v2749_v30, %v1823_v4  ;;  %v1969_v57 = vrot.slane %v1693_v37, 4  ;;  %v2737_v33 = vrot.slane %v1821_v53, 4  ;;  %v4570_v30 = vpop.f32.mrf.mxu0 }
 0x150   : > { %4669 = vmatmul.mubr.bf16.gmra.mxu0 %v6394_v51  ;;  %4797 = vmatmul.mubr.bf16.gmra.mxu1 %v6395_v52  ;;  %v6396_v63 = vpack.c.bf16 %v5242_v14, %v5235_v10  ;;  %v6397_v0 = vpack.c.bf16 %v5246_v16, %v5244_v15  ;;  %v3995_v1 = vsel %vm3994_vm0, %v3483_v38, %v3482_v31  ;;  %v1696_v7 = vmax.f32 %v694_v26, 0.0 }
 0x151   : > { %v4113_v6 = vsel %vm3994_vm0, %v3611_v45, %v3610_v58  ;;  %v1824_v12 = vmax.f32 %v1206_v55, 0.0  ;;  %v3613_v8 = vmul.f32 0.125, %v2736_v39  ;;  %v3997_v9 = vsel %vm3996_vm1, %v3484_v54, %v3995_v1 }
 0x152   : > { %4672 = vmatprep.mubr.bf16.mxu0 %v6396_v63  ;;  %4800 = vmatprep.mubr.bf16.mxu1 %v6397_v0  ;;  %v1983_v44 = vrot.slane %v1982_v47, 2  ;;  %v2751_v46 = vrot.slane %v2750_v56, 2  ;;  %v4114_v10 = vsel %vm3996_vm1, %v3612_v32, %v4113_v6  ;;  %v1970_v14 = vadd.f32 %v1969_v57, %v1693_v37  ;;  %v4698_v37 = vpop.f32.mrf.mxu1 }
 0x153   : > { %v3999_v59 = vsel %vm3998_vm2, %v3485_v25, %v3997_v9  ;;  %v2738_v15 = vadd.f32 %v2737_v33, %v1821_v53  ;;  %v1987_v31 = vrot.slane %v1696_v7, 4  ;;  %v2755_v58 = vrot.slane %v1824_v12, 4 }
 0x154   : > { %v1984_v16 = vadd.f32 %v1983_v44, %v1982_v47  ;;  %v2752_v60 = vadd.f32 %v2751_v46, %v2750_v56  ;;  %v1971_v4 = vrot.slane %v1970_v14, 2  ;;  %v686_v61 = vadd.f32 %v5240_v11, %v685_v2 }
 0x155   : > { %v2739_v5 = vrot.slane %v2738_v15, 2  ;;  %v1198_v54 = vadd.f32 %v5240_v11, %v1197_v3  ;;  %v1988_v39 = vadd.f32 %v1987_v31, %v1696_v7  ;;  %v2756_v17 = vadd.f32 %v2755_v58, %v1824_v12  ;;  %v698_v12 = vpop.f32.mrf.mxu0 }
 0x156   : > { %v1985_v23 = vrot.slane %v1984_v16, 1  ;;  %v2753_v49 = vrot.slane %v2752_v60, 1  ;;  %v1972_v32 = vadd.f32 %v1971_v4, %v1970_v14  ;;  %v1694_v24 = vmax.f32 %v686_v61, 0.0 }
 0x157   : > { %v2740_v50 = vadd.f32 %v2739_v5, %v2738_v15  ;;  %v1822_v25 = vmax.f32 %v1198_v54, 0.0  ;;  %v6398_v53 = vpack.c.bf16 %v5254_v20, %v5252_v19  ;;  %v6399_v38 = vpack.c.bf16 %v5258_v22, %v5256_v21  ;;  %v4571_v4 = vpop.f32.mrf.mxu0 }
 0x158   : > { %v1986_v45 = vadd.f32 %v1985_v23, %v1984_v16  ;;  %v4115_v26 = vsel %vm3998_vm2, %v3613_v8, %v4114_v10  ;;  %v1989_v55 = vrot.slane %v1988_v39, 2  ;;  %v2757_v51 = vrot.slane %v2756_v17, 2 }
 0x159   : > { %4673 = vmatmul.mubr.bf16.gmra.mxu0 %v6398_v53  ;;  %4801 = vmatmul.mubr.bf16.gmra.mxu1 %v6399_v38  ;;  %v6400_v52 = vpack.c.bf16 %v5270_v28, %v5268_v27  ;;  %v6401_v47 = vpack.c.bf16 %v5282_v34, %v5272_v29  ;;  %v1973_v56 = vrot.slane %v1972_v32, 1  ;;  %v2741_v19 = vrot.slane %v2740_v50, 1  ;;  %v1210_v27 = vpop.f32.mrf.mxu1 }
 0x15a   : > { %v1975_v20 = vrot.slane %v1694_v24, 4  ;;  %v2743_v57 = vrot.slane %v1822_v25, 4  ;;  %v5412_v33 = vmul.f32 0.125, %v1986_v45  ;;  %v2754_v21 = vadd.f32 %v2753_v49, %v2752_v60 }
 0x15b   : > { %4676 = vmatprep.mubr.bf16.mxu0 %v6400_v52  ;;  %4804 = vmatprep.mubr.bf16.mxu1 %v6401_v47  ;;  %v1990_v22 = vadd.f32 %v1989_v55, %v1988_v39  ;;  %v2758_v63 = vadd.f32 %v2757_v51, %v2756_v17  ;;  %v1974_v0 = vadd.f32 %v1973_v56, %v1972_v32  ;;  %v4699_v5 = vpop.f32.mrf.mxu1 }
 0x15c   : > { %v2742_v1 = vadd.f32 %v2741_v19, %v2740_v50  ;;  %v1976_v6 = vadd.f32 %v1975_v20, %v1694_v24  ;;  %v2744_v7 = vadd.f32 %v2743_v57, %v1822_v25  ;;  %v707_v29 = vadd.f32 %v4570_v30, %v5240_v11  ;;  %v6407_v30 = vld [vmem:[#allocation19_spill] sm:$0xff] }
 0x15d   : > { %v1991_v28 = vrot.slane %v1990_v22, 1  ;;  %v2759_v8 = vrot.slane %v2758_v63, 1  ;;  %v1219_v34 = vadd.f32 %v4698_v37, %v5240_v11  ;;  %v3486_v9 = vmul.f32 0.125, %v1974_v0 }
 0x15e   : > { %v3614_v44 = vmul.f32 0.125, %v2742_v1  ;;  %v1977_v46 = vrot.slane %v1976_v6, 2  ;;  %v2745_v2 = vrot.slane %v2744_v7, 2  ;;  %v3616_v3 = vmul.f32 0.125, %v2754_v21 }
 0x15f   : > { %v1992_v10 = vadd.f32 %v1991_v28, %v1990_v22  ;;  %v1699_v14 = vmax.f32 %v707_v29, 0.0  ;;  %v1827_v15 = vmax.f32 %v1219_v34, 0.0  ;;  %v4001_v16 = vsel %vm4000_vm3, %v3486_v9, %v3999_v59  ;;  %v6404_v59 = vld [vmem:[#allocation18_spill] sm:$0xff]  ;;  %v701_v28 = vpop.f32.mrf.mxu0 }
 0x160   : > { %v2760_v60 = vadd.f32 %v2759_v8, %v2758_v63  ;;  %v1978_v31 = vadd.f32 %v1977_v46, %v1976_v6  ;;  %v2746_v58 = vadd.f32 %v2745_v2, %v2744_v7  ;;  %v6402_v61 = vpack.c.bf16 %v5286_v36, %v5284_v35  ;;  %v6406_v36 = vld [vmem:[#allocation20_spill] sm:$0xff]  ;;  %v1213_v8 = vpop.f32.mrf.mxu1  ;;  %v6410_v46 = vld [vmem:[#allocation22_spill] sm:$0xff]  ;;  %v6411_v2 = vld [vmem:[#allocation21_spill] sm:$0xff] }
 0x161   : > { %v4116_v54 = vsel %vm4000_vm3, %v3614_v44, %v4115_v26  ;;  %v3489_v23 = vmul.f32 0.125, %v1992_v10  ;;  %v2005_v49 = vrot.slane %v1699_v14, 4  ;;  %v2773_v39 = vrot.slane %v1827_v15, 4 }
 0x162   : > { %4677 = vmatmul.mubr.bf16.gmra.mxu0 %v6402_v61  ;;  %v6403_v17 = vpack.c.bf16 %v5296_v43, %v5294_v42  ;;  %v6405_v32 = vpack.c.bf16 %v5304_v48, %v6404_v59  ;;  %v1979_v50 = vrot.slane %v1978_v31, 1  ;;  %v2747_v24 = vrot.slane %v2746_v58, 1 }
 0x163   : > { %v699_v25 = vadd.f32 %v5240_v11, %v698_v12  ;;  %v1211_v35 = vadd.f32 %v5240_v11, %v1210_v27  ;;  %v6408_v37 = vpack.c.bf16 %v6406_v36, %v6407_v30  ;;  %v2006_v53 = vadd.f32 %v2005_v49, %v1699_v14 }
 0x164   : > { %4805 = vmatmul.mubr.bf16.gmra.mxu1 %v6403_v17  ;;  %4680 = vmatprep.mubr.bf16.mxu0 %v6405_v32  ;;  %v2774_v38 = vadd.f32 %v2773_v39, %v1827_v15  ;;  %v710_v45 = vadd.f32 %v4571_v4, %v5240_v11  ;;  %v1222_v42 = vadd.f32 %v4699_v5, %v5240_v11  ;;  %v3617_v22 = vmul.f32 0.125, %v2760_v60  ;;  %v4574_v4 = vpop.f32.mrf.mxu0  ;;  %v4702_v5 = vpop.f32.mrf.mxu1 }
 0x165   : > { %4808 = vmatprep.mubr.bf16.mxu1 %v6408_v37  ;;  %v1980_v43 = vadd.f32 %v1979_v50, %v1978_v31  ;;  %v2748_v26 = vadd.f32 %v2747_v24, %v2746_v58  ;;  %v1697_v48 = vmax.f32 %v699_v25, 0.0  ;;  %v1825_v55 = vmax.f32 %v1211_v35, 0.0 }
 0x166   : > { %v2007_v51 = vrot.slane %v2006_v53, 2  ;;  %v2775_v52 = vrot.slane %v2774_v38, 2  ;;  %v1700_v47 = vmax.f32 %v710_v45, 0.0  ;;  %v1828_v56 = vmax.f32 %v1222_v42, 0.0  ;;  %v714_v30 = vpop.f32.mrf.mxu0  ;;  %v1226_v37 = vpop.f32.mrf.mxu1 }
 0x167   : > { %v3487_v19 = vmul.f32 0.125, %v1980_v43  ;;  %v3615_v20 = vmul.f32 0.125, %v2748_v26  ;;  %v1993_v57 = vrot.slane %v1697_v48, 4  ;;  %v2761_v21 = vrot.slane %v1825_v55, 4 }
 0x168   : > { %v2008_v63 = vadd.f32 %v2007_v51, %v2006_v53  ;;  %v2011_v0 = vrot.slane %v1700_v47, 4  ;;  %v2779_v1 = vrot.slane %v1828_v56, 4  ;;  %v6409_v29 = vpack.c.bf16 %v5322_v40, %v5318_v18 }
 0x169   : > { %v4003_v6 = vsel %vm4002_vm4, %v3487_v19, %v4001_v16  ;;  %v4117_v7 = vsel %vm4002_vm4, %v3615_v20, %v4116_v54  ;;  %v1994_v12 = vadd.f32 %v1993_v57, %v1697_v48  ;;  %v2762_v27 = vadd.f32 %v2761_v21, %v1825_v55 }
 0x16a   : > { %4681 = vmatmul.mubr.bf16.gmra.mxu0 %v6409_v29  ;;  %v4005_v34 = vsel %vm4004_vm5, %v5412_v33, %v4003_v6  ;;  %v4118_v9 = vsel %vm4004_vm5, %v3616_v3, %v4117_v7  ;;  %v2776_v44 = vadd.f32 %v2775_v52, %v2774_v38  ;;  %v6412_v10 = vpack.c.bf16 %v6410_v46, %v6411_v2 }
 0x16b   : > { %4684 = vmatprep.mubr.bf16.mxu0 %v495_v62  ;;  %v4007_v14 = vsel %vm4006_vm6, %v3489_v23, %v4005_v34  ;;  %v4119_v15 = vsel %vm4006_vm6, %v3617_v22, %v4118_v9  ;;  %v1995_v40 = vrot.slane %v1994_v12, 2  ;;  %v2763_v18 = vrot.slane %v2762_v27, 2  ;;  %v4575_v22 = vpop.f32.mrf.mxu0 }
 0x16c   : > { %4809 = vmatmul.mubr.bf16.gmra.mxu1 %v6412_v10  ;;  %4257 = vst [vmem:[%s5164_s14] sm:$0xff] %v4007_v14  ;;  %4273 = vst [vmem:[%s5164_s14 + $0x80] sm:$0xff] %v4119_v15  ;;  %v2012_v33 = vadd.f32 %v2011_v0, %v1700_v47  ;;  %v2780_v16 = vadd.f32 %v2779_v1, %v1828_v56  ;;  %v702_v31 = vadd.f32 %v5240_v11, %v701_v28  ;;  %v4703_v0 = vpop.f32.mrf.mxu1 }
 0x16d   : > { %v1996_v3 = vadd.f32 %v1995_v40, %v1994_v12  ;;  %v2764_v60 = vadd.f32 %v2763_v18, %v2762_v27  ;;  %v1214_v58 = vadd.f32 %v5240_v11, %v1213_v8  ;;  %v2009_v41 = vrot.slane %v2008_v63, 1 }
 0x16e   : > { %v2777_v13 = vrot.slane %v2776_v44, 1  ;;  %v2013_v62 = vrot.slane %v2012_v33, 2  ;;  %v2781_v61 = vrot.slane %v2780_v16, 2  ;;  %v1698_v49 = vmax.f32 %v702_v31, 0.0 }
 0x16f   : > { %v1997_v54 = vrot.slane %v1996_v3, 1  ;;  %v2765_v23 = vrot.slane %v2764_v60, 1  ;;  %v1826_v39 = vmax.f32 %v1214_v58, 0.0  ;;  %v723_v32 = vadd.f32 %v4574_v4, %v5240_v11 }
 0x170   : > { %v2014_v17 = vadd.f32 %v2013_v62, %v2012_v33  ;;  %v2782_v59 = vadd.f32 %v2781_v61, %v2780_v16  ;;  %v1235_v50 = vadd.f32 %v4702_v5, %v5240_v11  ;;  %v1999_v35 = vrot.slane %v1698_v49, 4  ;;  %v1229_v62 = vpop.f32.mrf.mxu1 }
 0x171   : > { %v1998_v24 = vadd.f32 %v1997_v54, %v1996_v3  ;;  %v2766_v25 = vadd.f32 %v2765_v23, %v2764_v60  ;;  %v2767_v36 = vrot.slane %v1826_v39, 4  ;;  %v1703_v45 = vmax.f32 %v723_v32, 0.0 }
 0x172   : > { %v2015_v53 = vrot.slane %v2014_v17, 1  ;;  %v2783_v38 = vrot.slane %v2782_v59, 1  ;;  %v1831_v42 = vmax.f32 %v1235_v50, 0.0  ;;  %v2010_v43 = vadd.f32 %v2009_v41, %v2008_v63 }
 0x173   : > { %v2778_v26 = vadd.f32 %v2777_v13, %v2776_v44  ;;  %v2000_v48 = vadd.f32 %v1999_v35, %v1698_v49  ;;  %v2768_v55 = vadd.f32 %v2767_v36, %v1826_v39  ;;  %v3490_v51 = vmul.f32 0.125, %v1998_v24  ;;  %v717_v13 = vpop.f32.mrf.mxu0 }
 0x174   : > { %v3618_v52 = vmul.f32 0.125, %v2766_v25  ;;  %v2029_v47 = vrot.slane %v1703_v45, 4  ;;  %v2797_v56 = vrot.slane %v1831_v42, 4  ;;  %v715_v57 = vadd.f32 %v5240_v11, %v714_v30 }
 0x175   : > { %v2001_v19 = vrot.slane %v2000_v48, 2  ;;  %v2769_v20 = vrot.slane %v2768_v55, 2  ;;  %v1227_v21 = vadd.f32 %v5240_v11, %v1226_v37  ;;  %v2016_v1 = vadd.f32 %v2015_v53, %v2014_v17 }
 0x176   : > { %v2784_v6 = vadd.f32 %v2783_v38, %v2782_v59  ;;  %v2030_v7 = vadd.f32 %v2029_v47, %v1703_v45  ;;  %v2798_v12 = vadd.f32 %v2797_v56, %v1831_v42  ;;  %v1701_v28 = vmax.f32 %v715_v57, 0.0  ;;  %v4578_v38 = vpop.f32.mrf.mxu0  ;;  %v4706_v45 = vpop.f32.mrf.mxu1 }
 0x177   : > { %v2002_v63 = vadd.f32 %v2001_v19, %v2000_v48  ;;  %v2770_v27 = vadd.f32 %v2769_v20, %v2768_v55  ;;  %v1829_v8 = vmax.f32 %v1227_v21, 0.0  ;;  %v726_v9 = vadd.f32 %v4575_v22, %v5240_v11 }
 0x178   : > { %v2031_v29 = vrot.slane %v2030_v7, 2  ;;  %v2799_v34 = vrot.slane %v2798_v12, 2  ;;  %v1238_v44 = vadd.f32 %v4703_v0, %v5240_v11  ;;  %v2017_v10 = vrot.slane %v1701_v28, 4 }
 0x179   : > { %v2003_v46 = vrot.slane %v2002_v63, 1  ;;  %v2771_v2 = vrot.slane %v2770_v27, 1  ;;  %v2785_v14 = vrot.slane %v1829_v8, 4  ;;  %v1704_v18 = vmax.f32 %v726_v9, 0.0 }
 0x17a   : > { %v2032_v15 = vadd.f32 %v2031_v29, %v2030_v7  ;;  %v2800_v40 = vadd.f32 %v2799_v34, %v2798_v12  ;;  %v1832_v33 = vmax.f32 %v1238_v44, 0.0  ;;  %v2018_v60 = vadd.f32 %v2017_v10, %v1701_v28  ;;  %v1242_v28 = vpop.f32.mrf.mxu1 }
 0x17b   : > { %v2004_v16 = vadd.f32 %v2003_v46, %v2002_v63  ;;  %v2772_v3 = vadd.f32 %v2771_v2, %v2770_v27  ;;  %v2786_v31 = vadd.f32 %v2785_v14, %v1829_v8  ;;  %v2035_v5 = vrot.slane %v1704_v18, 4  ;;  %v730_v27 = vpop.f32.mrf.mxu0 }
 0x17c   : > { %v2033_v58 = vrot.slane %v2032_v15, 1  ;;  %v2801_v4 = vrot.slane %v2800_v40, 1  ;;  %v2803_v41 = vrot.slane %v1832_v33, 4  ;;  %v2019_v23 = vrot.slane %v2018_v60, 2 }
 0x17d   : > { %v3491_v61 = vmul.f32 0.125, %v2004_v16  ;;  %v3619_v54 = vmul.f32 0.125, %v2772_v3  ;;  %v2787_v49 = vrot.slane %v2786_v31, 2  ;;  %v3492_v39 = vmul.f32 0.125, %v2010_v43 }
 0x17e   : > { %v3620_v17 = vmul.f32 0.125, %v2778_v26  ;;  %v2036_v59 = vadd.f32 %v2035_v5, %v1704_v18  ;;  %v2804_v32 = vadd.f32 %v2803_v41, %v1832_v33  ;;  %v2020_v25 = vadd.f32 %v2019_v23, %v2018_v60 }
 0x17f   : > { %v4008_v50 = vsel %vm3994_vm0, %v3491_v61, %v3490_v51  ;;  %v4120_v24 = vsel %vm3994_vm0, %v3619_v54, %v3618_v52  ;;  %v2788_v35 = vadd.f32 %v2787_v49, %v2786_v31  ;;  %v3493_v36 = vmul.f32 0.125, %v2016_v1  ;;  %v4579_v31 = vpop.f32.mrf.mxu0 }
 0x180   : > { %v3621_v30 = vmul.f32 0.125, %v2784_v6  ;;  %v2034_v37 = vadd.f32 %v2033_v58, %v2032_v15  ;;  %v2802_v53 = vadd.f32 %v2801_v4, %v2800_v40  ;;  %v4009_v42 = vsel %vm3996_vm1, %v3492_v39, %v4008_v50  ;;  %v4707_v58 = vpop.f32.mrf.mxu1 }
 0x181   : > { %v4121_v48 = vsel %vm3996_vm1, %v3620_v17, %v4120_v24  ;;  %v2021_v43 = vrot.slane %v2020_v25, 1  ;;  %v2789_v26 = vrot.slane %v2788_v35, 1  ;;  %v2037_v55 = vrot.slane %v2036_v59, 2 }
 0x182   : > { %v2805_v47 = vrot.slane %v2804_v32, 2  ;;  %v718_v51 = vadd.f32 %v5240_v11, %v717_v13  ;;  %v1230_v52 = vadd.f32 %v5240_v11, %v1229_v62  ;;  %v739_v20 = vadd.f32 %v4578_v38, %v5240_v11 }
 0x183   : > { %v2022_v56 = vadd.f32 %v2021_v43, %v2020_v25  ;;  %v2790_v19 = vadd.f32 %v2789_v26, %v2788_v35  ;;  %v1251_v57 = vadd.f32 %v4706_v45, %v5240_v11  ;;  %v2038_v21 = vadd.f32 %v2037_v55, %v2036_v59  ;;  %v1245_v43 = vpop.f32.mrf.mxu1 }
 0x184   : > { %v2806_v22 = vadd.f32 %v2805_v47, %v2804_v32  ;;  %v1702_v0 = vmax.f32 %v718_v51, 0.0  ;;  %v1830_v1 = vmax.f32 %v1230_v52, 0.0  ;;  %v5468_v6 = vmul.f32 0.125, %v2034_v37 }
 0x185   : > { %v5470_v7 = vmul.f32 0.125, %v2802_v53  ;;  %v1707_v12 = vmax.f32 %v739_v20, 0.0  ;;  %v1835_v63 = vmax.f32 %v1251_v57, 0.0  ;;  %v3494_v8 = vmul.f32 0.125, %v2022_v56 }
 0x186   : > { %v3622_v29 = vmul.f32 0.125, %v2790_v19  ;;  %v2023_v34 = vrot.slane %v1702_v0, 4  ;;  %v2791_v9 = vrot.slane %v1830_v1, 4  ;;  %v4010_v44 = vsel %vm3998_vm2, %v3493_v36, %v4009_v42 }
 0x187   : > { %v4122_v46 = vsel %vm3998_vm2, %v3621_v30, %v4121_v48  ;;  %v2053_v2 = vrot.slane %v1707_v12, 4  ;;  %v2821_v10 = vrot.slane %v1835_v63, 4  ;;  %v2039_v14 = vrot.slane %v2038_v21, 1  ;;  %v733_v48 = vpop.f32.mrf.mxu0 }
 0x188   : > { %v2807_v15 = vrot.slane %v2806_v22, 1  ;;  %v2024_v40 = vadd.f32 %v2023_v34, %v1702_v0  ;;  %v2792_v18 = vadd.f32 %v2791_v9, %v1830_v1  ;;  %v731_v3 = vadd.f32 %v5240_v11, %v730_v27 }
 0x189   : > { %v2054_v33 = vadd.f32 %v2053_v2, %v1707_v12  ;;  %v2822_v16 = vadd.f32 %v2821_v10, %v1835_v63  ;;  %v1243_v60 = vadd.f32 %v5240_v11, %v1242_v28  ;;  %v4011_v4 = vsel %vm4000_vm3, %v3494_v8, %v4010_v44  ;;  %v4582_v28 = vpop.f32.mrf.mxu0  ;;  %v4710_v8 = vpop.f32.mrf.mxu1 }
 0x18a   : > { %v4123_v5 = vsel %vm4000_vm3, %v3622_v29, %v4122_v46  ;;  %v2025_v41 = vrot.slane %v2024_v40, 2  ;;  %v2793_v13 = vrot.slane %v2792_v18, 2  ;;  %v1705_v54 = vmax.f32 %v731_v3, 0.0 }
 0x18b   : > { %v2055_v62 = vrot.slane %v2054_v33, 2  ;;  %v2823_v61 = vrot.slane %v2822_v16, 2  ;;  %v1833_v23 = vmax.f32 %v1243_v60, 0.0  ;;  %v742_v17 = vadd.f32 %v4579_v31, %v5240_v11  ;;  %v746_v60 = vpop.f32.mrf.mxu0  ;;  %v1258_v31 = vpop.f32.mrf.mxu1 }
 0x18c   : > { %v2026_v49 = vadd.f32 %v2025_v41, %v2024_v40  ;;  %v2794_v39 = vadd.f32 %v2793_v13, %v2792_v18  ;;  %v1254_v59 = vadd.f32 %v4707_v58, %v5240_v11  ;;  %v2040_v32 = vadd.f32 %v2039_v14, %v2038_v21 }
 0x18d   : > { %v2808_v50 = vadd.f32 %v2807_v15, %v2806_v22  ;;  %v2041_v24 = vrot.slane %v1705_v54, 4  ;;  %v2809_v25 = vrot.slane %v1833_v23, 4  ;;  %v1708_v30 = vmax.f32 %v742_v17, 0.0 }
 0x18e   : > { %v2027_v35 = vrot.slane %v2026_v49, 1  ;;  %v2795_v36 = vrot.slane %v2794_v39, 1  ;;  %v1836_v37 = vmax.f32 %v1254_v59, 0.0  ;;  %v2056_v53 = vadd.f32 %v2055_v62, %v2054_v33 }
 0x18f   : > { %v2824_v38 = vadd.f32 %v2823_v61, %v2822_v16  ;;  %v2042_v45 = vadd.f32 %v2041_v24, %v1705_v54  ;;  %v2810_v42 = vadd.f32 %v2809_v25, %v1833_v23  ;;  %v2059_v47 = vrot.slane %v1708_v30, 4  ;;  %v4711_v24 = vpop.f32.mrf.mxu1 }
 0x190   : > { %v2028_v26 = vadd.f32 %v2027_v35, %v2026_v49  ;;  %v2796_v55 = vadd.f32 %v2795_v36, %v2794_v39  ;;  %v2827_v51 = vrot.slane %v1836_v37, 4  ;;  %v3497_v52 = vmul.f32 0.125, %v2040_v32 }
 0x191   : > { %v3625_v56 = vmul.f32 0.125, %v2808_v50  ;;  %v2043_v19 = vrot.slane %v2042_v45, 2  ;;  %v2811_v20 = vrot.slane %v2810_v42, 2  ;;  %v2060_v22 = vadd.f32 %v2059_v47, %v1708_v30  ;;  %v4583_v50 = vpop.f32.mrf.mxu0 }
 0x192   : > { %v3495_v57 = vmul.f32 0.125, %v2028_v26  ;;  %v3623_v21 = vmul.f32 0.125, %v2796_v55  ;;  %v2828_v0 = vadd.f32 %v2827_v51, %v1836_v37  ;;  %v2057_v1 = vrot.slane %v2056_v53, 1 }
 0x193   : > { %v2825_v12 = vrot.slane %v2824_v38, 1  ;;  %v2044_v63 = vadd.f32 %v2043_v19, %v2042_v45  ;;  %v2812_v27 = vadd.f32 %v2811_v20, %v2810_v42  ;;  %v2061_v9 = vrot.slane %v2060_v22, 2 }
 0x194   : > { %v4012_v29 = vsel %vm4002_vm4, %v3495_v57, %v4011_v4  ;;  %v4124_v34 = vsel %vm4002_vm4, %v3623_v21, %v4123_v5  ;;  %v2829_v44 = vrot.slane %v2828_v0, 2  ;;  %v734_v16 = vadd.f32 %v5240_v11, %v733_v48 }
 0x195   : > { %v4013_v46 = vsel %vm4004_vm5, %v5468_v6, %v4012_v29  ;;  %v4125_v2 = vsel %vm4004_vm5, %v5470_v7, %v4124_v34  ;;  %v2045_v10 = vrot.slane %v2044_v63, 1  ;;  %v2813_v14 = vrot.slane %v2812_v27, 1 }
 0x196   : > { %v4014_v15 = vsel %vm4006_vm6, %v3497_v52, %v4013_v46  ;;  %v4126_v40 = vsel %vm4006_vm6, %v3625_v56, %v4125_v2  ;;  %v2062_v18 = vadd.f32 %v2061_v9, %v2060_v22  ;;  %v2830_v33 = vadd.f32 %v2829_v44, %v2828_v0 }
 0x197   : > { %4258 = vst [vmem:[%s5164_s14 + $0x8] sm:$0xff] %v4014_v15  ;;  %4274 = vst [vmem:[%s5164_s14 + $0x88] sm:$0xff] %v4126_v40  ;;  %v1246_v3 = vadd.f32 %v5240_v11, %v1245_v43  ;;  %v2046_v6 = vadd.f32 %v2045_v10, %v2044_v63  ;;  %v2814_v58 = vadd.f32 %v2813_v14, %v2812_v27  ;;  %v1706_v13 = vmax.f32 %v734_v16, 0.0  ;;  %v5503_v43 = vld [vmem:[%s6371_s3] ss:$0 sm:$0xff]  ;;  %v1261_v63 = vpop.f32.mrf.mxu1 }
 0x198   : > { %v755_v7 = vadd.f32 %v4582_v28, %v5240_v11  ;;  %v1267_v4 = vadd.f32 %v4710_v8, %v5240_v11  ;;  %v5494_v5 = vadd.f32 %v2057_v1, %v2056_v53  ;;  %v5496_v41 = vadd.f32 %v2825_v12, %v2824_v38  ;;  %v749_v12 = vpop.f32.mrf.mxu0 }
 0x199   : > { %v1834_v62 = vmax.f32 %v1246_v3, 0.0  ;;  %v2063_v61 = vrot.slane %v2062_v18, 1  ;;  %v2831_v54 = vrot.slane %v2830_v33, 1  ;;  %v2047_v39 = vrot.slane %v1706_v13, 4 }
 0x19a   : > { %v1711_v23 = vmax.f32 %v755_v7, 0.0  ;;  %v1839_v49 = vmax.f32 %v1267_v4, 0.0  ;;  %v747_v59 = vadd.f32 %v5240_v11, %v746_v60  ;;  %v1259_v32 = vadd.f32 %v5240_v11, %v1258_v31  ;;  %v4586_v31 = vpop.f32.mrf.mxu0 }
 0x19b   : > { %v2815_v17 = vrot.slane %v1834_v62, 4  ;;  %v3498_v25 = vmul.f32 0.125, %v2046_v6  ;;  %v3626_v35 = vmul.f32 0.125, %v2814_v58  ;;  %v2048_v37 = vadd.f32 %v2047_v39, %v1706_v13  ;;  %v4714_v6 = vpop.f32.mrf.mxu1 }
 0x19c   : > { %v2077_v36 = vrot.slane %v1711_v23, 4  ;;  %v2845_v30 = vrot.slane %v1839_v49, 4  ;;  %v1709_v38 = vmax.f32 %v747_v59, 0.0  ;;  %v1837_v45 = vmax.f32 %v1259_v32, 0.0 }
 0x19d   : > { %v2816_v53 = vadd.f32 %v2815_v17, %v1834_v62  ;;  %v758_v26 = vadd.f32 %v5503_v43, %v4583_v50  ;;  %v1270_v11 = vadd.f32 %v5503_v43, %v4711_v24  ;;  %v2049_v55 = vrot.slane %v2048_v37, 2  ;;  %v762_v50 = vpop.f32.mrf.mxu0  ;;  %v1274_v24 = vpop.f32.mrf.mxu1 }
 0x19e   : > { %v2078_v42 = vadd.f32 %v2077_v36, %v1711_v23  ;;  %v2846_v48 = vadd.f32 %v2845_v30, %v1839_v49  ;;  %v2065_v51 = vrot.slane %v1709_v38, 4  ;;  %v2833_v52 = vrot.slane %v1837_v45, 4 }
 0x19f   : > { %v2817_v47 = vrot.slane %v2816_v53, 2  ;;  %v1712_v20 = vmax.f32 %v758_v26, 0.0  ;;  %v1840_v57 = vmax.f32 %v1270_v11, 0.0  ;;  %v2050_v21 = vadd.f32 %v2049_v55, %v2048_v37 }
 0x1a0   : > { %v2079_v56 = vrot.slane %v2078_v42, 2  ;;  %v2847_v19 = vrot.slane %v2846_v48, 2  ;;  %v2066_v0 = vadd.f32 %v2065_v51, %v1709_v38  ;;  %v2834_v1 = vadd.f32 %v2833_v52, %v1837_v45  ;;  %v4715_v51 = vpop.f32.mrf.mxu1 }
 0x1a1   : > { %v2818_v22 = vadd.f32 %v2817_v47, %v2816_v53  ;;  %v2083_v8 = vrot.slane %v1712_v20, 4  ;;  %v2851_v29 = vrot.slane %v1840_v57, 4  ;;  %v2051_v34 = vrot.slane %v2050_v21, 1  ;;  %v4587_v47 = vpop.f32.mrf.mxu0 }
 0x1a2   : > { %v2080_v27 = vadd.f32 %v2079_v56, %v2078_v42  ;;  %v2848_v28 = vadd.f32 %v2847_v19, %v2846_v48  ;;  %v2067_v44 = vrot.slane %v2066_v0, 2  ;;  %v2835_v46 = vrot.slane %v2834_v1, 2 }
 0x1a3   : > { %v2819_v9 = vrot.slane %v2818_v22, 1  ;;  %v2064_v2 = vadd.f32 %v2063_v61, %v2062_v18  ;;  %v2832_v10 = vadd.f32 %v2831_v54, %v2830_v33  ;;  %v2084_v14 = vadd.f32 %v2083_v8, %v1712_v20 }
 0x1a4   : > { %v2852_v15 = vadd.f32 %v2851_v29, %v1840_v57  ;;  %v2052_v40 = vadd.f32 %v2051_v34, %v2050_v21  ;;  %v2068_v3 = vadd.f32 %v2067_v44, %v2066_v0  ;;  %v2836_v60 = vadd.f32 %v2835_v46, %v2834_v1 }
 0x1a5   : > { %v2820_v16 = vadd.f32 %v2819_v9, %v2818_v22  ;;  %v2081_v58 = vrot.slane %v2080_v27, 1  ;;  %v2849_v7 = vrot.slane %v2848_v28, 1  ;;  %v2085_v4 = vrot.slane %v2084_v14, 2 }
 0x1a6   : > { %v2853_v13 = vrot.slane %v2852_v15, 2  ;;  %v3499_v62 = vmul.f32 0.125, %v2052_v40  ;;  %v2069_v49 = vrot.slane %v2068_v3, 1  ;;  %v2837_v39 = vrot.slane %v2836_v60, 1 }
 0x1a7   : > { %v3627_v23 = vmul.f32 0.125, %v2820_v16  ;;  %v3500_v17 = vmul.f32 0.125, %v5494_v5  ;;  %v5508_v18 = vadd.f32 %v2085_v4, %v2084_v14  ;;  %v3628_v61 = vmul.f32 0.125, %v5496_v41 }
 0x1a8   : > { %v5510_v33 = vadd.f32 %v2853_v13, %v2852_v15  ;;  %v4015_v54 = vsel %vm3994_vm0, %v3499_v62, %v3498_v25  ;;  %v2070_v32 = vadd.f32 %v2069_v49, %v2068_v3  ;;  %v3501_v36 = vmul.f32 0.125, %v2064_v2  ;;  %v765_v13 = vpop.f32.mrf.mxu0  ;;  %v1277_v62 = vpop.f32.mrf.mxu1 }
 0x1a9   : > { %v4127_v59 = vsel %vm3994_vm0, %v3627_v23, %v3626_v35  ;;  %v4016_v30 = vsel %vm3996_vm1, %v3500_v17, %v4015_v54  ;;  %v2838_v37 = vadd.f32 %v2837_v39, %v2836_v60  ;;  %v3629_v53 = vmul.f32 0.125, %v2832_v10 }
 0x1aa   : > { %v4128_v5 = vsel %vm3996_vm1, %v3628_v61, %v4127_v59  ;;  %v5517_v38 = vadd.f32 %v2081_v58, %v2080_v27  ;;  %v5519_v45 = vadd.f32 %v2849_v7, %v2848_v28  ;;  %v2087_v41 = vrot.slane %v5508_v18, 1 }
 0x1ab   : > { %v2855_v25 = vrot.slane %v5510_v33, 1  ;;  %v750_v35 = vadd.f32 %v5503_v43, %v749_v12  ;;  %v1262_v42 = vadd.f32 %v5503_v43, %v1261_v63  ;;  %v5525_v48 = vmul.f32 0.125, %v2070_v32 }
 0x1ac   : > { %v5528_v26 = vsel %vm3998_vm2, %v3501_v36, %v4016_v30  ;;  %v771_v11 = vadd.f32 %v5503_v43, %v4586_v31  ;;  %v1283_v55 = vadd.f32 %v5503_v43, %v4714_v6  ;;  %v5532_v52 = vmul.f32 0.125, %v2838_v37 }
 0x1ad   : > { %v5535_v56 = vsel %vm3998_vm2, %v3629_v53, %v4128_v5  ;;  %v1710_v19 = vmax.f32 %v750_v35, 0.0  ;;  %v1838_v20 = vmax.f32 %v1262_v42, 0.0  ;;  %v763_v22 = vadd.f32 %v5503_v43, %v762_v50  ;;  %v4590_v42 = vpop.f32.mrf.mxu0 }
 0x1ae   : > { %v1715_v57 = vmax.f32 %v771_v11, 0.0  ;;  %v1843_v21 = vmax.f32 %v1283_v55, 0.0  ;;  %v1275_v0 = vadd.f32 %v5503_v43, %v1274_v24  ;;  %v774_v63 = vadd.f32 %v5503_v43, %v4587_v47  ;;  %v4718_v11 = vpop.f32.mrf.mxu1 }
 0x1af   : > { %v2071_v1 = vrot.slane %v1710_v19, 4  ;;  %v2839_v12 = vrot.slane %v1838_v20, 4  ;;  %v1286_v27 = vadd.f32 %v5503_v43, %v4715_v51  ;;  %v1713_v29 = vmax.f32 %v763_v22, 0.0 }
 0x1b0   : > { %v2101_v28 = vrot.slane %v1715_v57, 4  ;;  %v2869_v8 = vrot.slane %v1843_v21, 4  ;;  %v1841_v34 = vmax.f32 %v1275_v0, 0.0  ;;  %v1716_v46 = vmax.f32 %v774_v63, 0.0  ;;  %v778_v63 = vpop.f32.mrf.mxu0 }
 0x1b1   : > { %v2072_v9 = vadd.f32 %v2071_v1, %v1710_v19  ;;  %v2840_v44 = vadd.f32 %v2839_v12, %v1838_v20  ;;  %v1844_v2 = vmax.f32 %v1286_v27, 0.0  ;;  %v2089_v15 = vrot.slane %v1713_v29, 4 }
 0x1b2   : > { %v2102_v10 = vadd.f32 %v2101_v28, %v1715_v57  ;;  %v2870_v14 = vadd.f32 %v2869_v8, %v1843_v21  ;;  %v2857_v40 = vrot.slane %v1841_v34, 4  ;;  %v2107_v60 = vrot.slane %v1716_v46, 4 }
 0x1b3   : > { %v2073_v16 = vrot.slane %v2072_v9, 2  ;;  %v2841_v3 = vrot.slane %v2840_v44, 2  ;;  %v2875_v31 = vrot.slane %v1844_v2, 4  ;;  %v2090_v7 = vadd.f32 %v2089_v15, %v1713_v29 }
 0x1b4   : > { %v2103_v6 = vrot.slane %v2102_v10, 2  ;;  %v2871_v58 = vrot.slane %v2870_v14, 2  ;;  %v2858_v4 = vadd.f32 %v2857_v40, %v1841_v34  ;;  %v2108_v39 = vadd.f32 %v2107_v60, %v1716_v46  ;;  %v429_v34 = vld [vmem:[#allocation2 + $0x7e0] sm:$0xff]  ;;  %v304_v46 = vld [vmem:[#allocation2 + $0x3f8] sm:$0xff] }
 0x1b5   : > { %v2074_v23 = vadd.f32 %v2073_v16, %v2072_v9  ;;  %v2842_v49 = vadd.f32 %v2841_v3, %v2840_v44  ;;  %v2876_v17 = vadd.f32 %v2875_v31, %v1844_v2  ;;  %v2091_v59 = vrot.slane %v2090_v7, 2  ;;  %v431_v2 = vld [vmem:[#allocation2 + $0x7f0] sm:$0xff] }
 0x1b6   : > { %v2104_v61 = vadd.f32 %v2103_v6, %v2102_v10  ;;  %v2872_v54 = vadd.f32 %v2871_v58, %v2870_v14  ;;  %v2859_v32 = vrot.slane %v2858_v4, 2  ;;  %v2109_v36 = vrot.slane %v2108_v39, 2  ;;  %v432_v10 = vld [vmem:[#allocation2 + $0x7f8] sm:$0xff]  ;;  %v4591_v58 = vpop.f32.mrf.mxu0 }
 0x1b7   : > { %v2075_v50 = vrot.slane %v2074_v23, 1  ;;  %v2843_v24 = vrot.slane %v2842_v49, 1  ;;  %v2877_v30 = vrot.slane %v2876_v17, 2  ;;  %v2088_v37 = vadd.f32 %v2087_v41, %v5508_v18 }
 0x1b8   : > { %v2856_v53 = vadd.f32 %v2855_v25, %v5510_v33  ;;  %v2092_v5 = vadd.f32 %v2091_v59, %v2090_v7  ;;  %v2860_v35 = vadd.f32 %v2859_v32, %v2858_v4  ;;  %v2105_v51 = vrot.slane %v2104_v61, 1 }
 0x1b9   : > { %v2076_v55 = vadd.f32 %v2075_v50, %v2074_v23  ;;  %v2844_v47 = vadd.f32 %v2843_v24, %v2842_v49  ;;  %v2873_v19 = vrot.slane %v2872_v54, 1  ;;  %v3504_v20 = vmul.f32 0.125, %v5517_v38 }
 0x1ba   : > { %v3632_v57 = vmul.f32 0.125, %v5519_v45  ;;  %v5545_v21 = vadd.f32 %v2109_v36, %v2108_v39  ;;  %v5547_v22 = vadd.f32 %v2877_v30, %v2876_v17  ;;  %v2093_v41 = vrot.slane %v2092_v5, 1  ;;  %v1290_v45 = vpop.f32.mrf.mxu1 }
 0x1bb   : > { %v3503_v0 = vmul.f32 0.125, %v2076_v55  ;;  %v3631_v18 = vmul.f32 0.125, %v2844_v47  ;;  %v2861_v33 = vrot.slane %v2860_v35, 1  ;;  %v4018_v25 = vsel %vm4000_vm3, %v5525_v48, %v5528_v26  ;;  %v430_v48 = vld [vmem:[#allocation2 + $0x7e8] sm:$0xff]  ;;  %v303_v26 = vld [vmem:[#allocation2 + $0x3f0] sm:$0xff] }
 0x1bc   : > { %v4130_v1 = vsel %vm4000_vm3, %v5532_v52, %v5535_v56  ;;  %v3505_v12 = vmul.f32 0.125, %v2088_v37  ;;  %v3633_v38 = vmul.f32 0.125, %v2856_v53  ;;  %v5557_v8 = vadd.f32 %v2105_v51, %v2104_v61  ;;  %v4719_v7 = vpop.f32.mrf.mxu1 }
 0x1bd   : > { %v4019_v27 = vsel %vm4002_vm4, %v3503_v0, %v4018_v25  ;;  %v4131_v28 = vsel %vm4002_vm4, %v3631_v18, %v4130_v1  ;;  %v5559_v29 = vadd.f32 %v2873_v19, %v2872_v54  ;;  %v2111_v56 = vrot.slane %v5545_v21, 1  ;;  %v781_v1 = vpop.f32.mrf.mxu0 }
 0x1be   : > { %v4020_v9 = vsel %vm4004_vm5, %v3504_v20, %v4019_v27  ;;  %v4132_v52 = vsel %vm4004_vm5, %v3632_v57, %v4131_v28  ;;  %v2879_v44 = vrot.slane %v5547_v22, 1  ;;  %v5567_v40 = vadd.f32 %v2093_v41, %v2092_v5 }
 0x1bf   : > { %v4021_v14 = vsel %vm4006_vm6, %v3505_v12, %v4020_v9  ;;  %v4133_v15 = vsel %vm4006_vm6, %v3633_v38, %v4132_v52  ;;  %v5569_v16 = vadd.f32 %v2861_v33, %v2860_v35  ;;  %v766_v3 = vadd.f32 %v5503_v43, %v765_v13  ;;  %v1293_v12 = vpop.f32.mrf.mxu1 }
 0x1c0   : > { %4259 = vst [vmem:[%s5164_s14 + $0x10] sm:$0xff] %v4021_v14  ;;  %4275 = vst [vmem:[%s5164_s14 + $0x90] sm:$0xff] %v4133_v15  ;;  %v1278_v60 = vadd.f32 %v5503_v43, %v1277_v62  ;;  %v559_v31 = vpack.c.bf16 %v430_v48, %v429_v34  ;;  %v787_v6 = vadd.f32 %v5503_v43, %v4590_v42 }
 0x1c1   : > { %v496_v4 = vpack.c.bf16 %v304_v46, %v303_v26  ;;  %v1299_v23 = vadd.f32 %v5503_v43, %v4718_v11  ;;  %v560_v49 = vpack.c.bf16 %v432_v10, %v431_v2  ;;  %v779_v39 = vadd.f32 %v5503_v43, %v778_v63 }
 0x1c2   : > { %v1714_v17 = vmax.f32 %v766_v3, 0.0  ;;  %v1842_v61 = vmax.f32 %v1278_v60, 0.0  ;;  %4812 = vmatprep.mubr.bf16.mxu1 %v559_v31  ;;  %v1719_v54 = vmax.f32 %v787_v6, 0.0  ;;  %v1291_v59 = vadd.f32 %v5503_v43, %v1290_v45  ;;  %v4594_v60 = vpop.f32.mrf.mxu0  ;;  %v4722_v31 = vpop.f32.mrf.mxu1 }
 0x1c3   : > { %4685 = vmatmul.mubr.bf16.gmra.mxu0 %v496_v4  ;;  %v1847_v13 = vmax.f32 %v1299_v23, 0.0  ;;  %4813 = vmatmul.mubr.bf16.gmra.mxu1 %v560_v49  ;;  %v1717_v62 = vmax.f32 %v779_v39, 0.0  ;;  %v790_v32 = vadd.f32 %v5503_v43, %v4591_v58  ;;  %v1302_v50 = vadd.f32 %v5503_v43, %v4719_v7 }
 0x1c4   : > { %v2095_v24 = vrot.slane %v1714_v17, 4  ;;  %v2863_v36 = vrot.slane %v1842_v61, 4  ;;  %v2125_v30 = vrot.slane %v1719_v54, 4  ;;  %v1845_v37 = vmax.f32 %v1291_v59, 0.0 }
 0x1c5   : > { %v2893_v53 = vrot.slane %v1847_v13, 4  ;;  %v2113_v5 = vrot.slane %v1717_v62, 4  ;;  %v1720_v35 = vmax.f32 %v790_v32, 0.0  ;;  %v1848_v42 = vmax.f32 %v1302_v50, 0.0  ;;  %v794_v50 = vpop.f32.mrf.mxu0 }
 0x1c6   : > { %v2096_v11 = vadd.f32 %v2095_v24, %v1714_v17  ;;  %v2864_v55 = vadd.f32 %v2863_v36, %v1842_v61  ;;  %v2126_v47 = vadd.f32 %v2125_v30, %v1719_v54  ;;  %v2881_v51 = vrot.slane %v1845_v37, 4  ;;  %v1306_v24 = vpop.f32.mrf.mxu1 }
 0x1c7   : > { %v2894_v19 = vadd.f32 %v2893_v53, %v1847_v13  ;;  %v2114_v20 = vadd.f32 %v2113_v5, %v1717_v62  ;;  %v2131_v57 = vrot.slane %v1720_v35, 4  ;;  %v2899_v0 = vrot.slane %v1848_v42, 4 }
 0x1c8   : > { %v2097_v18 = vrot.slane %v2096_v11, 2  ;;  %v2865_v41 = vrot.slane %v2864_v55, 2  ;;  %v2127_v33 = vrot.slane %v2126_v47, 2  ;;  %v2882_v25 = vadd.f32 %v2881_v51, %v1845_v37  ;;  %v4723_v51 = vpop.f32.mrf.mxu1 }
 0x1c9   : > { %v2895_v38 = vrot.slane %v2894_v19, 2  ;;  %v2115_v63 = vrot.slane %v2114_v20, 2  ;;  %v2132_v45 = vadd.f32 %v2131_v57, %v1720_v35  ;;  %v2900_v27 = vadd.f32 %v2899_v0, %v1848_v42 }
 0x1ca   : > { %v2098_v28 = vadd.f32 %v2097_v18, %v2096_v11  ;;  %v2866_v34 = vadd.f32 %v2865_v41, %v2864_v55  ;;  %v2128_v48 = vadd.f32 %v2127_v33, %v2126_v47  ;;  %v2883_v26 = vrot.slane %v2882_v25, 2  ;;  %v4595_v47 = vpop.f32.mrf.mxu0 }
 0x1cb   : > { %v2896_v9 = vadd.f32 %v2895_v38, %v2894_v19  ;;  %v2116_v52 = vadd.f32 %v2115_v63, %v2114_v20  ;;  %v2133_v46 = vrot.slane %v2132_v45, 2  ;;  %v2901_v2 = vrot.slane %v2900_v27, 2 }
 0x1cc   : > { %v2099_v10 = vrot.slane %v2098_v28, 1  ;;  %v2867_v14 = vrot.slane %v2866_v34, 1  ;;  %v2129_v15 = vrot.slane %v2128_v48, 1  ;;  %v2884_v3 = vadd.f32 %v2883_v26, %v2882_v25 }
 0x1cd   : > { %v2112_v6 = vadd.f32 %v2111_v56, %v5545_v21  ;;  %v2880_v58 = vadd.f32 %v2879_v44, %v5547_v22  ;;  %v2117_v7 = vrot.slane %v2116_v52, 1  ;;  %v2134_v4 = vadd.f32 %v2133_v46, %v2132_v45 }
 0x1ce   : > { %v3506_v23 = vmul.f32 0.125, %v5567_v40  ;;  %v3634_v49 = vmul.f32 0.125, %v5569_v16  ;;  %v2100_v39 = vadd.f32 %v2099_v10, %v2098_v28  ;;  %v2868_v17 = vadd.f32 %v2867_v14, %v2866_v34 }
 0x1cf   : > { %v2130_v61 = vadd.f32 %v2129_v15, %v2128_v48  ;;  %v2897_v54 = vrot.slane %v2896_v9, 1  ;;  %v2885_v59 = vrot.slane %v2884_v3, 1  ;;  %v5589_v13 = vadd.f32 %v2901_v2, %v2900_v27 }
 0x1d0   : > { %v3507_v62 = vmul.f32 0.125, %v2100_v39  ;;  %v3635_v32 = vmul.f32 0.125, %v2868_v17  ;;  %v2118_v21 = vadd.f32 %v2117_v7, %v2116_v52  ;;  %v2135_v56 = vrot.slane %v2134_v4, 1 }
 0x1d1   : > { %v3508_v22 = vmul.f32 0.125, %v5557_v8  ;;  %v3636_v44 = vmul.f32 0.125, %v5559_v29  ;;  %v5593_v40 = vmul.f32 0.125, %v2112_v6  ;;  %v5595_v16 = vmul.f32 0.125, %v2880_v58  ;;  %v797_v6 = vpop.f32.mrf.mxu0 }
 0x1d2   : > { %v4022_v36 = vsel %vm3994_vm0, %v3507_v62, %v3506_v23  ;;  %v4134_v30 = vsel %vm3994_vm0, %v3635_v32, %v3634_v49  ;;  %v782_v37 = vadd.f32 %v5503_v43, %v781_v1  ;;  %v5600_v53 = vmul.f32 0.125, %v2130_v61  ;;  %v1309_v49 = vpop.f32.mrf.mxu1 }
 0x1d3   : > { %v5602_v5 = vadd.f32 %v2897_v54, %v2896_v9  ;;  %v2886_v35 = vadd.f32 %v2885_v59, %v2884_v3  ;;  %v2903_v42 = vrot.slane %v5589_v13, 1  ;;  %v5605_v8 = vmul.f32 0.125, %v2118_v21 }
 0x1d4   : > { %v5607_v29 = vadd.f32 %v2135_v56, %v2134_v4  ;;  %v1718_v11 = vmax.f32 %v782_v37, 0.0  ;;  %v1294_v55 = vadd.f32 %v5503_v43, %v1293_v12  ;;  %v4023_v19 = vsel %vm3996_vm1, %v3508_v22, %v4022_v36 }
 0x1d5   : > { %v4135_v20 = vsel %vm3996_vm1, %v3636_v44, %v4134_v30  ;;  %v803_v57 = vadd.f32 %v5503_v43, %v4594_v60  ;;  %v1315_v0 = vadd.f32 %v5503_v43, %v4722_v31  ;;  %v795_v33 = vadd.f32 %v5503_v43, %v794_v50  ;;  %v4598_v44 = vpop.f32.mrf.mxu0 }
 0x1d6   : > { %v2119_v18 = vrot.slane %v1718_v11, 4  ;;  %v1846_v41 = vmax.f32 %v1294_v55, 0.0  ;;  %v1307_v25 = vadd.f32 %v5503_v43, %v1306_v24  ;;  %v806_v12 = vadd.f32 %v5503_v43, %v4595_v47  ;;  %v4726_v55 = vpop.f32.mrf.mxu1 }
 0x1d7   : > { %v1723_v1 = vmax.f32 %v803_v57, 0.0  ;;  %v1851_v38 = vmax.f32 %v1315_v0, 0.0  ;;  %v1318_v63 = vadd.f32 %v5503_v43, %v4723_v51  ;;  %v1721_v28 = vmax.f32 %v795_v33, 0.0 }
 0x1d8   : > { %v2120_v45 = vadd.f32 %v2119_v18, %v1718_v11  ;;  %v2887_v27 = vrot.slane %v1846_v41, 4  ;;  %v1849_v34 = vmax.f32 %v1307_v25, 0.0  ;;  %v1724_v9 = vmax.f32 %v806_v12, 0.0  ;;  %v1322_v12 = vpop.f32.mrf.mxu1 }
 0x1d9   : > { %v2149_v48 = vrot.slane %v1723_v1, 4  ;;  %v2917_v26 = vrot.slane %v1851_v38, 4  ;;  %v1852_v52 = vmax.f32 %v1318_v63, 0.0  ;;  %v2137_v10 = vrot.slane %v1721_v28, 4 }
 0x1da   : > { %v2121_v46 = vrot.slane %v2120_v45, 2  ;;  %v2888_v2 = vadd.f32 %v2887_v27, %v1846_v41  ;;  %v2905_v14 = vrot.slane %v1849_v34, 4  ;;  %v2155_v60 = vrot.slane %v1724_v9, 4 }
 0x1db   : > { %v2150_v15 = vadd.f32 %v2149_v48, %v1723_v1  ;;  %v2918_v3 = vadd.f32 %v2917_v26, %v1851_v38  ;;  %v2923_v31 = vrot.slane %v1852_v52, 4  ;;  %v2138_v4 = vadd.f32 %v2137_v10, %v1721_v28 }
 0x1dc   : > { %v2122_v58 = vadd.f32 %v2121_v46, %v2120_v45  ;;  %v2889_v7 = vrot.slane %v2888_v2, 2  ;;  %v2906_v23 = vadd.f32 %v2905_v14, %v1849_v34  ;;  %v2156_v61 = vadd.f32 %v2155_v60, %v1724_v9 }
 0x1dd   : > { %v2151_v39 = vrot.slane %v2150_v15, 2  ;;  %v2919_v17 = vrot.slane %v2918_v3, 2  ;;  %v2924_v54 = vadd.f32 %v2923_v31, %v1852_v52  ;;  %v2139_v32 = vrot.slane %v2138_v4, 2 }
 0x1de   : > { %v2123_v59 = vrot.slane %v2122_v58, 1  ;;  %v2890_v62 = vadd.f32 %v2889_v7, %v2888_v2  ;;  %v2907_v21 = vrot.slane %v2906_v23, 2  ;;  %v2157_v24 = vrot.slane %v2156_v61, 2 }
 0x1df   : > { %v2152_v56 = vadd.f32 %v2151_v39, %v2150_v15  ;;  %v2920_v50 = vadd.f32 %v2919_v17, %v2918_v3  ;;  %v2925_v22 = vrot.slane %v2924_v54, 2  ;;  %v4024_v36 = vsel %vm3998_vm2, %v5593_v40, %v4023_v19  ;;  %v4727_v15 = vpop.f32.mrf.mxu1 }
 0x1e0   : > { %v2904_v30 = vadd.f32 %v2903_v42, %v5589_v13  ;;  %v2124_v37 = vadd.f32 %v2123_v59, %v2122_v58  ;;  %v2891_v11 = vrot.slane %v2890_v62, 1  ;;  %v3638_v47 = vmul.f32 0.125, %v2886_v35  ;;  %v810_v35 = vpop.f32.mrf.mxu0 }
 0x1e1   : > { %v4136_v51 = vsel %vm3998_vm2, %v5595_v16, %v4135_v20  ;;  %v2140_v57 = vadd.f32 %v2139_v32, %v2138_v4  ;;  %v5623_v0 = vadd.f32 %v2907_v21, %v2906_v23  ;;  %v2153_v33 = vrot.slane %v2152_v56, 1 }
 0x1e2   : > { %v3511_v18 = vmul.f32 0.125, %v2124_v37  ;;  %v2892_v41 = vadd.f32 %v2891_v11, %v2890_v62  ;;  %v2921_v25 = vrot.slane %v2920_v50, 1  ;;  %v3640_v1 = vmul.f32 0.125, %v5602_v5  ;;  %v4599_v52 = vpop.f32.mrf.mxu0 }
 0x1e3   : > { %v4025_v40 = vsel %vm4000_vm3, %v5605_v8, %v4024_v36  ;;  %v5628_v13 = vadd.f32 %v2157_v24, %v2156_v61  ;;  %v5630_v42 = vadd.f32 %v2925_v22, %v2924_v54  ;;  %v3513_v16 = vmul.f32 0.125, %v5607_v29 }
 0x1e4   : > { %v3641_v19 = vmul.f32 0.125, %v2904_v30  ;;  %v4026_v20 = vsel %vm4002_vm4, %v3511_v18, %v4025_v40  ;;  %v3639_v38 = vmul.f32 0.125, %v2892_v41  ;;  %v4137_v63 = vsel %vm4000_vm3, %v3638_v47, %v4136_v51  ;;  %v813_v51 = vpop.f32.mrf.mxu0 }
 0x1e5   : > { %v4027_v5 = vsel %vm4004_vm5, %v5600_v53, %v4026_v20  ;;  %v2141_v45 = vrot.slane %v2140_v57, 1  ;;  %v2909_v8 = vrot.slane %v5623_v0, 1  ;;  %v5640_v34 = vadd.f32 %v2153_v33, %v2152_v56 }
 0x1e6   : > { %v4028_v27 = vsel %vm4006_vm6, %v3513_v16, %v4027_v5  ;;  %v4138_v28 = vsel %vm4002_vm4, %v3639_v38, %v4137_v63  ;;  %v5642_v29 = vadd.f32 %v2921_v25, %v2920_v50  ;;  %v2159_v26 = vrot.slane %v5628_v13, 1  ;;  %v1325_v25 = vpop.f32.mrf.mxu1 }
 0x1e7   : > { %4260 = vst [vmem:[%s5164_s14 + $0x18] sm:$0xff] %v4028_v27  ;;  %v4139_v48 = vsel %vm4004_vm5, %v3640_v1, %v4138_v28  ;;  %v2927_v9 = vrot.slane %v5630_v42, 1  ;;  %v798_v53 = vadd.f32 %v5503_v43, %v797_v6  ;;  %v1310_v2 = vadd.f32 %v5503_v43, %v1309_v49  ;;  %v4602_v28 = vpop.f32.mrf.mxu0 }
 0x1e8   : > { %v4140_v46 = vsel %vm4006_vm6, %v3641_v19, %v4139_v48  ;;  %v819_v10 = vadd.f32 %v5503_v43, %v4598_v44  ;;  %v1331_v14 = vadd.f32 %v5503_v43, %v4726_v55  ;;  %v2142_v3 = vadd.f32 %v2141_v45, %v2140_v57 }
 0x1e9   : > { %4276 = vst [vmem:[%s5164_s14 + $0x98] sm:$0xff] %v4140_v46  ;;  %v1722_v60 = vmax.f32 %v798_v53, 0.0  ;;  %v811_v31 = vadd.f32 %v5503_v43, %v810_v35  ;;  %v1323_v58 = vadd.f32 %v5503_v43, %v1322_v12  ;;  %v1850_v7 = vmax.f32 %v1310_v2, 0.0  ;;  %v4730_v2 = vpop.f32.mrf.mxu1 }
 0x1ea   : > { %v1727_v4 = vmax.f32 %v819_v10, 0.0  ;;  %v1855_v6 = vmax.f32 %v1331_v14, 0.0  ;;  %v822_v23 = vadd.f32 %v5503_v43, %v4599_v52  ;;  %v1334_v61 = vadd.f32 %v5503_v43, %v4727_v15 }
 0x1eb   : > { %v2143_v39 = vrot.slane %v1722_v60, 4  ;;  %v1725_v17 = vmax.f32 %v811_v31, 0.0  ;;  %v1853_v49 = vmax.f32 %v1323_v58, 0.0  ;;  %v2911_v54 = vrot.slane %v1850_v7, 4 }
 0x1ec   : > { %v2173_v59 = vrot.slane %v1727_v4, 4  ;;  %v2941_v62 = vrot.slane %v1855_v6, 4  ;;  %v1728_v32 = vmax.f32 %v822_v23, 0.0  ;;  %v1856_v24 = vmax.f32 %v1334_v61, 0.0 }
 0x1ed   : > { %v2144_v21 = vadd.f32 %v2143_v39, %v1722_v60  ;;  %v2161_v56 = vrot.slane %v1725_v17, 4  ;;  %v2929_v50 = vrot.slane %v1853_v49, 4  ;;  %v2912_v22 = vadd.f32 %v2911_v54, %v1850_v7 }
 0x1ee   : > { %v2174_v44 = vadd.f32 %v2173_v59, %v1727_v4  ;;  %v2942_v36 = vadd.f32 %v2941_v62, %v1855_v6  ;;  %v2179_v30 = vrot.slane %v1728_v32, 4  ;;  %v2947_v47 = vrot.slane %v1856_v24, 4 }
 0x1ef   : > { %v2145_v37 = vrot.slane %v2144_v21, 2  ;;  %v2162_v11 = vadd.f32 %v2161_v56, %v1725_v17  ;;  %v2930_v55 = vadd.f32 %v2929_v50, %v1853_v49  ;;  %v2913_v57 = vrot.slane %v2912_v22, 2 }
 0x1f0   : > { %v2175_v18 = vrot.slane %v2174_v44, 2  ;;  %v2943_v41 = vrot.slane %v2942_v36, 2  ;;  %v2180_v33 = vadd.f32 %v2179_v30, %v1728_v32  ;;  %v2948_v16 = vadd.f32 %v2947_v47, %v1856_v24 }
 0x1f1   : > { %v2146_v1 = vadd.f32 %v2145_v37, %v2144_v21  ;;  %v2163_v40 = vrot.slane %v2162_v11, 2  ;;  %v2931_v35 = vrot.slane %v2930_v55, 2  ;;  %v2914_v19 = vadd.f32 %v2913_v57, %v2912_v22 }
 0x1f2   : > { %v2176_v20 = vadd.f32 %v2175_v18, %v2174_v44  ;;  %v2944_v38 = vadd.f32 %v2943_v41, %v2942_v36  ;;  %v2181_v12 = vrot.slane %v2180_v33, 2  ;;  %v2949_v27 = vrot.slane %v2948_v16, 2 }
 0x1f3   : > { %v2147_v63 = vrot.slane %v2146_v1, 1  ;;  %v2164_v5 = vadd.f32 %v2163_v40, %v2162_v11  ;;  %v2932_v45 = vadd.f32 %v2931_v35, %v2930_v55  ;;  %v2910_v48 = vadd.f32 %v2909_v8, %v5623_v0  ;;  %v826_v0 = vpop.f32.mrf.mxu0 }
 0x1f4   : > { %v2915_v53 = vrot.slane %v2914_v19, 1  ;;  %v2177_v52 = vrot.slane %v2176_v20, 1  ;;  %v2182_v46 = vadd.f32 %v2181_v12, %v2180_v33  ;;  %v2160_v10 = vadd.f32 %v2159_v26, %v5628_v13  ;;  %v1338_v13 = vpop.f32.mrf.mxu1 }
 0x1f5   : > { %v2928_v14 = vadd.f32 %v2927_v9, %v5630_v42  ;;  %v2148_v15 = vadd.f32 %v2147_v63, %v2146_v1  ;;  %v2165_v60 = vrot.slane %v2164_v5, 1  ;;  %v3514_v31 = vmul.f32 0.125, %v2142_v3  ;;  %v4603_v24 = vpop.f32.mrf.mxu0 }
 0x1f6   : > { %v2916_v58 = vadd.f32 %v2915_v53, %v2914_v19  ;;  %v2945_v7 = vrot.slane %v2944_v38, 1  ;;  %v2933_v4 = vrot.slane %v2932_v45, 1  ;;  %v2178_v23 = vadd.f32 %v2177_v52, %v2176_v20  ;;  %v4731_v37 = vpop.f32.mrf.mxu1 }
 0x1f7   : > { %v3515_v6 = vmul.f32 0.125, %v2148_v15  ;;  %v2183_v39 = vrot.slane %v2182_v46, 1  ;;  %v5663_v17 = vadd.f32 %v2949_v27, %v2948_v16  ;;  %v3516_v8 = vmul.f32 0.125, %v5640_v34  ;;  %v829_v52 = vpop.f32.mrf.mxu0 }
 0x1f8   : > { %v3642_v49 = vmul.f32 0.125, %v2910_v48  ;;  %v3643_v61 = vmul.f32 0.125, %v2916_v58  ;;  %v2166_v54 = vadd.f32 %v2165_v60, %v2164_v5  ;;  %v3644_v42 = vmul.f32 0.125, %v5642_v29  ;;  %v1341_v58 = vpop.f32.mrf.mxu1 }
 0x1f9   : > { %v5667_v26 = vmul.f32 0.125, %v2160_v10  ;;  %v5669_v9 = vmul.f32 0.125, %v2928_v14  ;;  %v4029_v3 = vsel %vm3994_vm0, %v3515_v6, %v3514_v31  ;;  %v5673_v62 = vadd.f32 %v2945_v7, %v2944_v38 }
 0x1fa   : > { %v4141_v59 = vsel %vm3994_vm0, %v3643_v61, %v3642_v49  ;;  %v2934_v32 = vadd.f32 %v2933_v4, %v2932_v45  ;;  %v814_v21 = vadd.f32 %v5503_v43, %v813_v51  ;;  %v5676_v34 = vmul.f32 0.125, %v2178_v23  ;;  %v4606_v61 = vpop.f32.mrf.mxu0 }
 0x1fb   : > { %v5678_v56 = vadd.f32 %v2183_v39, %v2182_v46  ;;  %v2951_v50 = vrot.slane %v5663_v17, 1  ;;  %v1326_v29 = vadd.f32 %v5503_v43, %v1325_v25  ;;  %v4030_v22 = vsel %vm3996_vm1, %v3516_v8, %v4029_v3 }
 0x1fc   : > { %v5683_v44 = vmul.f32 0.125, %v2166_v54  ;;  %v1726_v36 = vmax.f32 %v814_v21, 0.0  ;;  %v835_v30 = vadd.f32 %v5503_v43, %v4602_v28  ;;  %v4142_v11 = vsel %vm3996_vm1, %v3644_v42, %v4141_v59 }
 0x1fd   : > { %v1854_v55 = vmax.f32 %v1326_v29, 0.0  ;;  %v1347_v47 = vadd.f32 %v5503_v43, %v4730_v2  ;;  %v827_v51 = vadd.f32 %v5503_v43, %v826_v0  ;;  %v1339_v41 = vadd.f32 %v5503_v43, %v1338_v13 }
 0x1fe   : > { %v2167_v57 = vrot.slane %v1726_v36, 4  ;;  %v1731_v18 = vmax.f32 %v835_v30, 0.0  ;;  %v838_v33 = vadd.f32 %v5503_v43, %v4603_v24  ;;  %v1350_v35 = vadd.f32 %v5503_v43, %v4731_v37 }
 0x1ff   : > { %v2935_v25 = vrot.slane %v1854_v55, 4  ;;  %v1859_v1 = vmax.f32 %v1347_v47, 0.0  ;;  %v1729_v40 = vmax.f32 %v827_v51, 0.0  ;;  %v1857_v20 = vmax.f32 %v1339_v41, 0.0  ;;  %v842_v41 = vpop.f32.mrf.mxu0 }
 0x200   : > { %v2168_v16 = vadd.f32 %v2167_v57, %v1726_v36  ;;  %v2197_v19 = vrot.slane %v1731_v18, 4  ;;  %v1732_v38 = vmax.f32 %v838_v33, 0.0  ;;  %v1860_v45 = vmax.f32 %v1350_v35, 0.0  ;;  %v4734_v36 = vpop.f32.mrf.mxu1 }
 0x201   : > { %v2936_v12 = vadd.f32 %v2935_v25, %v1854_v55  ;;  %v2965_v63 = vrot.slane %v1859_v1, 4  ;;  %v2185_v5 = vrot.slane %v1729_v40, 4  ;;  %v2953_v48 = vrot.slane %v1857_v20, 4 }
 0x202   : > { %v2169_v27 = vrot.slane %v2168_v16, 2  ;;  %v2198_v28 = vadd.f32 %v2197_v19, %v1731_v18  ;;  %v2203_v53 = vrot.slane %v1732_v38, 4  ;;  %v2971_v14 = vrot.slane %v1860_v45, 4  ;;  %v1354_v25 = vpop.f32.mrf.mxu1 }
 0x203   : > { %v2937_v46 = vrot.slane %v2936_v12, 2  ;;  %v2966_v2 = vadd.f32 %v2965_v63, %v1859_v1  ;;  %v2186_v10 = vadd.f32 %v2185_v5, %v1729_v40  ;;  %v2954_v43 = vadd.f32 %v2953_v48, %v1857_v20 }
 0x204   : > { %v2170_v15 = vadd.f32 %v2169_v27, %v2168_v16  ;;  %v2199_v60 = vrot.slane %v2198_v28, 2  ;;  %v2204_v31 = vadd.f32 %v2203_v53, %v1732_v38  ;;  %v2972_v23 = vadd.f32 %v2971_v14, %v1860_v45  ;;  %v4607_v38 = vpop.f32.mrf.mxu0 }
 0x205   : > { %v2938_v7 = vadd.f32 %v2937_v46, %v2936_v12  ;;  %v2967_v4 = vrot.slane %v2966_v2, 2  ;;  %v2187_v6 = vrot.slane %v2186_v10, 2  ;;  %v2955_v8 = vrot.slane %v2954_v43, 2  ;;  %v4735_v46 = vpop.f32.mrf.mxu1 }
 0x206   : > { %v2171_v39 = vrot.slane %v2170_v15, 1  ;;  %v2200_v0 = vadd.f32 %v2199_v60, %v2198_v28  ;;  %v2205_v49 = vrot.slane %v2204_v31, 2  ;;  %v3646_v54 = vmul.f32 0.125, %v2934_v32 }
 0x207   : > { %v2939_v13 = vrot.slane %v2938_v7, 1  ;;  %v2188_v42 = vadd.f32 %v2187_v6, %v2186_v10  ;;  %v2973_v3 = vrot.slane %v2972_v23, 2  ;;  %v4031_v59 = vsel %vm3998_vm2, %v5667_v26, %v4030_v22 }
 0x208   : > { %v2952_v21 = vadd.f32 %v2951_v50, %v5663_v17  ;;  %v2172_v29 = vadd.f32 %v2171_v39, %v2170_v15  ;;  %v5695_v24 = vadd.f32 %v2967_v4, %v2966_v2  ;;  %v4143_v30 = vsel %vm3998_vm2, %v5669_v9, %v4142_v11 }
 0x209   : > { %v2940_v37 = vadd.f32 %v2939_v13, %v2938_v7  ;;  %v2201_v55 = vrot.slane %v2200_v0, 1  ;;  %v2956_v47 = vadd.f32 %v2955_v8, %v2954_v43  ;;  %v3648_v32 = vmul.f32 0.125, %v5673_v62 }
 0x20a   : > { %v3519_v51 = vmul.f32 0.125, %v2172_v29  ;;  %v2189_v57 = vrot.slane %v2188_v42, 1  ;;  %v5700_v18 = vadd.f32 %v2205_v49, %v2204_v31  ;;  %v4032_v17 = vsel %vm4000_vm3, %v5683_v44, %v4031_v59 }
 0x20b   : > { %v3521_v26 = vmul.f32 0.125, %v5678_v56  ;;  %v3647_v50 = vmul.f32 0.125, %v2940_v37  ;;  %v5705_v22 = vadd.f32 %v2973_v3, %v2972_v23  ;;  %v4144_v9 = vsel %vm4000_vm3, %v3646_v54, %v4143_v30 }
 0x20c   : > { %v3649_v11 = vmul.f32 0.125, %v2952_v21  ;;  %v4033_v33 = vsel %vm4002_vm4, %v3519_v51, %v4032_v17  ;;  %v2969_v62 = vrot.slane %v5695_v24, 1  ;;  %v5713_v40 = vadd.f32 %v2201_v55, %v2200_v0  ;;  %v845_v55 = vpop.f32.mrf.mxu0 }
 0x20d   : > { %v4034_v1 = vsel %vm4004_vm5, %v5676_v34, %v4033_v33  ;;  %v4145_v44 = vsel %vm4002_vm4, %v3647_v50, %v4144_v9  ;;  %v2957_v56 = vrot.slane %v2956_v47, 1  ;;  %v5717_v19 = vadd.f32 %v2189_v57, %v2188_v42  ;;  %v5726_v34 = vld [vmem:[%s6371_s3] ss:$0 sm:$0xff] }
 0x20e   : > { %v4035_v35 = vsel %vm4006_vm6, %v3521_v26, %v4034_v1  ;;  %v4146_v16 = vsel %vm4004_vm5, %v3648_v32, %v4145_v44  ;;  %v2207_v20 = vrot.slane %v5700_v18, 1  ;;  %v2975_v63 = vrot.slane %v5705_v22, 1 }
 0x20f   : > { %4261 = vst [vmem:[%s5164_s14 + $0x20] sm:$0xff] %v4035_v35  ;;  %v4147_v12 = vsel %vm4006_vm6, %v3649_v11, %v4146_v16  ;;  %v830_v5 = vadd.f32 %v5726_v34, %v829_v52  ;;  %v1342_v45 = vadd.f32 %v5726_v34, %v1341_v58  ;;  %v851_v27 = vadd.f32 %v5726_v34, %v4606_v61 }
 0x210   : > { %4277 = vst [vmem:[%s5164_s14 + $0xa0] sm:$0xff] %v4147_v12  ;;  %v1363_v28 = vadd.f32 %v5726_v34, %v4734_v36  ;;  %v843_v48 = vadd.f32 %v5726_v34, %v842_v41  ;;  %v1355_v53 = vadd.f32 %v5726_v34, %v1354_v25  ;;  %v2958_v2 = vadd.f32 %v2957_v56, %v2956_v47  ;;  %v1357_v47 = vpop.f32.mrf.mxu1 }
 0x211   : > { %v1730_v10 = vmax.f32 %v830_v5, 0.0  ;;  %v1858_v14 = vmax.f32 %v1342_v45, 0.0  ;;  %v854_v15 = vadd.f32 %v5726_v34, %v4607_v38  ;;  %v1735_v60 = vmax.f32 %v851_v27, 0.0  ;;  %v4610_v38 = vpop.f32.mrf.mxu0 }
 0x212   : > { %v1863_v43 = vmax.f32 %v1363_v28, 0.0  ;;  %v1733_v52 = vmax.f32 %v843_v48, 0.0  ;;  %v1861_v31 = vmax.f32 %v1355_v53, 0.0  ;;  %v1366_v6 = vadd.f32 %v5726_v34, %v4735_v46  ;;  %v4738_v12 = vpop.f32.mrf.mxu1 }
 0x213   : > { %v2191_v58 = vrot.slane %v1730_v10, 4  ;;  %v2959_v7 = vrot.slane %v1858_v14, 4  ;;  %v1736_v4 = vmax.f32 %v854_v15, 0.0  ;;  %v2221_v23 = vrot.slane %v1735_v60, 4 }
 0x214   : > { %v2989_v39 = vrot.slane %v1863_v43, 4  ;;  %v2209_v0 = vrot.slane %v1733_v52, 4  ;;  %v2977_v8 = vrot.slane %v1861_v31, 4  ;;  %v1864_v13 = vmax.f32 %v1366_v6, 0.0 }
 0x215   : > { %v2192_v49 = vadd.f32 %v2191_v58, %v1730_v10  ;;  %v2960_v61 = vadd.f32 %v2959_v7, %v1858_v14  ;;  %v2227_v54 = vrot.slane %v1736_v4, 4  ;;  %v2222_v42 = vadd.f32 %v2221_v23, %v1735_v60 }
 0x216   : > { %v2990_v3 = vadd.f32 %v2989_v39, %v1863_v43  ;;  %v2210_v59 = vadd.f32 %v2209_v0, %v1733_v52  ;;  %v2978_v21 = vadd.f32 %v2977_v8, %v1861_v31  ;;  %v2995_v37 = vrot.slane %v1864_v13, 4 }
 0x217   : > { %v2193_v29 = vrot.slane %v2192_v49, 2  ;;  %v2961_v36 = vrot.slane %v2960_v61, 2  ;;  %v2228_v30 = vadd.f32 %v2227_v54, %v1736_v4  ;;  %v2223_v32 = vrot.slane %v2222_v42, 2 }
 0x218   : > { %v2991_v51 = vrot.slane %v2990_v3, 2  ;;  %v2211_v57 = vrot.slane %v2210_v59, 2  ;;  %v2979_v41 = vrot.slane %v2978_v21, 2  ;;  %v2996_v9 = vadd.f32 %v2995_v37, %v1864_v13 }
 0x219   : > { %v2194_v17 = vadd.f32 %v2193_v29, %v2192_v49  ;;  %v2962_v26 = vadd.f32 %v2961_v36, %v2960_v61  ;;  %v2229_v50 = vrot.slane %v2228_v30, 2  ;;  %v2224_v11 = vadd.f32 %v2223_v32, %v2222_v42 }
 0x21a   : > { %v2992_v33 = vadd.f32 %v2991_v51, %v2990_v3  ;;  %v2212_v25 = vadd.f32 %v2211_v57, %v2210_v59  ;;  %v2980_v1 = vadd.f32 %v2979_v41, %v2978_v21  ;;  %v2997_v16 = vrot.slane %v2996_v9, 2 }
 0x21b   : > { %v2195_v44 = vrot.slane %v2194_v17, 1  ;;  %v2963_v56 = vrot.slane %v2962_v26, 1  ;;  %v2230_v35 = vadd.f32 %v2229_v50, %v2228_v30  ;;  %v2970_v5 = vadd.f32 %v2969_v62, %v5695_v24  ;;  %v858_v62 = vpop.f32.mrf.mxu0 }
 0x21c   : > { %v3522_v45 = vmul.f32 0.125, %v5717_v19  ;;  %v2208_v27 = vadd.f32 %v2207_v20, %v5700_v18  ;;  %v2213_v28 = vrot.slane %v2212_v25, 1  ;;  %v2976_v48 = vadd.f32 %v2975_v63, %v5705_v22  ;;  %v1370_v19 = vpop.f32.mrf.mxu1 }
 0x21d   : > { %v2196_v53 = vadd.f32 %v2195_v44, %v2194_v17  ;;  %v2964_v46 = vadd.f32 %v2963_v56, %v2962_v26  ;;  %v2225_v10 = vrot.slane %v2224_v11, 1  ;;  %v3650_v14 = vmul.f32 0.125, %v2958_v2  ;;  %v4611_v54 = vpop.f32.mrf.mxu0 }
 0x21e   : > { %v2993_v15 = vrot.slane %v2992_v33, 1  ;;  %v2981_v60 = vrot.slane %v2980_v1, 1  ;;  %v2231_v43 = vrot.slane %v2230_v35, 1  ;;  %v2214_v58 = vadd.f32 %v2213_v28, %v2212_v25  ;;  %v4739_v13 = vpop.f32.mrf.mxu1 }
 0x21f   : > { %v3523_v52 = vmul.f32 0.125, %v2196_v53  ;;  %v3651_v31 = vmul.f32 0.125, %v2964_v46  ;;  %v5745_v24 = vadd.f32 %v2997_v16, %v2996_v9  ;;  %v3524_v7 = vmul.f32 0.125, %v5713_v40 }
 0x220   : > { %v3652_v18 = vmul.f32 0.125, %v2970_v5  ;;  %v5748_v20 = vmul.f32 0.125, %v2208_v27  ;;  %v5750_v22 = vmul.f32 0.125, %v2976_v48  ;;  %v5754_v4 = vadd.f32 %v2225_v10, %v2224_v11 }
 0x221   : > { %v4036_v63 = vsel %vm3994_vm0, %v3523_v52, %v3522_v45  ;;  %v4148_v2 = vsel %vm3994_vm0, %v3651_v31, %v3650_v14  ;;  %v5756_v6 = vadd.f32 %v2993_v15, %v2992_v33  ;;  %v2982_v23 = vadd.f32 %v2981_v60, %v2980_v1  ;;  %v1373_v45 = vpop.f32.mrf.mxu1 }
 0x222   : > { %v846_v39 = vadd.f32 %v5726_v34, %v845_v55  ;;  %v1358_v0 = vadd.f32 %v5726_v34, %v1357_v47  ;;  %v5760_v8 = vmul.f32 0.125, %v2214_v58  ;;  %v5762_v40 = vadd.f32 %v2231_v43, %v2230_v35  ;;  %v5773_v35 = vpop.f32.mrf.mxu0 }
 0x223   : > { %v2999_v49 = vrot.slane %v5745_v24, 1  ;;  %v867_v61 = vadd.f32 %v5726_v34, %v4610_v38  ;;  %v4037_v42 = vsel %vm3996_vm1, %v3524_v7, %v4036_v63  ;;  %v4149_v3 = vsel %vm3996_vm1, %v3652_v18, %v4148_v2  ;;  %v4742_v63 = vpop.f32.mrf.mxu1 }
 0x224   : > { %v1734_v59 = vmax.f32 %v846_v39, 0.0  ;;  %v1862_v21 = vmax.f32 %v1358_v0, 0.0  ;;  %v1379_v36 = vadd.f32 %v5726_v34, %v4738_v12  ;;  %v859_v30 = vadd.f32 %v5726_v34, %v858_v62  ;;  %v4614_v58 = vpop.f32.mrf.mxu0 }
 0x225   : > { %v1739_v29 = vmax.f32 %v867_v61, 0.0  ;;  %v1371_v37 = vadd.f32 %v5726_v34, %v1370_v19  ;;  %v870_v32 = vadd.f32 %v5726_v34, %v4611_v54  ;;  %v1382_v51 = vadd.f32 %v5726_v34, %v4739_v13 }
 0x226   : > { %v2215_v55 = vrot.slane %v1734_v59, 4  ;;  %v2983_v47 = vrot.slane %v1862_v21, 4  ;;  %v1867_v41 = vmax.f32 %v1379_v36, 0.0  ;;  %v1737_v17 = vmax.f32 %v859_v30, 0.0 }
 0x227   : > { %v2245_v57 = vrot.slane %v1739_v29, 4  ;;  %v1865_v26 = vmax.f32 %v1371_v37, 0.0  ;;  %v1740_v11 = vmax.f32 %v870_v32, 0.0  ;;  %v1868_v33 = vmax.f32 %v1382_v51, 0.0 }
 0x228   : > { %v2216_v50 = vadd.f32 %v2215_v55, %v1734_v59  ;;  %v2984_v9 = vadd.f32 %v2983_v47, %v1862_v21  ;;  %v3013_v1 = vrot.slane %v1867_v41, 4  ;;  %v2233_v44 = vrot.slane %v1737_v17, 4  ;;  %v874_v55 = vpop.f32.mrf.mxu0 }
 0x229   : > { %v2246_v25 = vadd.f32 %v2245_v57, %v1739_v29  ;;  %v3001_v56 = vrot.slane %v1865_v26, 4  ;;  %v2251_v12 = vrot.slane %v1740_v11, 4  ;;  %v3019_v5 = vrot.slane %v1868_v33, 4 }
 0x22a   : > { %v2217_v16 = vrot.slane %v2216_v50, 2  ;;  %v2985_v38 = vrot.slane %v2984_v9, 2  ;;  %v3014_v28 = vadd.f32 %v3013_v1, %v1867_v41  ;;  %v2234_v48 = vadd.f32 %v2233_v44, %v1737_v17 }
 0x22b   : > { %v2247_v27 = vrot.slane %v2246_v25, 2  ;;  %v3002_v53 = vadd.f32 %v3001_v56, %v1865_v26  ;;  %v2252_v14 = vadd.f32 %v2251_v12, %v1740_v11  ;;  %v3020_v15 = vadd.f32 %v3019_v5, %v1868_v33 }
 0x22c   : > { %v2218_v46 = vadd.f32 %v2217_v16, %v2216_v50  ;;  %v2986_v10 = vadd.f32 %v2985_v38, %v2984_v9  ;;  %v3015_v43 = vrot.slane %v3014_v28, 2  ;;  %v2235_v52 = vrot.slane %v2234_v48, 2  ;;  %v4615_v50 = vpop.f32.mrf.mxu0 }
 0x22d   : > { %v2248_v60 = vadd.f32 %v2247_v27, %v2246_v25  ;;  %v3003_v31 = vrot.slane %v3002_v53, 2  ;;  %v2253_v7 = vrot.slane %v2252_v14, 2  ;;  %v3021_v18 = vrot.slane %v3020_v15, 2 }
 0x22e   : > { %v2219_v62 = vrot.slane %v2218_v46, 1  ;;  %v2987_v19 = vrot.slane %v2986_v10, 1  ;;  %v4038_v2 = vsel %vm3998_vm2, %v5748_v20, %v4037_v42  ;;  %v3654_v39 = vmul.f32 0.125, %v2982_v23 }
 0x22f   : > { %v3000_v0 = vadd.f32 %v2999_v49, %v5745_v24  ;;  %v3016_v61 = vadd.f32 %v3015_v43, %v3014_v28  ;;  %v4150_v54 = vsel %vm3998_vm2, %v5750_v22, %v4149_v3  ;;  %v2249_v21 = vrot.slane %v2248_v60, 1  ;;  %v1386_v49 = vpop.f32.mrf.mxu1 }
 0x230   : > { %v2220_v13 = vadd.f32 %v2219_v62, %v2218_v46  ;;  %v2988_v59 = vadd.f32 %v2987_v19, %v2986_v10  ;;  %v3528_v29 = vmul.f32 0.125, %v5754_v4  ;;  %v3656_v36 = vmul.f32 0.125, %v5756_v6 }
 0x231   : > { %v5782_v30 = vadd.f32 %v2235_v52, %v2234_v48  ;;  %v5784_v37 = vadd.f32 %v3003_v31, %v3002_v53  ;;  %v5786_v42 = vadd.f32 %v2253_v7, %v2252_v14  ;;  %v5788_v24 = vadd.f32 %v3021_v18, %v3020_v15  ;;  %v4743_v25 = vpop.f32.mrf.mxu1 }
 0x232   : > { %v3527_v20 = vmul.f32 0.125, %v2220_v13  ;;  %v3655_v23 = vmul.f32 0.125, %v2988_v59  ;;  %v4039_v22 = vsel %vm4000_vm3, %v5760_v8, %v4038_v2  ;;  %v4151_v3 = vsel %vm4000_vm3, %v3654_v39, %v4150_v54 }
 0x233   : > { %v3529_v4 = vmul.f32 0.125, %v5762_v40  ;;  %v3017_v6 = vrot.slane %v3016_v61, 1  ;;  %v3657_v47 = vmul.f32 0.125, %v3000_v0  ;;  %v5796_v57 = vadd.f32 %v2249_v21, %v2248_v60 }
 0x234   : > { %v4040_v32 = vsel %vm4002_vm4, %v3527_v20, %v4039_v22  ;;  %v4152_v51 = vsel %vm4002_vm4, %v3655_v23, %v4151_v3  ;;  %v2237_v8 = vrot.slane %v5782_v30, 1  ;;  %v3005_v26 = vrot.slane %v5784_v37, 1 }
 0x235   : > { %v4041_v41 = vsel %vm4004_vm5, %v3528_v29, %v4040_v32  ;;  %v4153_v17 = vsel %vm4004_vm5, %v3656_v36, %v4152_v51  ;;  %v2255_v11 = vrot.slane %v5786_v42, 1  ;;  %v3023_v33 = vrot.slane %v5788_v24, 1  ;;  %v877_v36 = vpop.f32.mrf.mxu0 }
 0x236   : > { %v4042_v40 = vsel %vm4006_vm6, %v3529_v4, %v4041_v41  ;;  %v4154_v9 = vsel %vm4006_vm6, %v3657_v47, %v4153_v17  ;;  %v5808_v1 = vadd.f32 %v3017_v6, %v3016_v61  ;;  %v862_v44 = vadd.f32 %v5726_v34, %v5773_v35 }
 0x237   : > { %4262 = vst [vmem:[%s5164_s14 + $0x28] sm:$0xff] %v4042_v40  ;;  %4278 = vst [vmem:[%s5164_s14 + $0xa8] sm:$0xff] %v4154_v9  ;;  %v1374_v56 = vadd.f32 %v5726_v34, %v1373_v45  ;;  %v883_v16 = vadd.f32 %v5726_v34, %v4614_v58  ;;  %v1395_v38 = vadd.f32 %v5726_v34, %v4742_v63 }
 0x238   : > { %v875_v12 = vadd.f32 %v5726_v34, %v874_v55  ;;  %v1387_v5 = vadd.f32 %v5726_v34, %v1386_v49  ;;  %v886_v27 = vadd.f32 %v5726_v34, %v4615_v50  ;;  %v1738_v28 = vmax.f32 %v862_v44, 0.0  ;;  %v1389_v55 = vpop.f32.mrf.mxu1  ;;  %v4618_v44 = vpop.f32.mrf.mxu0 }
 0x239   : > { %v1866_v48 = vmax.f32 %v1374_v56, 0.0  ;;  %v1743_v53 = vmax.f32 %v883_v16, 0.0  ;;  %v1398_v46 = vadd.f32 %v5726_v34, %v4743_v25  ;;  %v1871_v10 = vmax.f32 %v1395_v38, 0.0 }
 0x23a   : > { %v1741_v14 = vmax.f32 %v875_v12, 0.0  ;;  %v1869_v35 = vmax.f32 %v1387_v5, 0.0  ;;  %v1744_v15 = vmax.f32 %v886_v27, 0.0  ;;  %v2239_v45 = vrot.slane %v1738_v28, 4  ;;  %v4746_v56 = vpop.f32.mrf.mxu1 }
 0x23b   : > { %v3007_v60 = vrot.slane %v1866_v48, 4  ;;  %v2269_v43 = vrot.slane %v1743_v53, 4  ;;  %v1872_v52 = vmax.f32 %v1398_v46, 0.0  ;;  %v3037_v31 = vrot.slane %v1871_v10, 4 }
 0x23c   : > { %v2257_v58 = vrot.slane %v1741_v14, 4  ;;  %v3025_v62 = vrot.slane %v1869_v35, 4  ;;  %v2275_v19 = vrot.slane %v1744_v15, 4  ;;  %v2240_v7 = vadd.f32 %v2239_v45, %v1738_v28 }
 0x23d   : > { %v3008_v18 = vadd.f32 %v3007_v60, %v1866_v48  ;;  %v2270_v63 = vadd.f32 %v2269_v43, %v1743_v53  ;;  %v3043_v2 = vrot.slane %v1872_v52, 4  ;;  %v3038_v39 = vadd.f32 %v3037_v31, %v1871_v10 }
 0x23e   : > { %v2258_v0 = vadd.f32 %v2257_v58, %v1741_v14  ;;  %v3026_v61 = vadd.f32 %v3025_v62, %v1869_v35  ;;  %v2276_v54 = vadd.f32 %v2275_v19, %v1744_v15  ;;  %v2241_v13 = vrot.slane %v2240_v7, 2 }
 0x23f   : > { %v3009_v59 = vrot.slane %v3008_v18, 2  ;;  %v2271_v21 = vrot.slane %v2270_v63, 2  ;;  %v3044_v29 = vadd.f32 %v3043_v2, %v1872_v52  ;;  %v3039_v20 = vrot.slane %v3038_v39, 2 }
 0x240   : > { %v2259_v23 = vrot.slane %v2258_v0, 2  ;;  %v3027_v49 = vrot.slane %v3026_v61, 2  ;;  %v2277_v22 = vrot.slane %v2276_v54, 2  ;;  %v2242_v3 = vadd.f32 %v2241_v13, %v2240_v7 }
 0x241   : > { %v3010_v4 = vadd.f32 %v3009_v59, %v3008_v18  ;;  %v2272_v6 = vadd.f32 %v2271_v21, %v2270_v63  ;;  %v3045_v47 = vrot.slane %v3044_v29, 2  ;;  %v2238_v32 = vadd.f32 %v2237_v8, %v5782_v30 }
 0x242   : > { %v3040_v51 = vadd.f32 %v3039_v20, %v3038_v39  ;;  %v2260_v41 = vadd.f32 %v2259_v23, %v2258_v0  ;;  %v3028_v17 = vadd.f32 %v3027_v49, %v3026_v61  ;;  %v2243_v50 = vrot.slane %v2242_v3, 1 }
 0x243   : > { %v3011_v40 = vrot.slane %v3010_v4, 1  ;;  %v2273_v9 = vrot.slane %v2272_v6, 1  ;;  %v2278_v25 = vadd.f32 %v2277_v22, %v2276_v54  ;;  %v3006_v16 = vadd.f32 %v3005_v26, %v5784_v37  ;;  %v890_v37 = vpop.f32.mrf.mxu0  ;;  %v1402_v26 = vpop.f32.mrf.mxu1 }
 0x244   : > { %v2256_v38 = vadd.f32 %v2255_v11, %v5786_v42  ;;  %v3024_v12 = vadd.f32 %v3023_v33, %v5788_v24  ;;  %v2244_v5 = vadd.f32 %v2243_v50, %v2242_v3  ;;  %v3041_v30 = vrot.slane %v3040_v51, 1 }
 0x245   : > { %v3012_v27 = vadd.f32 %v3011_v40, %v3010_v4  ;;  %v5825_v8 = vadd.f32 %v3045_v47, %v3044_v29  ;;  %v3532_v28 = vmul.f32 0.125, %v5796_v57  ;;  %v2261_v48 = vrot.slane %v2260_v41, 1  ;;  %v4619_v18 = vpop.f32.mrf.mxu0  ;;  %v4747_v63 = vpop.f32.mrf.mxu1 }
 0x246   : > { %v3029_v53 = vrot.slane %v3028_v17, 1  ;;  %v5829_v46 = vmul.f32 0.125, %v5808_v1  ;;  %v3530_v10 = vmul.f32 0.125, %v2238_v32  ;;  %v2274_v14 = vadd.f32 %v2273_v9, %v2272_v6 }
 0x247   : > { %v2279_v35 = vrot.slane %v2278_v25, 1  ;;  %v3658_v42 = vmul.f32 0.125, %v3006_v16  ;;  %v5831_v11 = vmul.f32 0.125, %v2256_v38  ;;  %v3531_v24 = vmul.f32 0.125, %v2244_v5  ;;  %v893_v40 = vpop.f32.mrf.mxu0  ;;  %v1405_v9 = vpop.f32.mrf.mxu1 }
 0x248   : > { %v3659_v33 = vmul.f32 0.125, %v3012_v27  ;;  %v5833_v15 = vmul.f32 0.125, %v3024_v12  ;;  %v5835_v45 = vadd.f32 %v3041_v30, %v3040_v51  ;;  %v3047_v57 = vrot.slane %v5825_v8, 1 }
 0x249   : > { %v878_v60 = vadd.f32 %v5726_v34, %v877_v36  ;;  %v2262_v1 = vadd.f32 %v2261_v48, %v2260_v41  ;;  %v3030_v43 = vadd.f32 %v3029_v53, %v3028_v17  ;;  %v1390_v52 = vadd.f32 %v5726_v34, %v1389_v55 }
 0x24a   : > { %v899_v31 = vadd.f32 %v5726_v34, %v4618_v44  ;;  %v5841_v58 = vmul.f32 0.125, %v2274_v14  ;;  %v5843_v62 = vadd.f32 %v2279_v35, %v2278_v25  ;;  %v1411_v7 = vadd.f32 %v5726_v34, %v4746_v56 }
 0x24b   : > { %v1742_v19 = vmax.f32 %v878_v60, 0.0  ;;  %v4043_v2 = vsel %vm3994_vm0, %v3531_v24, %v3530_v10  ;;  %v4155_v39 = vsel %vm3994_vm0, %v3659_v33, %v3658_v42  ;;  %v1870_v0 = vmax.f32 %v1390_v52, 0.0  ;;  %v4622_v42 = vpop.f32.mrf.mxu0  ;;  %v4750_v24 = vpop.f32.mrf.mxu1 }
 0x24c   : > { %v1747_v61 = vmax.f32 %v899_v31, 0.0  ;;  %v1875_v13 = vmax.f32 %v1411_v7, 0.0  ;;  %v891_v59 = vadd.f32 %v5726_v34, %v890_v37  ;;  %v1403_v21 = vadd.f32 %v5726_v34, %v1402_v26 }
 0x24d   : > { %v2263_v54 = vrot.slane %v1742_v19, 4  ;;  %v3031_v29 = vrot.slane %v1870_v0, 4  ;;  %v902_v55 = vadd.f32 %v5726_v34, %v4619_v18  ;;  %v1414_v20 = vadd.f32 %v5726_v34, %v4747_v63 }
 0x24e   : > { %v2293_v36 = vrot.slane %v1747_v61, 4  ;;  %v3061_v49 = vrot.slane %v1875_v13, 4  ;;  %v1745_v22 = vmax.f32 %v891_v59, 0.0  ;;  %v1873_v3 = vmax.f32 %v1403_v21, 0.0 }
 0x24f   : > { %v2264_v23 = vadd.f32 %v2263_v54, %v1742_v19  ;;  %v3032_v4 = vadd.f32 %v3031_v29, %v1870_v0  ;;  %v1748_v47 = vmax.f32 %v902_v55, 0.0  ;;  %v1876_v32 = vmax.f32 %v1414_v20, 0.0 }
 0x250   : > { %v2294_v6 = vadd.f32 %v2293_v36, %v1747_v61  ;;  %v3062_v41 = vadd.f32 %v3061_v49, %v1875_v13  ;;  %v2281_v17 = vrot.slane %v1745_v22, 4  ;;  %v3049_v50 = vrot.slane %v1873_v3, 4 }
 0x251   : > { %v2265_v51 = vrot.slane %v2264_v23, 2  ;;  %v4044_v25 = vsel %vm3996_vm1, %v3532_v28, %v4043_v2  ;;  %v3033_v44 = vrot.slane %v3032_v4, 2  ;;  %v2299_v56 = vrot.slane %v1748_v47, 4 }
 0x252   : > { %v3067_v16 = vrot.slane %v1876_v32, 4  ;;  %v2295_v12 = vrot.slane %v2294_v6, 2  ;;  %v2282_v5 = vadd.f32 %v2281_v17, %v1745_v22  ;;  %v3050_v27 = vadd.f32 %v3049_v50, %v1873_v3 }
 0x253   : > { %v2266_v38 = vadd.f32 %v2265_v51, %v2264_v23  ;;  %v3034_v30 = vadd.f32 %v3033_v44, %v3032_v4  ;;  %v3063_v48 = vrot.slane %v3062_v41, 2  ;;  %v2300_v53 = vadd.f32 %v2299_v56, %v1748_v47 }
 0x254   : > { %v3068_v10 = vadd.f32 %v3067_v16, %v1876_v32  ;;  %v4156_v14 = vsel %vm3996_vm1, %v5829_v46, %v4155_v39  ;;  %v2283_v37 = vrot.slane %v2282_v5, 2  ;;  %v3051_v26 = vrot.slane %v3050_v27, 2 }
 0x255   : > { %v2267_v35 = vrot.slane %v2266_v38, 1  ;;  %v3534_v28 = vmul.f32 0.125, %v2262_v1  ;;  %v3035_v33 = vrot.slane %v3034_v30, 1  ;;  %v2301_v60 = vrot.slane %v2300_v53, 2 }
 0x256   : > { %v3069_v52 = vrot.slane %v3068_v10, 2  ;;  %v4045_v31 = vsel %vm3998_vm2, %v5831_v11, %v4044_v25  ;;  %v3662_v19 = vmul.f32 0.125, %v3030_v43  ;;  %v3048_v7 = vadd.f32 %v3047_v57, %v5825_v8  ;;  %v906_v11 = vpop.f32.mrf.mxu0  ;;  %v1418_v43 = vpop.f32.mrf.mxu1 }
 0x257   : > { %v2268_v18 = vadd.f32 %v2267_v35, %v2266_v38  ;;  %v4157_v63 = vsel %vm3998_vm2, %v5833_v15, %v4156_v14  ;;  %v3036_v46 = vadd.f32 %v3035_v33, %v3034_v30  ;;  %v5860_v2 = vadd.f32 %v2295_v12, %v2294_v6 }
 0x258   : > { %v5862_v39 = vadd.f32 %v3063_v48, %v3062_v41  ;;  %v3664_v1 = vmul.f32 0.125, %v5835_v45  ;;  %v5865_v61 = vadd.f32 %v2283_v37, %v2282_v5  ;;  %v5867_v54 = vadd.f32 %v3051_v26, %v3050_v27  ;;  %v4623_v4 = vpop.f32.mrf.mxu0  ;;  %v4751_v6 = vpop.f32.mrf.mxu1 }
 0x259   : > { %v3535_v0 = vmul.f32 0.125, %v2268_v18  ;;  %v4046_v8 = vsel %vm4000_vm3, %v3534_v28, %v4045_v31  ;;  %v3663_v57 = vmul.f32 0.125, %v3036_v46  ;;  %v5870_v13 = vadd.f32 %v2301_v60, %v2300_v53 }
 0x25a   : > { %v5872_v15 = vadd.f32 %v3069_v52, %v3068_v10  ;;  %v4158_v59 = vsel %vm4000_vm3, %v3662_v19, %v4157_v63  ;;  %v3537_v21 = vmul.f32 0.125, %v5843_v62  ;;  %v3665_v45 = vmul.f32 0.125, %v3048_v7  ;;  %v909_v46 = vpop.f32.mrf.mxu0 }
 0x25b   : > { %v4047_v29 = vsel %vm4002_vm4, %v3535_v0, %v4046_v8  ;;  %v4159_v55 = vsel %vm4002_vm4, %v3663_v57, %v4158_v59  ;;  %v2297_v20 = vrot.slane %v5860_v2, 1  ;;  %v3065_v23 = vrot.slane %v5862_v39, 1  ;;  %v1421_v8 = vpop.f32.mrf.mxu1 }
 0x25c   : > { %v4048_v36 = vsel %vm4004_vm5, %v5841_v58, %v4047_v29  ;;  %v4160_v22 = vsel %vm4004_vm5, %v3664_v1, %v4159_v55  ;;  %v2285_v3 = vrot.slane %v5865_v61, 1  ;;  %v3053_v62 = vrot.slane %v5867_v54, 1 }
 0x25d   : > { %v4049_v49 = vsel %vm4006_vm6, %v3537_v21, %v4048_v36  ;;  %v4161_v47 = vsel %vm4006_vm6, %v3665_v45, %v4160_v22  ;;  %v2303_v58 = vrot.slane %v5870_v13, 1  ;;  %v3071_v32 = vrot.slane %v5872_v15, 1 }
 0x25e   : > { %4263 = vst [vmem:[%s5164_s14 + $0x30] sm:$0xff] %v4049_v49  ;;  %v894_v51 = vadd.f32 %v5726_v34, %v893_v40  ;;  %4279 = vst [vmem:[%s5164_s14 + $0xb0] sm:$0xff] %v4161_v47  ;;  %v1406_v41 = vadd.f32 %v5726_v34, %v1405_v9  ;;  %v915_v17 = vadd.f32 %v5726_v34, %v4622_v42 }
 0x25f   : > { %v1427_v50 = vadd.f32 %v5726_v34, %v4750_v24  ;;  %v907_v25 = vadd.f32 %v5726_v34, %v906_v11  ;;  %v1419_v56 = vadd.f32 %v5726_v34, %v1418_v43  ;;  %v918_v16 = vadd.f32 %v5726_v34, %v4623_v4 }
 0x260   : > { %v1746_v44 = vmax.f32 %v894_v51, 0.0  ;;  %v1430_v38 = vadd.f32 %v5726_v34, %v4751_v6  ;;  %v1874_v12 = vmax.f32 %v1406_v41, 0.0  ;;  %v1751_v5 = vmax.f32 %v915_v17, 0.0  ;;  %v4626_v51 = vpop.f32.mrf.mxu0 }
 0x261   : > { %v1879_v27 = vmax.f32 %v1427_v50, 0.0  ;;  %v1749_v40 = vmax.f32 %v907_v25, 0.0  ;;  %v1877_v48 = vmax.f32 %v1419_v56, 0.0  ;;  %v1752_v9 = vmax.f32 %v918_v16, 0.0 }
 0x262   : > { %v2287_v30 = vrot.slane %v1746_v44, 4  ;;  %v1880_v53 = vmax.f32 %v1430_v38, 0.0  ;;  %v3055_v10 = vrot.slane %v1874_v12, 4  ;;  %v2317_v14 = vrot.slane %v1751_v5, 4 }
 0x263   : > { %v3085_v35 = vrot.slane %v1879_v27, 4  ;;  %v2305_v37 = vrot.slane %v1749_v40, 4  ;;  %v3073_v42 = vrot.slane %v1877_v48, 4  ;;  %v2323_v24 = vrot.slane %v1752_v9, 4 }
 0x264   : > { %v2288_v26 = vadd.f32 %v2287_v30, %v1746_v44  ;;  %v3091_v28 = vrot.slane %v1880_v53, 4  ;;  %v3056_v33 = vadd.f32 %v3055_v10, %v1874_v12  ;;  %v2318_v60 = vadd.f32 %v2317_v14, %v1751_v5  ;;  %v4754_v44 = vpop.f32.mrf.mxu1 }
 0x265   : > { %v3086_v52 = vadd.f32 %v3085_v35, %v1879_v27  ;;  %v2306_v31 = vadd.f32 %v2305_v37, %v1749_v40  ;;  %v3074_v7 = vadd.f32 %v3073_v42, %v1877_v48  ;;  %v2324_v18 = vadd.f32 %v2323_v24, %v1752_v9 }
 0x266   : > { %v2289_v19 = vrot.slane %v2288_v26, 2  ;;  %v3092_v63 = vadd.f32 %v3091_v28, %v1880_v53  ;;  %v3057_v1 = vrot.slane %v3056_v33, 2  ;;  %v2319_v0 = vrot.slane %v2318_v60, 2  ;;  %v1434_v48 = vpop.f32.mrf.mxu1 }
 0x267   : > { %v3087_v11 = vrot.slane %v3086_v52, 2  ;;  %v2307_v43 = vrot.slane %v2306_v31, 2  ;;  %v3075_v59 = vrot.slane %v3074_v7, 2  ;;  %v2325_v21 = vrot.slane %v2324_v18, 2 }
 0x268   : > { %v2290_v57 = vadd.f32 %v2289_v19, %v2288_v26  ;;  %v3093_v45 = vrot.slane %v3092_v63, 2  ;;  %v2298_v29 = vadd.f32 %v2297_v20, %v5860_v2  ;;  %v3058_v36 = vadd.f32 %v3057_v1, %v3056_v33 }
 0x269   : > { %v2320_v55 = vadd.f32 %v2319_v0, %v2318_v60  ;;  %v3088_v49 = vadd.f32 %v3087_v11, %v3086_v52  ;;  %v3066_v22 = vadd.f32 %v3065_v23, %v5862_v39  ;;  %v2308_v6 = vadd.f32 %v2307_v43, %v2306_v31  ;;  %v4755_v31 = vpop.f32.mrf.mxu1 }
 0x26a   : > { %v2291_v4 = vrot.slane %v2290_v57, 1  ;;  %v3076_v47 = vadd.f32 %v3075_v59, %v3074_v7  ;;  %v2286_v41 = vadd.f32 %v2285_v3, %v5865_v61  ;;  %v3054_v17 = vadd.f32 %v3053_v62, %v5867_v54  ;;  %v922_v61 = vpop.f32.mrf.mxu0 }
 0x26b   : > { %v3059_v50 = vrot.slane %v3058_v36, 1  ;;  %v2326_v25 = vadd.f32 %v2325_v21, %v2324_v18  ;;  %v2304_v56 = vadd.f32 %v2303_v58, %v5870_v13  ;;  %v3072_v2 = vadd.f32 %v3071_v32, %v5872_v15 }
 0x26c   : > { %v2292_v20 = vadd.f32 %v2291_v4, %v2290_v57  ;;  %v5905_v16 = vadd.f32 %v3093_v45, %v3092_v63  ;;  %v2321_v39 = vrot.slane %v2320_v55, 1  ;;  %v3089_v23 = vrot.slane %v3088_v49, 1  ;;  %v4627_v24 = vpop.f32.mrf.mxu0 }
 0x26d   : > { %v3060_v38 = vadd.f32 %v3059_v50, %v3058_v36  ;;  %v3540_v12 = vmul.f32 0.125, %v2298_v29  ;;  %v3668_v5 = vmul.f32 0.125, %v3066_v22  ;;  %v2309_v27 = vrot.slane %v2308_v6, 1  ;;  %v1437_v50 = vpop.f32.mrf.mxu1 }
 0x26e   : > { %v3077_v40 = vrot.slane %v3076_v47, 1  ;;  %v3538_v3 = vmul.f32 0.125, %v2286_v41  ;;  %v3666_v54 = vmul.f32 0.125, %v3054_v17  ;;  %v3539_v62 = vmul.f32 0.125, %v2292_v20 }
 0x26f   : > { %v2327_v30 = vrot.slane %v2326_v25, 1  ;;  %v5907_v9 = vmul.f32 0.125, %v2304_v56  ;;  %v5909_v13 = vmul.f32 0.125, %v3072_v2  ;;  %v3667_v15 = vmul.f32 0.125, %v3060_v38 }
 0x270   : > { %v3095_v58 = vrot.slane %v5905_v16, 1  ;;  %v5912_v32 = vadd.f32 %v2321_v39, %v2320_v55  ;;  %v5914_v53 = vadd.f32 %v3089_v23, %v3088_v49  ;;  %v910_v10 = vadd.f32 %v5726_v34, %v909_v46 }
 0x271   : > { %v1422_v14 = vadd.f32 %v5726_v34, %v1421_v8  ;;  %v2310_v35 = vadd.f32 %v2309_v27, %v2308_v6  ;;  %v3078_v37 = vadd.f32 %v3077_v40, %v3076_v47  ;;  %v931_v26 = vadd.f32 %v5726_v34, %v4626_v51  ;;  %v5928_v6 = vpop.f32.mrf.mxu0 }
 0x272   : > { %v1443_v42 = vadd.f32 %v5726_v34, %v4754_v44  ;;  %v4050_v28 = vsel %vm3994_vm0, %v3539_v62, %v3538_v3  ;;  %v5921_v33 = vadd.f32 %v2327_v30, %v2326_v25  ;;  %v1750_v60 = vmax.f32 %v910_v10, 0.0 }
 0x273   : > { %v1878_v52 = vmax.f32 %v1422_v14, 0.0  ;;  %v4162_v19 = vsel %vm3994_vm0, %v3667_v15, %v3666_v54  ;;  %v1755_v7 = vmax.f32 %v931_v26, 0.0  ;;  %v923_v63 = vadd.f32 %v5726_v34, %v922_v61  ;;  %v4630_v3 = vpop.f32.mrf.mxu0  ;;  %v4758_v15 = vpop.f32.mrf.mxu1 }
 0x274   : > { %v1883_v18 = vmax.f32 %v1443_v42, 0.0  ;;  %v2311_v46 = vrot.slane %v1750_v60, 4  ;;  %v1435_v0 = vadd.f32 %v5726_v34, %v1434_v48  ;;  %v934_v11 = vadd.f32 %v5726_v34, %v4627_v24 }
 0x275   : > { %v3079_v1 = vrot.slane %v1878_v52, 4  ;;  %v2341_v43 = vrot.slane %v1755_v7, 4  ;;  %v1753_v57 = vmax.f32 %v923_v63, 0.0  ;;  %v1446_v59 = vadd.f32 %v5726_v34, %v4755_v31 }
 0x276   : > { %v3109_v8 = vrot.slane %v1883_v18, 4  ;;  %v2312_v21 = vadd.f32 %v2311_v46, %v1750_v60  ;;  %v1881_v29 = vmax.f32 %v1435_v0, 0.0  ;;  %v1756_v36 = vmax.f32 %v934_v11, 0.0 }
 0x277   : > { %v3080_v45 = vadd.f32 %v3079_v1, %v1878_v52  ;;  %v2342_v55 = vadd.f32 %v2341_v43, %v1755_v7  ;;  %v2329_v22 = vrot.slane %v1753_v57, 4  ;;  %v1884_v4 = vmax.f32 %v1446_v59, 0.0  ;;  %v1450_v7 = vpop.f32.mrf.mxu1 }
 0x278   : > { %v3110_v49 = vadd.f32 %v3109_v8, %v1883_v18  ;;  %v2313_v47 = vrot.slane %v2312_v21, 2  ;;  %v3097_v41 = vrot.slane %v1881_v29, 4  ;;  %v2347_v17 = vrot.slane %v1756_v36, 4 }
 0x279   : > { %v3081_v51 = vrot.slane %v3080_v45, 2  ;;  %v4051_v25 = vsel %vm3996_vm1, %v3540_v12, %v4050_v28  ;;  %v2343_v44 = vrot.slane %v2342_v55, 2  ;;  %v2330_v56 = vadd.f32 %v2329_v22, %v1753_v57 }
 0x27a   : > { %v3115_v34 = vrot.slane %v1884_v4, 4  ;;  %v2314_v2 = vadd.f32 %v2313_v47, %v2312_v21  ;;  %v3098_v38 = vadd.f32 %v3097_v41, %v1881_v29  ;;  %v2348_v39 = vadd.f32 %v2347_v17, %v1756_v36  ;;  %v4759_v36 = vpop.f32.mrf.mxu1 }
 0x27b   : > { %v3082_v20 = vadd.f32 %v3081_v51, %v3080_v45  ;;  %v4163_v23 = vsel %vm3996_vm1, %v3668_v5, %v4162_v19  ;;  %v3096_v27 = vadd.f32 %v3095_v58, %v5905_v16  ;;  %v3111_v40 = vrot.slane %v3110_v49, 2 }
 0x27c   : > { %v2331_v61 = vrot.slane %v2330_v56, 2  ;;  %v2315_v54 = vrot.slane %v2314_v2, 1  ;;  %v3099_v30 = vrot.slane %v3098_v38, 2  ;;  %v3116_v48 = vadd.f32 %v3115_v34, %v1884_v4 }
 0x27d   : > { %v3083_v62 = vrot.slane %v3082_v20, 1  ;;  %v3542_v12 = vmul.f32 0.125, %v2310_v35  ;;  %v4052_v10 = vsel %vm3998_vm2, %v5907_v9, %v4051_v25  ;;  %v3670_v14 = vmul.f32 0.125, %v3078_v37  ;;  %v938_v35 = vpop.f32.mrf.mxu0 }
 0x27e   : > { %v2349_v26 = vrot.slane %v2348_v39, 2  ;;  %v4164_v42 = vsel %vm3998_vm2, %v5909_v13, %v4163_v23  ;;  %v2316_v5 = vadd.f32 %v2315_v54, %v2314_v2  ;;  %v5937_v16 = vadd.f32 %v2343_v44, %v2342_v55 }
 0x27f   : > { %v3084_v24 = vadd.f32 %v3083_v62, %v3082_v20  ;;  %v3544_v58 = vmul.f32 0.125, %v5912_v32  ;;  %v3672_v28 = vmul.f32 0.125, %v5914_v53  ;;  %v5941_v60 = vadd.f32 %v3111_v40, %v3110_v49  ;;  %v5970_v49 = vld [vmem:[%s6371_s3] ss:$0 sm:$0xff] }
 0x280   : > { %v5943_v52 = vadd.f32 %v2331_v61, %v2330_v56  ;;  %v3543_v31 = vmul.f32 0.125, %v2316_v5  ;;  %v5945_v37 = vadd.f32 %v3099_v30, %v3098_v38  ;;  %v3117_v19 = vrot.slane %v3116_v48, 2 }
 0x281   : > { %v3671_v9 = vmul.f32 0.125, %v3084_v24  ;;  %v4053_v13 = vsel %vm4000_vm3, %v3542_v12, %v4052_v10  ;;  %v4165_v18 = vsel %vm4000_vm3, %v3670_v14, %v4164_v42  ;;  %v3545_v63 = vmul.f32 0.125, %v5921_v33  ;;  %v4631_v33 = vpop.f32.mrf.mxu0 }
 0x282   : > { %v5950_v32 = vadd.f32 %v2349_v26, %v2348_v39  ;;  %v3673_v53 = vmul.f32 0.125, %v3096_v27  ;;  %v4054_v46 = vsel %vm4002_vm4, %v3543_v31, %v4053_v13  ;;  %v2345_v0 = vrot.slane %v5937_v16, 1  ;;  %v1453_v31 = vpop.f32.mrf.mxu1 }
 0x283   : > { %v4166_v1 = vsel %vm4002_vm4, %v3671_v9, %v4165_v18  ;;  %v4055_v11 = vsel %vm4004_vm5, %v3544_v58, %v4054_v46  ;;  %v3113_v8 = vrot.slane %v5941_v60, 1  ;;  %v2333_v57 = vrot.slane %v5943_v52, 1 }
 0x284   : > { %v4167_v43 = vsel %vm4004_vm5, %v3672_v28, %v4166_v1  ;;  %v4056_v59 = vsel %vm4006_vm6, %v3545_v63, %v4055_v11  ;;  %v3101_v45 = vrot.slane %v5945_v37, 1  ;;  %v5962_v29 = vadd.f32 %v3117_v19, %v3116_v48 }
 0x285   : > { %v4168_v21 = vsel %vm4006_vm6, %v3673_v53, %v4167_v43  ;;  %4264 = vst [vmem:[%s5164_s14 + $0x38] sm:$0xff] %v4056_v59  ;;  %v2351_v55 = vrot.slane %v5950_v32, 1  ;;  %v926_v22 = vadd.f32 %v5970_v49, %v5928_v6  ;;  %v1438_v4 = vadd.f32 %v5970_v49, %v1437_v50 }
 0x286   : > { %4280 = vst [vmem:[%s5164_s14 + $0xb8] sm:$0xff] %v4168_v21  ;;  %v947_v47 = vadd.f32 %v5970_v49, %v4630_v3  ;;  %v1459_v51 = vadd.f32 %v5970_v49, %v4758_v15  ;;  %v939_v41 = vadd.f32 %v5970_v49, %v938_v35  ;;  %v1451_v17 = vadd.f32 %v5970_v49, %v1450_v7  ;;  %v941_v35 = vpop.f32.mrf.mxu0 }
 0x287   : > { %v950_v25 = vadd.f32 %v5970_v49, %v4631_v33  ;;  %v1754_v44 = vmax.f32 %v926_v22, 0.0  ;;  %v1882_v56 = vmax.f32 %v1438_v4, 0.0  ;;  %v1462_v2 = vadd.f32 %v5970_v49, %v4759_v36 }
 0x288   : > { %v1759_v34 = vmax.f32 %v947_v47, 0.0  ;;  %v1887_v20 = vmax.f32 %v1459_v51, 0.0  ;;  %v1757_v38 = vmax.f32 %v939_v41, 0.0  ;;  %v1885_v6 = vmax.f32 %v1451_v17, 0.0  ;;  %v4634_v4 = vpop.f32.mrf.mxu0  ;;  %v4762_v47 = vpop.f32.mrf.mxu1 }
 0x289   : > { %v1760_v39 = vmax.f32 %v950_v25, 0.0  ;;  %v2335_v50 = vrot.slane %v1754_v44, 4  ;;  %v3103_v23 = vrot.slane %v1882_v56, 4  ;;  %v1888_v40 = vmax.f32 %v1462_v2, 0.0 }
 0x28a   : > { %v2365_v27 = vrot.slane %v1759_v34, 4  ;;  %v3133_v61 = vrot.slane %v1887_v20, 4  ;;  %v2353_v3 = vrot.slane %v1757_v38, 4  ;;  %v3121_v54 = vrot.slane %v1885_v6, 4 }
 0x28b   : > { %v2371_v62 = vrot.slane %v1760_v39, 4  ;;  %v2336_v30 = vadd.f32 %v2335_v50, %v1754_v44  ;;  %v3104_v48 = vadd.f32 %v3103_v23, %v1882_v56  ;;  %v3139_v12 = vrot.slane %v1888_v40, 4 }
 0x28c   : > { %v2366_v15 = vadd.f32 %v2365_v27, %v1759_v34  ;;  %v3134_v10 = vadd.f32 %v3133_v61, %v1887_v20  ;;  %v2354_v14 = vadd.f32 %v2353_v3, %v1757_v38  ;;  %v3122_v26 = vadd.f32 %v3121_v54, %v1885_v6  ;;  %v954_v20 = vpop.f32.mrf.mxu0  ;;  %v1466_v38 = vpop.f32.mrf.mxu1 }
 0x28d   : > { %v2372_v42 = vadd.f32 %v2371_v62, %v1760_v39  ;;  %v2337_v5 = vrot.slane %v2336_v30, 2  ;;  %v3105_v24 = vrot.slane %v3104_v48, 2  ;;  %v3140_v28 = vadd.f32 %v3139_v12, %v1888_v40 }
 0x28e   : > { %v2367_v58 = vrot.slane %v2366_v15, 2  ;;  %v3119_v9 = vrot.slane %v5962_v29, 1  ;;  %v3135_v19 = vrot.slane %v3134_v10, 2  ;;  %v2355_v7 = vrot.slane %v2354_v14, 2 }
 0x28f   : > { %v3123_v13 = vrot.slane %v3122_v26, 2  ;;  %v2338_v18 = vadd.f32 %v2337_v5, %v2336_v30  ;;  %v3106_v63 = vadd.f32 %v3105_v24, %v3104_v48  ;;  %v2373_v46 = vrot.slane %v2372_v42, 2  ;;  %v4635_v48 = vpop.f32.mrf.mxu0 }
 0x290   : > { %v2368_v53 = vadd.f32 %v2367_v58, %v2366_v15  ;;  %v2346_v1 = vadd.f32 %v2345_v0, %v5937_v16  ;;  %v3114_v11 = vadd.f32 %v3113_v8, %v5941_v60  ;;  %v3136_v43 = vadd.f32 %v3135_v19, %v3134_v10  ;;  %v4763_v15 = vpop.f32.mrf.mxu1 }
 0x291   : > { %v3141_v33 = vrot.slane %v3140_v28, 2  ;;  %v2334_v59 = vadd.f32 %v2333_v57, %v5943_v52  ;;  %v2339_v21 = vrot.slane %v2338_v18, 1  ;;  %v2356_v36 = vadd.f32 %v2355_v7, %v2354_v14 }
 0x292   : > { %v3124_v22 = vadd.f32 %v3123_v13, %v3122_v26  ;;  %v3102_v51 = vadd.f32 %v3101_v45, %v5945_v37  ;;  %v2352_v41 = vadd.f32 %v2351_v55, %v5950_v32  ;;  %v3107_v17 = vrot.slane %v3106_v63, 1 }
 0x293   : > { %v3120_v25 = vadd.f32 %v3119_v9, %v5962_v29  ;;  %v2340_v44 = vadd.f32 %v2339_v21, %v2338_v18  ;;  %v2369_v16 = vrot.slane %v2368_v53, 1  ;;  %v2374_v0 = vadd.f32 %v2373_v46, %v2372_v42  ;;  %v957_v21 = vpop.f32.mrf.mxu0 }
 0x294   : > { %v3548_v60 = vmul.f32 0.125, %v2346_v1  ;;  %v3137_v8 = vrot.slane %v3136_v43, 1  ;;  %v5988_v56 = vadd.f32 %v3141_v33, %v3140_v28  ;;  %v5990_v52 = vmul.f32 0.125, %v3114_v11 }
 0x295   : > { %v3546_v57 = vmul.f32 0.125, %v2334_v59  ;;  %v2357_v34 = vrot.slane %v2356_v36, 1  ;;  %v3125_v2 = vrot.slane %v3124_v22, 1  ;;  %v3674_v37 = vmul.f32 0.125, %v3102_v51 }
 0x296   : > { %v5992_v45 = vmul.f32 0.125, %v2352_v41  ;;  %v3547_v32 = vmul.f32 0.125, %v2340_v44  ;;  %v3108_v55 = vadd.f32 %v3107_v17, %v3106_v63  ;;  %v5994_v29 = vmul.f32 0.125, %v3120_v25 }
 0x297   : > { %v2370_v6 = vadd.f32 %v2369_v16, %v2368_v53  ;;  %v2375_v39 = vrot.slane %v2374_v0, 1  ;;  %v942_v50 = vadd.f32 %v5970_v49, %v941_v35  ;;  %v5997_v23 = vadd.f32 %v3137_v8, %v3136_v43 }
 0x298   : > { %v3143_v27 = vrot.slane %v5988_v56, 1  ;;  %v1454_v40 = vadd.f32 %v5970_v49, %v1453_v31  ;;  %v963_v61 = vadd.f32 %v5970_v49, %v4634_v4  ;;  %v2358_v3 = vadd.f32 %v2357_v34, %v2356_v36  ;;  %v1469_v36 = vpop.f32.mrf.mxu1 }
 0x299   : > { %v3126_v54 = vadd.f32 %v3125_v2, %v3124_v22  ;;  %v1758_v62 = vmax.f32 %v942_v50, 0.0  ;;  %v1475_v30 = vadd.f32 %v5970_v49, %v4762_v47  ;;  %v4057_v12 = vsel %vm3994_vm0, %v3547_v32, %v3546_v57 }
 0x29a   : > { %v3675_v10 = vmul.f32 0.125, %v3108_v55  ;;  %v1886_v14 = vmax.f32 %v1454_v40, 0.0  ;;  %v1763_v26 = vmax.f32 %v963_v61, 0.0  ;;  %v955_v24 = vadd.f32 %v5970_v49, %v954_v20  ;;  %v4638_v55 = vpop.f32.mrf.mxu0 }
 0x29b   : > { %v2359_v42 = vrot.slane %v1758_v62, 4  ;;  %v1891_v5 = vmax.f32 %v1475_v30, 0.0  ;;  %v1467_v58 = vadd.f32 %v5970_v49, %v1466_v38  ;;  %v966_v31 = vadd.f32 %v5970_v49, %v4635_v48 }
 0x29c   : > { %v3127_v28 = vrot.slane %v1886_v14, 4  ;;  %v2389_v35 = vrot.slane %v1763_v26, 4  ;;  %v1478_v9 = vadd.f32 %v5970_v49, %v4763_v15  ;;  %v1761_v13 = vmax.f32 %v955_v24, 0.0 }
 0x29d   : > { %v2360_v19 = vadd.f32 %v2359_v42, %v1758_v62  ;;  %v3157_v7 = vrot.slane %v1891_v5, 4  ;;  %v1889_v18 = vmax.f32 %v1467_v58, 0.0  ;;  %v1764_v46 = vmax.f32 %v966_v31, 0.0 }
 0x29e   : > { %v3128_v63 = vadd.f32 %v3127_v28, %v1886_v14  ;;  %v2390_v53 = vadd.f32 %v2389_v35, %v1763_v26  ;;  %v1892_v1 = vmax.f32 %v1478_v9, 0.0  ;;  %v2377_v33 = vrot.slane %v1761_v13, 4  ;;  %v970_v26 = vpop.f32.mrf.mxu0 }
 0x29f   : > { %v2361_v11 = vrot.slane %v2360_v19, 2  ;;  %v3158_v43 = vadd.f32 %v3157_v7, %v1891_v5  ;;  %v3145_v59 = vrot.slane %v1889_v18, 4  ;;  %v4169_v22 = vsel %vm3994_vm0, %v3675_v10, %v3674_v37  ;;  %v4766_v37 = vpop.f32.mrf.mxu1 }
 0x2a0   : > { %v3129_v4 = vrot.slane %v3128_v63, 2  ;;  %v2395_v47 = vrot.slane %v1764_v46, 4  ;;  %v3163_v51 = vrot.slane %v1892_v1, 4  ;;  %v3552_v41 = vmul.f32 0.125, %v2370_v6 }
 0x2a1   : > { %v2376_v17 = vadd.f32 %v2375_v39, %v2374_v0  ;;  %v2362_v25 = vadd.f32 %v2361_v11, %v2360_v19  ;;  %v2378_v44 = vadd.f32 %v2377_v33, %v1761_v13  ;;  %v4058_v16 = vsel %vm3996_vm1, %v3548_v60, %v4057_v12  ;;  %v1482_v42 = vpop.f32.mrf.mxu1 }
 0x2a2   : > { %v3130_v8 = vadd.f32 %v3129_v4, %v3128_v63  ;;  %v2391_v57 = vrot.slane %v2390_v53, 2  ;;  %v3159_v34 = vrot.slane %v3158_v43, 2  ;;  %v4170_v2 = vsel %vm3996_vm1, %v5990_v52, %v4169_v22 }
 0x2a3   : > { %v2363_v20 = vrot.slane %v2362_v25, 1  ;;  %v3146_v38 = vadd.f32 %v3145_v59, %v1889_v18  ;;  %v2396_v32 = vadd.f32 %v2395_v47, %v1764_v46  ;;  %v3550_v50 = vmul.f32 0.125, %v2358_v3  ;;  %v4639_v18 = vpop.f32.mrf.mxu0  ;;  %v4767_v63 = vpop.f32.mrf.mxu1 }
 0x2a4   : > { %v3131_v40 = vrot.slane %v3130_v8, 1  ;;  %v2379_v61 = vrot.slane %v2378_v44, 2  ;;  %v3164_v6 = vadd.f32 %v3163_v51, %v1892_v1  ;;  %v4059_v0 = vsel %vm3998_vm2, %v5992_v45, %v4058_v16 }
 0x2a5   : > { %v3678_v39 = vmul.f32 0.125, %v3126_v54  ;;  %v3144_v60 = vadd.f32 %v3143_v27, %v5988_v56  ;;  %v2364_v62 = vadd.f32 %v2363_v20, %v2362_v25  ;;  %v4171_v30 = vsel %vm3998_vm2, %v5994_v29, %v4170_v2 }
 0x2a6   : > { %v3132_v52 = vadd.f32 %v3131_v40, %v3130_v8  ;;  %v6017_v48 = vadd.f32 %v2391_v57, %v2390_v53  ;;  %v6019_v15 = vadd.f32 %v3159_v34, %v3158_v43  ;;  %v3680_v3 = vmul.f32 0.125, %v5997_v23 }
 0x2a7   : > { %v3551_v12 = vmul.f32 0.125, %v2364_v62  ;;  %v3147_v10 = vrot.slane %v3146_v38, 2  ;;  %v2397_v14 = vrot.slane %v2396_v32, 2  ;;  %v4060_v45 = vsel %vm4000_vm3, %v3550_v50, %v4059_v0 }
 0x2a8   : > { %v3679_v54 = vmul.f32 0.125, %v3132_v52  ;;  %v6023_v56 = vadd.f32 %v2379_v61, %v2378_v44  ;;  %v3165_v27 = vrot.slane %v3164_v6, 2  ;;  %v4172_v29 = vsel %vm4000_vm3, %v3678_v39, %v4171_v30  ;;  %v973_v52 = vpop.f32.mrf.mxu0 }
 0x2a9   : > { %v3553_v5 = vmul.f32 0.125, %v2376_v17  ;;  %v3681_v24 = vmul.f32 0.125, %v3144_v60  ;;  %v4061_v58 = vsel %vm4002_vm4, %v3551_v12, %v4060_v45  ;;  %v2393_v35 = vrot.slane %v6017_v48, 1 }
 0x2aa   : > { %v4062_v23 = vsel %vm4004_vm5, %v3552_v41, %v4061_v58  ;;  %v4173_v28 = vsel %vm4002_vm4, %v3679_v54, %v4172_v29  ;;  %v3161_v31 = vrot.slane %v6019_v15, 1  ;;  %v3148_v7 = vadd.f32 %v3147_v10, %v3146_v38 }
 0x2ab   : > { %v4063_v9 = vsel %vm4006_vm6, %v3553_v5, %v4062_v23  ;;  %v4174_v19 = vsel %vm4004_vm5, %v3680_v3, %v4173_v28  ;;  %v6033_v13 = vadd.f32 %v2397_v14, %v2396_v32  ;;  %v2381_v46 = vrot.slane %v6023_v56, 1 }
 0x2ac   : > { %4265 = vst [vmem:[%s5164_s14 + $0x40] sm:$0xff] %v4063_v9  ;;  %v4175_v53 = vsel %vm4006_vm6, %v3681_v24, %v4174_v19  ;;  %v3166_v1 = vadd.f32 %v3165_v27, %v3164_v6  ;;  %v958_v11 = vadd.f32 %v5970_v49, %v957_v21  ;;  %v1470_v43 = vadd.f32 %v5970_v49, %v1469_v36 }
 0x2ad   : > { %4281 = vst [vmem:[%s5164_s14 + $0xc0] sm:$0xff] %v4175_v53  ;;  %v979_v33 = vadd.f32 %v5970_v49, %v4638_v55  ;;  %v1491_v59 = vadd.f32 %v5970_v49, %v4766_v37  ;;  %v971_v22 = vadd.f32 %v5970_v49, %v970_v26  ;;  %v1483_v47 = vadd.f32 %v5970_v49, %v1482_v42  ;;  %v1485_v26 = vpop.f32.mrf.mxu1 }
 0x2ae   : > { %v1762_v4 = vmax.f32 %v958_v11, 0.0  ;;  %v982_v51 = vadd.f32 %v5970_v49, %v4639_v18  ;;  %v1494_v41 = vadd.f32 %v5970_v49, %v4767_v63  ;;  %v1890_v17 = vmax.f32 %v1470_v43, 0.0  ;;  %v4642_v18 = vpop.f32.mrf.mxu0 }
 0x2af   : > { %v1767_v25 = vmax.f32 %v979_v33, 0.0  ;;  %v1895_v44 = vmax.f32 %v1491_v59, 0.0  ;;  %v1765_v21 = vmax.f32 %v971_v22, 0.0  ;;  %v1893_v8 = vmax.f32 %v1483_v47, 0.0  ;;  %v4770_v33 = vpop.f32.mrf.mxu1 }
 0x2b0   : > { %v2383_v16 = vrot.slane %v1762_v4, 4  ;;  %v1768_v36 = vmax.f32 %v982_v51, 0.0  ;;  %v1896_v57 = vmax.f32 %v1494_v41, 0.0  ;;  %v3151_v34 = vrot.slane %v1890_v17, 4 }
 0x2b1   : > { %v2413_v2 = vrot.slane %v1767_v25, 4  ;;  %v3181_v20 = vrot.slane %v1895_v44, 4  ;;  %v2401_v38 = vrot.slane %v1765_v21, 4  ;;  %v3169_v55 = vrot.slane %v1893_v8, 4 }
 0x2b2   : > { %v2384_v32 = vadd.f32 %v2383_v16, %v1762_v4  ;;  %v2419_v37 = vrot.slane %v1768_v36, 4  ;;  %v3187_v50 = vrot.slane %v1896_v57, 4  ;;  %v3152_v40 = vadd.f32 %v3151_v34, %v1890_v17 }
 0x2b3   : > { %v2414_v61 = vadd.f32 %v2413_v2, %v1767_v25  ;;  %v3182_v6 = vadd.f32 %v3181_v20, %v1895_v44  ;;  %v2402_v0 = vadd.f32 %v2401_v38, %v1765_v21  ;;  %v3170_v60 = vadd.f32 %v3169_v55, %v1893_v8  ;;  %v986_v25 = vpop.f32.mrf.mxu0 }
 0x2b4   : > { %v2385_v39 = vrot.slane %v2384_v32, 2  ;;  %v2420_v62 = vadd.f32 %v2419_v37, %v1768_v36  ;;  %v3188_v30 = vadd.f32 %v3187_v50, %v1896_v57  ;;  %v3149_v3 = vrot.slane %v3148_v7, 1 }
 0x2b5   : > { %v3153_v12 = vrot.slane %v3152_v40, 2  ;;  %v2415_v10 = vrot.slane %v2414_v61, 2  ;;  %v3183_v14 = vrot.slane %v3182_v6, 2  ;;  %v2399_v42 = vrot.slane %v6033_v13, 1  ;;  %v4643_v37 = vpop.f32.mrf.mxu0 }
 0x2b6   : > { %v3167_v45 = vrot.slane %v3166_v1, 1  ;;  %v2386_v54 = vadd.f32 %v2385_v39, %v2384_v32  ;;  %v2403_v27 = vrot.slane %v2402_v0, 2  ;;  %v2394_v29 = vadd.f32 %v2393_v35, %v6017_v48 }
 0x2b7   : > { %v3154_v5 = vadd.f32 %v3153_v12, %v3152_v40  ;;  %v3171_v24 = vrot.slane %v3170_v60, 2  ;;  %v2421_v58 = vrot.slane %v2420_v62, 2  ;;  %v3162_v23 = vadd.f32 %v3161_v31, %v6019_v15 }
 0x2b8   : > { %v2387_v28 = vrot.slane %v2386_v54, 1  ;;  %v2416_v9 = vadd.f32 %v2415_v10, %v2414_v61  ;;  %v3189_v19 = vrot.slane %v3188_v30, 2  ;;  %v2382_v63 = vadd.f32 %v2381_v46, %v6023_v56  ;;  %v1498_v46 = vpop.f32.mrf.mxu1 }
 0x2b9   : > { %v3150_v53 = vadd.f32 %v3149_v3, %v3148_v7  ;;  %v3155_v11 = vrot.slane %v3154_v5, 1  ;;  %v3184_v43 = vadd.f32 %v3183_v14, %v3182_v6  ;;  %v2400_v59 = vadd.f32 %v2399_v42, %v6033_v13 }
 0x2ba   : > { %v3168_v22 = vadd.f32 %v3167_v45, %v3166_v1  ;;  %v2388_v4 = vadd.f32 %v2387_v28, %v2386_v54  ;;  %v2404_v48 = vadd.f32 %v2403_v27, %v2402_v0  ;;  %v3172_v47 = vadd.f32 %v3171_v24, %v3170_v60  ;;  %v4771_v0 = vpop.f32.mrf.mxu1 }
 0x2bb   : > { %v3156_v35 = vadd.f32 %v3155_v11, %v3154_v5  ;;  %v2422_v51 = vadd.f32 %v2421_v58, %v2420_v62  ;;  %v3556_v41 = vmul.f32 0.125, %v2394_v29  ;;  %v3684_v15 = vmul.f32 0.125, %v3162_v23 }
 0x2bc   : > { %v2417_v31 = vrot.slane %v2416_v9, 1  ;;  %v3190_v17 = vadd.f32 %v3189_v19, %v3188_v30  ;;  %v3554_v44 = vmul.f32 0.125, %v2382_v63  ;;  %v3682_v21 = vmul.f32 0.125, %v3150_v53  ;;  %v1501_v11 = vpop.f32.mrf.mxu1 }
 0x2bd   : > { %v3555_v56 = vmul.f32 0.125, %v2388_v4  ;;  %v3185_v7 = vrot.slane %v3184_v43, 1  ;;  %v6052_v16 = vmul.f32 0.125, %v2400_v59  ;;  %v6054_v8 = vmul.f32 0.125, %v3168_v22 }
 0x2be   : > { %v3683_v13 = vmul.f32 0.125, %v3156_v35  ;;  %v2405_v1 = vrot.slane %v2404_v48, 1  ;;  %v3173_v36 = vrot.slane %v3172_v47, 1  ;;  %v2423_v57 = vrot.slane %v2422_v51, 1 }
 0x2bf   : > { %v974_v34 = vadd.f32 %v5970_v49, %v973_v52  ;;  %v1486_v2 = vadd.f32 %v5970_v49, %v1485_v26  ;;  %v2418_v20 = vadd.f32 %v2417_v31, %v2416_v9  ;;  %v3191_v38 = vrot.slane %v3190_v17, 1  ;;  %v6066_v9 = vpop.f32.mrf.mxu0 }
 0x2c0   : > { %v995_v32 = vadd.f32 %v5970_v49, %v4642_v18  ;;  %v1507_v55 = vadd.f32 %v5970_v49, %v4770_v33  ;;  %v4064_v50 = vsel %vm3994_vm0, %v3555_v56, %v3554_v44  ;;  %v3186_v40 = vadd.f32 %v3185_v7, %v3184_v43 }
 0x2c1   : > { %v1766_v61 = vmax.f32 %v974_v34, 0.0  ;;  %v1894_v6 = vmax.f32 %v1486_v2, 0.0  ;;  %v4176_v39 = vsel %vm3994_vm0, %v3683_v13, %v3682_v21  ;;  %v987_v30 = vadd.f32 %v5970_v49, %v986_v25 }
 0x2c2   : > { %v1771_v60 = vmax.f32 %v995_v32, 0.0  ;;  %v1899_v62 = vmax.f32 %v1507_v55, 0.0  ;;  %v1499_v12 = vadd.f32 %v5970_v49, %v1498_v46  ;;  %v998_v10 = vadd.f32 %v5970_v49, %v4643_v37  ;;  %v4646_v46 = vpop.f32.mrf.mxu0  ;;  %v4774_v55 = vpop.f32.mrf.mxu1 }
 0x2c3   : > { %v2407_v52 = vrot.slane %v1766_v61, 4  ;;  %v3175_v3 = vrot.slane %v1894_v6, 4  ;;  %v1769_v42 = vmax.f32 %v987_v30, 0.0  ;;  %v1510_v45 = vadd.f32 %v5970_v49, %v4771_v0 }
 0x2c4   : > { %v2437_v14 = vrot.slane %v1771_v60, 4  ;;  %v3205_v26 = vrot.slane %v1899_v62, 4  ;;  %v1897_v29 = vmax.f32 %v1499_v12, 0.0  ;;  %v1772_v5 = vmax.f32 %v998_v10, 0.0 }
 0x2c5   : > { %v2408_v54 = vadd.f32 %v2407_v52, %v1766_v61  ;;  %v3176_v27 = vadd.f32 %v3175_v3, %v1894_v6  ;;  %v2425_v23 = vrot.slane %v1769_v42, 4  ;;  %v1900_v28 = vmax.f32 %v1510_v45, 0.0  ;;  %v1002_v61 = vpop.f32.mrf.mxu0 }
 0x2c6   : > { %v2438_v24 = vadd.f32 %v2437_v14, %v1771_v60  ;;  %v3206_v58 = vadd.f32 %v3205_v26, %v1899_v62  ;;  %v3193_v63 = vrot.slane %v1897_v29, 4  ;;  %v2443_v53 = vrot.slane %v1772_v5, 4 }
 0x2c7   : > { %v2409_v19 = vrot.slane %v2408_v54, 2  ;;  %v3177_v18 = vrot.slane %v3176_v27, 2  ;;  %v2406_v43 = vadd.f32 %v2405_v1, %v2404_v48  ;;  %v3174_v33 = vadd.f32 %v3173_v36, %v3172_v47  ;;  %v4647_v45 = vpop.f32.mrf.mxu0 }
 0x2c8   : > { %v2424_v59 = vadd.f32 %v2423_v57, %v2422_v51  ;;  %v3211_v22 = vrot.slane %v1900_v28, 4  ;;  %v4065_v4 = vsel %vm3996_vm1, %v3556_v41, %v4064_v50  ;;  %v2439_v25 = vrot.slane %v2438_v24, 2 }
 0x2c9   : > { %v2410_v35 = vadd.f32 %v2409_v19, %v2408_v54  ;;  %v3178_v31 = vadd.f32 %v3177_v18, %v3176_v27  ;;  %v4177_v44 = vsel %vm3996_vm1, %v3684_v15, %v4176_v39  ;;  %v3192_v21 = vadd.f32 %v3191_v38, %v3190_v17 }
 0x2ca   : > { %v3207_v56 = vrot.slane %v3206_v58, 2  ;;  %v2426_v7 = vadd.f32 %v2425_v23, %v1769_v42  ;;  %v3194_v2 = vadd.f32 %v3193_v63, %v1897_v29  ;;  %v2444_v32 = vadd.f32 %v2443_v53, %v1772_v5 }
 0x2cb   : > { %v2411_v13 = vrot.slane %v2410_v35, 1  ;;  %v3179_v34 = vrot.slane %v3178_v31, 1  ;;  %v3558_v48 = vmul.f32 0.125, %v2406_v43  ;;  %v4066_v47 = vsel %vm3998_vm2, %v6052_v16, %v4065_v4  ;;  %v1514_v16 = vpop.f32.mrf.mxu1 }
 0x2cc   : > { %v3686_v51 = vmul.f32 0.125, %v3174_v33  ;;  %v3212_v41 = vadd.f32 %v3211_v22, %v1900_v28  ;;  %v4178_v1 = vsel %vm3998_vm2, %v6054_v8, %v4177_v44  ;;  %v6074_v17 = vadd.f32 %v2439_v25, %v2438_v24 }
 0x2cd   : > { %v2412_v36 = vadd.f32 %v2411_v13, %v2410_v35  ;;  %v3180_v15 = vadd.f32 %v3179_v34, %v3178_v31  ;;  %v3560_v57 = vmul.f32 0.125, %v2418_v20  ;;  %v3688_v38 = vmul.f32 0.125, %v3186_v40  ;;  %v4775_v24 = vpop.f32.mrf.mxu1 }
 0x2ce   : > { %v6076_v37 = vadd.f32 %v3207_v56, %v3206_v58  ;;  %v2427_v50 = vrot.slane %v2426_v7, 2  ;;  %v3195_v39 = vrot.slane %v3194_v2, 2  ;;  %v2445_v60 = vrot.slane %v2444_v32, 2 }
 0x2cf   : > { %v3559_v6 = vmul.f32 0.125, %v2412_v36  ;;  %v3687_v0 = vmul.f32 0.125, %v3180_v15  ;;  %v4067_v62 = vsel %vm4000_vm3, %v3558_v48, %v4066_v47  ;;  %v4179_v30 = vsel %vm4000_vm3, %v3686_v51, %v4178_v1 }
 0x2d0   : > { %v3561_v8 = vmul.f32 0.125, %v2424_v59  ;;  %v3213_v52 = vrot.slane %v3212_v41, 2  ;;  %v3689_v3 = vmul.f32 0.125, %v3192_v21  ;;  %v2441_v12 = vrot.slane %v6074_v17, 1 }
 0x2d1   : > { %v4068_v20 = vsel %vm4002_vm4, %v3559_v6, %v4067_v62  ;;  %v4180_v40 = vsel %vm4002_vm4, %v3687_v0, %v4179_v30  ;;  %v3209_v26 = vrot.slane %v6076_v37, 1  ;;  %v2428_v42 = vadd.f32 %v2427_v50, %v2426_v7  ;;  %v1005_v50 = vpop.f32.mrf.mxu0 }
 0x2d2   : > { %v4069_v10 = vsel %vm4004_vm5, %v3560_v57, %v4068_v20  ;;  %v4181_v14 = vsel %vm4004_vm5, %v3688_v38, %v4180_v40  ;;  %v3196_v29 = vadd.f32 %v3195_v39, %v3194_v2  ;;  %v2446_v5 = vadd.f32 %v2445_v60, %v2444_v32 }
 0x2d3   : > { %v4070_v54 = vsel %vm4006_vm6, %v3561_v8, %v4069_v10  ;;  %v4182_v27 = vsel %vm4006_vm6, %v3689_v3, %v4181_v14  ;;  %v3214_v58 = vadd.f32 %v3213_v52, %v3212_v41  ;;  %v990_v23 = vadd.f32 %v5970_v49, %v6066_v9 }
 0x2d4   : > { %4266 = vst [vmem:[%s5164_s14 + $0x48] sm:$0xff] %v4070_v54  ;;  %4282 = vst [vmem:[%s5164_s14 + $0xc8] sm:$0xff] %v4182_v27  ;;  %v1502_v28 = vadd.f32 %v5970_v49, %v1501_v11  ;;  %v1011_v19 = vadd.f32 %v5970_v49, %v4646_v46  ;;  %v1523_v18 = vadd.f32 %v5970_v49, %v4774_v55  ;;  %v2429_v47 = vrot.slane %v2428_v42, 1 }
 0x2d5   : > { %v1003_v63 = vadd.f32 %v5970_v49, %v1002_v61  ;;  %v1515_v53 = vadd.f32 %v5970_v49, %v1514_v16  ;;  %v1014_v43 = vadd.f32 %v5970_v49, %v4647_v45  ;;  %v1770_v33 = vmax.f32 %v990_v23, 0.0  ;;  %v1517_v61 = vpop.f32.mrf.mxu1  ;;  %v4650_v45 = vpop.f32.mrf.mxu0 }
 0x2d6   : > { %v1898_v59 = vmax.f32 %v1502_v28, 0.0  ;;  %v1775_v22 = vmax.f32 %v1011_v19, 0.0  ;;  %v1526_v4 = vadd.f32 %v5970_v49, %v4775_v24  ;;  %v1903_v35 = vmax.f32 %v1523_v18, 0.0 }
 0x2d7   : > { %v1773_v31 = vmax.f32 %v1003_v63, 0.0  ;;  %v1901_v9 = vmax.f32 %v1515_v53, 0.0  ;;  %v1776_v25 = vmax.f32 %v1014_v43, 0.0  ;;  %v2431_v11 = vrot.slane %v1770_v33, 4  ;;  %v4778_v54 = vpop.f32.mrf.mxu1 }
 0x2d8   : > { %v3199_v44 = vrot.slane %v1898_v59, 4  ;;  %v2461_v21 = vrot.slane %v1775_v22, 4  ;;  %v1904_v56 = vmax.f32 %v1526_v4, 0.0  ;;  %v3229_v7 = vrot.slane %v1903_v35, 4 }
 0x2d9   : > { %v2449_v46 = vrot.slane %v1773_v31, 4  ;;  %v3217_v13 = vrot.slane %v1901_v9, 4  ;;  %v2467_v34 = vrot.slane %v1776_v25, 4  ;;  %v2432_v2 = vadd.f32 %v2431_v11, %v1770_v33 }
 0x2da   : > { %v3200_v32 = vadd.f32 %v3199_v44, %v1898_v59  ;;  %v2462_v55 = vadd.f32 %v2461_v21, %v1775_v22  ;;  %v3235_v48 = vrot.slane %v1904_v56, 4  ;;  %v3230_v51 = vadd.f32 %v3229_v7, %v1903_v35 }
 0x2db   : > { %v2450_v41 = vadd.f32 %v2449_v46, %v1773_v31  ;;  %v3218_v1 = vadd.f32 %v3217_v13, %v1901_v9  ;;  %v2433_v36 = vrot.slane %v2432_v2, 2  ;;  %v2468_v38 = vadd.f32 %v2467_v34, %v1776_v25 }
 0x2dc   : > { %v3201_v15 = vrot.slane %v3200_v32, 2  ;;  %v2463_v57 = vrot.slane %v2462_v55, 2  ;;  %v3197_v6 = vrot.slane %v3196_v29, 1  ;;  %v2447_v0 = vrot.slane %v2446_v5, 1 }
 0x2dd   : > { %v3236_v39 = vadd.f32 %v3235_v48, %v1904_v56  ;;  %v3215_v60 = vrot.slane %v3214_v58, 1  ;;  %v2434_v16 = vadd.f32 %v2433_v36, %v2432_v2  ;;  %v3231_v62 = vrot.slane %v3230_v51, 2 }
 0x2de   : > { %v2451_v30 = vrot.slane %v2450_v41, 2  ;;  %v2442_v8 = vadd.f32 %v2441_v12, %v6074_v17  ;;  %v3202_v52 = vadd.f32 %v3201_v15, %v3200_v32  ;;  %v3219_v3 = vrot.slane %v3218_v1, 2 }
 0x2df   : > { %v3210_v20 = vadd.f32 %v3209_v26, %v6076_v37  ;;  %v2430_v40 = vadd.f32 %v2429_v47, %v2428_v42  ;;  %v2464_v10 = vadd.f32 %v2463_v57, %v2462_v55  ;;  %v2469_v14 = vrot.slane %v2468_v38, 2  ;;  %v1018_v26 = vpop.f32.mrf.mxu0  ;;  %v1530_v42 = vpop.f32.mrf.mxu1 }
 0x2e0   : > { %v3198_v27 = vadd.f32 %v3197_v6, %v3196_v29  ;;  %v2448_v24 = vadd.f32 %v2447_v0, %v2446_v5  ;;  %v2435_v23 = vrot.slane %v2434_v16, 1  ;;  %v3237_v28 = vrot.slane %v3236_v39, 2 }
 0x2e1   : > { %v3216_v19 = vadd.f32 %v3215_v60, %v3214_v58  ;;  %v3232_v18 = vadd.f32 %v3231_v62, %v3230_v51  ;;  %v2452_v63 = vadd.f32 %v2451_v30, %v2450_v41  ;;  %v3564_v53 = vmul.f32 0.125, %v2442_v8  ;;  %v4651_v34 = vpop.f32.mrf.mxu0  ;;  %v4779_v2 = vpop.f32.mrf.mxu1 }
 0x2e2   : > { %v3203_v43 = vrot.slane %v3202_v52, 1  ;;  %v3220_v33 = vadd.f32 %v3219_v3, %v3218_v1  ;;  %v6101_v17 = vmul.f32 0.125, %v3210_v20  ;;  %v3562_v12 = vmul.f32 0.125, %v2430_v40 }
 0x2e3   : > { %v2465_v59 = vrot.slane %v2464_v10, 1  ;;  %v2470_v37 = vadd.f32 %v2469_v14, %v2468_v38  ;;  %v3690_v22 = vmul.f32 0.125, %v3198_v27  ;;  %v6103_v4 = vmul.f32 0.125, %v2448_v24  ;;  %v1021_v40 = vpop.f32.mrf.mxu0 }
 0x2e4   : > { %v2436_v29 = vadd.f32 %v2435_v23, %v2434_v16  ;;  %v6105_v5 = vadd.f32 %v3237_v28, %v3236_v39  ;;  %v6107_v35 = vmul.f32 0.125, %v3216_v19  ;;  %v3233_v58 = vrot.slane %v3232_v18, 1 }
 0x2e5   : > { %v2453_v31 = vrot.slane %v2452_v63, 1  ;;  %v1006_v9 = vadd.f32 %v5970_v49, %v1005_v50  ;;  %v3204_v25 = vadd.f32 %v3203_v43, %v3202_v52  ;;  %v3221_v11 = vrot.slane %v3220_v33, 1 }
 0x2e6   : > { %v1518_v44 = vadd.f32 %v5970_v49, %v1517_v61  ;;  %v1027_v21 = vadd.f32 %v5970_v49, %v4650_v45  ;;  %v2466_v56 = vadd.f32 %v2465_v59, %v2464_v10  ;;  %v2471_v7 = vrot.slane %v2470_v37, 1  ;;  %v1533_v10 = vpop.f32.mrf.mxu1 }
 0x2e7   : > { %v1774_v46 = vmax.f32 %v1006_v9, 0.0  ;;  %v1539_v13 = vadd.f32 %v5970_v49, %v4778_v54  ;;  %v3563_v32 = vmul.f32 0.125, %v2436_v29  ;;  %v3239_v55 = vrot.slane %v6105_v5, 1  ;;  %v4654_v29 = vpop.f32.mrf.mxu0 }
 0x2e8   : > { %v1902_v48 = vmax.f32 %v1518_v44, 0.0  ;;  %v1779_v47 = vmax.f32 %v1027_v21, 0.0  ;;  %v1019_v1 = vadd.f32 %v5970_v49, %v1018_v26  ;;  %v1531_v36 = vadd.f32 %v5970_v49, %v1530_v42 }
 0x2e9   : > { %v2455_v51 = vrot.slane %v1774_v46, 4  ;;  %v1907_v41 = vmax.f32 %v1539_v13, 0.0  ;;  %v3691_v15 = vmul.f32 0.125, %v3204_v25  ;;  %v1030_v38 = vadd.f32 %v5970_v49, %v4651_v34 }
 0x2ea   : > { %v3223_v57 = vrot.slane %v1902_v48, 4  ;;  %v1542_v50 = vadd.f32 %v5970_v49, %v4779_v2  ;;  %v3234_v61 = vadd.f32 %v3233_v58, %v3232_v18  ;;  %v1777_v0 = vmax.f32 %v1019_v1, 0.0  ;;  %v1034_v2 = vpop.f32.mrf.mxu0 }
 0x2eb   : > { %v2456_v6 = vadd.f32 %v2455_v51, %v1774_v46  ;;  %v1905_v39 = vmax.f32 %v1531_v36, 0.0  ;;  %v2454_v60 = vadd.f32 %v2453_v31, %v2452_v63  ;;  %v2485_v62 = vrot.slane %v1779_v47, 4 }
 0x2ec   : > { %v3224_v16 = vadd.f32 %v3223_v57, %v1902_v48  ;;  %v3253_v30 = vrot.slane %v1907_v41, 4  ;;  %v4071_v8 = vsel %vm3994_vm0, %v3563_v32, %v3562_v12  ;;  %v1780_v3 = vmax.f32 %v1030_v38, 0.0 }
 0x2ed   : > { %v2457_v52 = vrot.slane %v2456_v6, 2  ;;  %v1908_v20 = vmax.f32 %v1542_v50, 0.0  ;;  %v4183_v14 = vsel %vm3994_vm0, %v3691_v15, %v3690_v22  ;;  %v2473_v54 = vrot.slane %v1777_v0, 4  ;;  %v4782_v22 = vpop.f32.mrf.mxu1 }
 0x2ee   : > { %v3225_v45 = vrot.slane %v3224_v16, 2  ;;  %v3241_v49 = vrot.slane %v1905_v39, 4  ;;  %v3568_v27 = vmul.f32 0.125, %v2466_v56  ;;  %v3222_v24 = vadd.f32 %v3221_v11, %v3220_v33 }
 0x2ef   : > { %v2472_v23 = vadd.f32 %v2471_v7, %v2470_v37  ;;  %v2458_v28 = vadd.f32 %v2457_v52, %v2456_v6  ;;  %v4072_v19 = vsel %vm3996_vm1, %v3564_v53, %v4071_v8  ;;  %v2486_v63 = vadd.f32 %v2485_v62, %v1779_v47  ;;  %v1546_v32 = vpop.f32.mrf.mxu1 }
 0x2f0   : > { %v3226_v18 = vadd.f32 %v3225_v45, %v3224_v16  ;;  %v3254_v43 = vadd.f32 %v3253_v30, %v1907_v41  ;;  %v4184_v12 = vsel %vm3996_vm1, %v6101_v17, %v4183_v14  ;;  %v2491_v26 = vrot.slane %v1780_v3, 4  ;;  %v6140_v30 = vld [vmem:[%s6371_s3] ss:$0 sm:$0xff] }
 0x2f1   : > { %v2459_v59 = vrot.slane %v2458_v28, 1  ;;  %v3259_v42 = vrot.slane %v1908_v20, 4  ;;  %v3566_v58 = vmul.f32 0.125, %v2454_v60  ;;  %v2474_v9 = vadd.f32 %v2473_v54, %v1777_v0  ;;  %v4655_v0 = vpop.f32.mrf.mxu0 }
 0x2f2   : > { %v3227_v31 = vrot.slane %v3226_v18, 1  ;;  %v3242_v25 = vadd.f32 %v3241_v49, %v1905_v39  ;;  %v4073_v33 = vsel %vm3998_vm2, %v6103_v4, %v4072_v19  ;;  %v3694_v37 = vmul.f32 0.125, %v3222_v24  ;;  %v4783_v39 = vpop.f32.mrf.mxu1 }
 0x2f3   : > { %v3240_v53 = vadd.f32 %v3239_v55, %v6105_v5  ;;  %v2460_v11 = vadd.f32 %v2459_v59, %v2458_v28  ;;  %v4185_v44 = vsel %vm3998_vm2, %v6107_v35, %v4184_v12  ;;  %v2487_v21 = vrot.slane %v2486_v63, 2 }
 0x2f4   : > { %v3228_v17 = vadd.f32 %v3227_v31, %v3226_v18  ;;  %v3255_v56 = vrot.slane %v3254_v43, 2  ;;  %v3696_v7 = vmul.f32 0.125, %v3234_v61  ;;  %v2492_v13 = vadd.f32 %v2491_v26, %v1780_v3 }
 0x2f5   : > { %v3567_v46 = vmul.f32 0.125, %v2460_v11  ;;  %v3260_v34 = vadd.f32 %v3259_v42, %v1908_v20  ;;  %v4074_v48 = vsel %vm4000_vm3, %v3566_v58, %v4073_v33  ;;  %v2475_v4 = vrot.slane %v2474_v9, 2 }
 0x2f6   : > { %v3695_v47 = vmul.f32 0.125, %v3228_v17  ;;  %v3243_v51 = vrot.slane %v3242_v25, 2  ;;  %v4186_v5 = vsel %vm4000_vm3, %v3694_v37, %v4185_v44  ;;  %v3569_v55 = vmul.f32 0.125, %v2472_v23 }
 0x2f7   : > { %v3697_v41 = vmul.f32 0.125, %v3240_v53  ;;  %v4075_v35 = vsel %vm4002_vm4, %v3567_v46, %v4074_v48  ;;  %v2488_v15 = vadd.f32 %v2487_v21, %v2486_v63  ;;  %v3256_v57 = vadd.f32 %v3255_v56, %v3254_v43  ;;  %v1037_v46 = vpop.f32.mrf.mxu0 }
 0x2f8   : > { %v4076_v1 = vsel %vm4004_vm5, %v3568_v27, %v4075_v35  ;;  %v4187_v36 = vsel %vm4002_vm4, %v3695_v47, %v4186_v5  ;;  %v2493_v61 = vrot.slane %v2492_v13, 2  ;;  %v3261_v6 = vrot.slane %v3260_v34, 2 }
 0x2f9   : > { %v4077_v38 = vsel %vm4006_vm6, %v3569_v55, %v4076_v1  ;;  %v4188_v50 = vsel %vm4004_vm5, %v3696_v7, %v4187_v36  ;;  %v2476_v16 = vadd.f32 %v2475_v4, %v2474_v9  ;;  %v3244_v62 = vadd.f32 %v3243_v51, %v3242_v25  ;;  %v1549_v51 = vpop.f32.mrf.mxu1 }
 0x2fa   : > { %4267 = vst [vmem:[%s5164_s14 + $0x50] sm:$0xff] %v4077_v38  ;;  %v4189_v60 = vsel %vm4006_vm6, %v3697_v41, %v4188_v50  ;;  %v1022_v8 = vadd.f32 %v6140_v30, %v1021_v40  ;;  %v1534_v52 = vadd.f32 %v6140_v30, %v1533_v10  ;;  %v1043_v3 = vadd.f32 %v6140_v30, %v4654_v29 }
 0x2fb   : > { %4283 = vst [vmem:[%s5164_s14 + $0xd0] sm:$0xff] %v4189_v60  ;;  %v1555_v20 = vadd.f32 %v6140_v30, %v4782_v22  ;;  %v1035_v14 = vadd.f32 %v6140_v30, %v1034_v2  ;;  %v1547_v54 = vadd.f32 %v6140_v30, %v1546_v32  ;;  %v1046_v49 = vadd.f32 %v6140_v30, %v4655_v0 }
 0x2fc   : > { %v1778_v45 = vmax.f32 %v1022_v8, 0.0  ;;  %v1558_v27 = vadd.f32 %v6140_v30, %v4783_v39  ;;  %v1906_v24 = vmax.f32 %v1534_v52, 0.0  ;;  %v1783_v23 = vmax.f32 %v1043_v3, 0.0  ;;  %v4786_v3 = vpop.f32.mrf.mxu1 }
 0x2fd   : > { %v1911_v28 = vmax.f32 %v1555_v20, 0.0  ;;  %v1781_v40 = vmax.f32 %v1035_v14, 0.0  ;;  %v1909_v18 = vmax.f32 %v1547_v54, 0.0  ;;  %v1784_v10 = vmax.f32 %v1046_v49, 0.0 }
 0x2fe   : > { %v2479_v19 = vrot.slane %v1778_v45, 4  ;;  %v1912_v63 = vmax.f32 %v1558_v27, 0.0  ;;  %v3247_v43 = vrot.slane %v1906_v24, 4  ;;  %v2509_v12 = vrot.slane %v1783_v23, 4 }
 0x2ff   : > { %v3277_v59 = vrot.slane %v1911_v28, 4  ;;  %v2497_v26 = vrot.slane %v1781_v40, 4  ;;  %v2494_v42 = vadd.f32 %v2493_v61, %v2492_v13  ;;  %v3262_v29 = vadd.f32 %v3261_v6, %v3260_v34  ;;  %v4658_v61 = vpop.f32.mrf.mxu0 }
 0x300   : > { %v2480_v22 = vadd.f32 %v2479_v19, %v1778_v45  ;;  %v3265_v58 = vrot.slane %v1909_v18, 4  ;;  %v2489_v31 = vrot.slane %v2488_v15, 1  ;;  %v3248_v9 = vadd.f32 %v3247_v43, %v1906_v24 }
 0x301   : > { %v2515_v25 = vrot.slane %v1784_v10, 4  ;;  %v3283_v33 = vrot.slane %v1912_v63, 4  ;;  %v3257_v37 = vrot.slane %v3256_v57, 1  ;;  %v2510_v11 = vadd.f32 %v2509_v12, %v1783_v23 }
 0x302   : > { %v2481_v53 = vrot.slane %v2480_v22, 2  ;;  %v3278_v44 = vadd.f32 %v3277_v59, %v1911_v28  ;;  %v2477_v17 = vrot.slane %v2476_v16, 1  ;;  %v3245_v21 = vrot.slane %v3244_v62, 1 }
 0x303   : > { %v3249_v56 = vrot.slane %v3248_v9, 2  ;;  %v2498_v7 = vadd.f32 %v2497_v26, %v1781_v40  ;;  %v2495_v2 = vrot.slane %v2494_v42, 1  ;;  %v3263_v32 = vrot.slane %v3262_v29, 1 }
 0x304   : > { %v2482_v48 = vadd.f32 %v2481_v53, %v2480_v22  ;;  %v3266_v13 = vadd.f32 %v3265_v58, %v1909_v18  ;;  %v2516_v47 = vadd.f32 %v2515_v25, %v1784_v10  ;;  %v3284_v4 = vadd.f32 %v3283_v33, %v1912_v63  ;;  %v1562_v63 = vpop.f32.mrf.mxu1 }
 0x305   : > { %v3250_v34 = vadd.f32 %v3249_v56, %v3248_v9  ;;  %v2490_v5 = vadd.f32 %v2489_v31, %v2488_v15  ;;  %v3258_v55 = vadd.f32 %v3257_v37, %v3256_v57  ;;  %v2511_v41 = vrot.slane %v2510_v11, 2 }
 0x306   : > { %v3279_v35 = vrot.slane %v3278_v44, 2  ;;  %v2478_v1 = vadd.f32 %v2477_v17, %v2476_v16  ;;  %v3246_v36 = vadd.f32 %v3245_v21, %v3244_v62  ;;  %v2483_v38 = vrot.slane %v2482_v48, 1  ;;  %v1050_v16 = vpop.f32.mrf.mxu0  ;;  %v4787_v21 = vpop.f32.mrf.mxu1 }
 0x307   : > { %v2499_v50 = vrot.slane %v2498_v7, 2  ;;  %v2496_v6 = vadd.f32 %v2495_v2, %v2494_v42  ;;  %v3264_v0 = vadd.f32 %v3263_v32, %v3262_v29  ;;  %v3251_v39 = vrot.slane %v3250_v34, 1 }
 0x308   : > { %v3267_v60 = vrot.slane %v3266_v13, 2  ;;  %v2517_v8 = vrot.slane %v2516_v47, 2  ;;  %v3285_v52 = vrot.slane %v3284_v4, 2  ;;  %v3572_v20 = vmul.f32 0.125, %v2490_v5  ;;  %v4659_v31 = vpop.f32.mrf.mxu0 }
 0x309   : > { %v3700_v14 = vmul.f32 0.125, %v3258_v55  ;;  %v2512_v45 = vadd.f32 %v2511_v41, %v2510_v11  ;;  %v3280_v54 = vadd.f32 %v3279_v35, %v3278_v44  ;;  %v3570_v15 = vmul.f32 0.125, %v2478_v1 }
 0x30a   : > { %v3698_v57 = vmul.f32 0.125, %v3246_v36  ;;  %v2484_v49 = vadd.f32 %v2483_v38, %v2482_v48  ;;  %v2500_v27 = vadd.f32 %v2499_v50, %v2498_v7  ;;  %v6151_v62 = vmul.f32 0.125, %v2496_v6  ;;  %v6164_v55 = vpop.f32.mrf.mxu0  ;;  %v1565_v38 = vpop.f32.mrf.mxu1 }
 0x30b   : > { %v6153_v24 = vmul.f32 0.125, %v3264_v0  ;;  %v3252_v23 = vadd.f32 %v3251_v39, %v3250_v34  ;;  %v3268_v28 = vadd.f32 %v3267_v60, %v3266_v13  ;;  %v2518_v40 = vadd.f32 %v2517_v8, %v2516_v47 }
 0x30c   : > { %v3286_v19 = vadd.f32 %v3285_v52, %v3284_v4  ;;  %v1038_v18 = vadd.f32 %v6140_v30, %v1037_v46  ;;  %v1550_v10 = vadd.f32 %v6140_v30, %v1549_v51  ;;  %v2513_v43 = vrot.slane %v2512_v45, 1 }
 0x30d   : > { %v3281_v12 = vrot.slane %v3280_v54, 1  ;;  %v1059_v59 = vadd.f32 %v6140_v30, %v4658_v61  ;;  %v1571_v26 = vadd.f32 %v6140_v30, %v4786_v3  ;;  %v3571_v42 = vmul.f32 0.125, %v2484_v49 }
 0x30e   : > { %v2501_v29 = vrot.slane %v2500_v27, 1  ;;  %v1782_v22 = vmax.f32 %v1038_v18, 0.0  ;;  %v1910_v58 = vmax.f32 %v1550_v10, 0.0  ;;  %v3699_v9 = vmul.f32 0.125, %v3252_v23  ;;  %v4790_v10 = vpop.f32.mrf.mxu1 }
 0x30f   : > { %v1787_v25 = vmax.f32 %v1059_v59, 0.0  ;;  %v1915_v33 = vmax.f32 %v1571_v26, 0.0  ;;  %v1051_v37 = vadd.f32 %v6140_v30, %v1050_v16  ;;  %v3269_v53 = vrot.slane %v3268_v28, 1 }
 0x310   : > { %v2503_v11 = vrot.slane %v1782_v22, 4  ;;  %v3271_v44 = vrot.slane %v1910_v58, 4  ;;  %v1563_v17 = vadd.f32 %v6140_v30, %v1562_v63  ;;  %v2514_v56 = vadd.f32 %v2513_v43, %v2512_v45 }
 0x311   : > { %v2519_v7 = vrot.slane %v2518_v40, 1  ;;  %v3287_v46 = vrot.slane %v3286_v19, 1  ;;  %v1062_v2 = vadd.f32 %v6140_v30, %v4659_v31  ;;  %v3282_v32 = vadd.f32 %v3281_v12, %v3280_v54 }
 0x312   : > { %v2504_v48 = vadd.f32 %v2503_v11, %v1782_v22  ;;  %v3272_v13 = vadd.f32 %v3271_v44, %v1910_v58  ;;  %v2533_v34 = vrot.slane %v1787_v25, 4  ;;  %v4078_v47 = vsel %vm3994_vm0, %v3571_v42, %v3570_v15 }
 0x313   : > { %v4190_v4 = vsel %vm3994_vm0, %v3699_v9, %v3698_v57  ;;  %v3301_v51 = vrot.slane %v1915_v33, 4  ;;  %v1785_v5 = vmax.f32 %v1051_v37, 0.0  ;;  %v1913_v1 = vmax.f32 %v1563_v17, 0.0  ;;  %v4662_v57 = vpop.f32.mrf.mxu0 }
 0x314   : > { %v2505_v41 = vrot.slane %v2504_v48, 2  ;;  %v3273_v35 = vrot.slane %v3272_v13, 2  ;;  %v1574_v36 = vadd.f32 %v6140_v30, %v4787_v21  ;;  %v2502_v50 = vadd.f32 %v2501_v29, %v2500_v27 }
 0x315   : > { %v3270_v61 = vadd.f32 %v3269_v53, %v3268_v28  ;;  %v2520_v6 = vadd.f32 %v2519_v7, %v2518_v40  ;;  %v1788_v0 = vmax.f32 %v1062_v2, 0.0  ;;  %v4079_v39 = vsel %vm3996_vm1, %v3572_v20, %v4078_v47  ;;  %v1066_v29 = vpop.f32.mrf.mxu0 }
 0x316   : > { %v2506_v60 = vadd.f32 %v2505_v41, %v2504_v48  ;;  %v3274_v8 = vadd.f32 %v3273_v35, %v3272_v13  ;;  %v2534_v52 = vadd.f32 %v2533_v34, %v1787_v25  ;;  %v4191_v3 = vsel %vm3996_vm1, %v3700_v14, %v4190_v4  ;;  %v1578_v25 = vpop.f32.mrf.mxu1 }
 0x317   : > { %v3288_v45 = vadd.f32 %v3287_v46, %v3286_v19  ;;  %v3302_v54 = vadd.f32 %v3301_v51, %v1915_v33  ;;  %v2521_v15 = vrot.slane %v1785_v5, 4  ;;  %v3289_v23 = vrot.slane %v1913_v1, 4  ;;  %v4663_v2 = vpop.f32.mrf.mxu0 }
 0x318   : > { %v2507_v49 = vrot.slane %v2506_v60, 1  ;;  %v3275_v16 = vrot.slane %v3274_v8, 1  ;;  %v1916_v18 = vmax.f32 %v1574_v36, 0.0  ;;  %v3574_v27 = vmul.f32 0.125, %v2502_v50  ;;  %v4791_v47 = vpop.f32.mrf.mxu1 }
 0x319   : > { %v4080_v28 = vsel %vm3998_vm2, %v6151_v62, %v4079_v39  ;;  %v3702_v40 = vmul.f32 0.125, %v3270_v61  ;;  %v2539_v20 = vrot.slane %v1788_v0, 4  ;;  %v4192_v63 = vsel %vm3998_vm2, %v6153_v24, %v4191_v3 }
 0x31a   : > { %v2508_v43 = vadd.f32 %v2507_v49, %v2506_v60  ;;  %v3276_v14 = vadd.f32 %v3275_v16, %v3274_v8  ;;  %v2535_v19 = vrot.slane %v2534_v52, 2  ;;  %v3576_v12 = vmul.f32 0.125, %v2514_v56 }
 0x31b   : > { %v3704_v59 = vmul.f32 0.125, %v3282_v32  ;;  %v3303_v26 = vrot.slane %v3302_v54, 2  ;;  %v2522_v42 = vadd.f32 %v2521_v15, %v1785_v5  ;;  %v3290_v31 = vadd.f32 %v3289_v23, %v1913_v1 }
 0x31c   : > { %v3575_v22 = vmul.f32 0.125, %v2508_v43  ;;  %v3703_v58 = vmul.f32 0.125, %v3276_v14  ;;  %v3307_v9 = vrot.slane %v1916_v18, 4  ;;  %v4081_v62 = vsel %vm4000_vm3, %v3574_v27, %v4080_v28 }
 0x31d   : > { %v4193_v33 = vsel %vm4000_vm3, %v3702_v40, %v4192_v63  ;;  %v3577_v37 = vmul.f32 0.125, %v2520_v6  ;;  %v2540_v24 = vadd.f32 %v2539_v20, %v1788_v0  ;;  %v3705_v53 = vmul.f32 0.125, %v3288_v45 }
 0x31e   : > { %v4082_v11 = vsel %vm4002_vm4, %v3575_v22, %v4081_v62  ;;  %v4194_v44 = vsel %vm4002_vm4, %v3703_v58, %v4193_v33  ;;  %v2536_v17 = vadd.f32 %v2535_v19, %v2534_v52  ;;  %v3304_v7 = vadd.f32 %v3303_v26, %v3302_v54 }
 0x31f   : > { %v4083_v21 = vsel %vm4004_vm5, %v3576_v12, %v4082_v11  ;;  %v4195_v56 = vsel %vm4004_vm5, %v3704_v59, %v4194_v44  ;;  %v2523_v46 = vrot.slane %v2522_v42, 2  ;;  %v3291_v13 = vrot.slane %v3290_v31, 2 }
 0x320   : > { %v4084_v32 = vsel %vm4006_vm6, %v3577_v37, %v4083_v21  ;;  %v4196_v48 = vsel %vm4006_vm6, %v3705_v53, %v4195_v56  ;;  %v3308_v34 = vadd.f32 %v3307_v9, %v1916_v18  ;;  %v2541_v4 = vrot.slane %v2540_v24, 2 }
 0x321   : > { %4268 = vst [vmem:[%s5164_s14 + $0x58] sm:$0xff] %v4084_v32  ;;  %4284 = vst [vmem:[%s5164_s14 + $0xd8] sm:$0xff] %v4196_v48  ;;  %v1054_v51 = vadd.f32 %v6140_v30, %v6164_v55  ;;  %v1566_v5 = vadd.f32 %v6140_v30, %v1565_v38  ;;  %v1075_v41 = vadd.f32 %v6140_v30, %v4662_v57  ;;  %v2537_v28 = vrot.slane %v2536_v17, 1 }
 0x322   : > { %v1587_v35 = vadd.f32 %v6140_v30, %v4790_v10  ;;  %v1067_v1 = vadd.f32 %v6140_v30, %v1066_v29  ;;  %v1579_v36 = vadd.f32 %v6140_v30, %v1578_v25  ;;  %v1078_v50 = vadd.f32 %v6140_v30, %v4663_v2  ;;  %v1069_v25 = vpop.f32.mrf.mxu0 }
 0x323   : > { %v1786_v61 = vmax.f32 %v1054_v51, 0.0  ;;  %v1914_v6 = vmax.f32 %v1566_v5, 0.0  ;;  %v1791_v0 = vmax.f32 %v1075_v41, 0.0  ;;  %v1590_v39 = vadd.f32 %v6140_v30, %v4791_v47 }
 0x324   : > { %v1919_v60 = vmax.f32 %v1587_v35, 0.0  ;;  %v1789_v8 = vmax.f32 %v1067_v1, 0.0  ;;  %v1917_v55 = vmax.f32 %v1579_v36, 0.0  ;;  %v1792_v52 = vmax.f32 %v1078_v50, 0.0 }
 0x325   : > { %v2527_v38 = vrot.slane %v1786_v61, 4  ;;  %v3295_v3 = vrot.slane %v1914_v6, 4  ;;  %v2557_v45 = vrot.slane %v1791_v0, 4  ;;  %v1920_v54 = vmax.f32 %v1590_v39, 0.0 }
 0x326   : > { %v2524_v15 = vadd.f32 %v2523_v46, %v2522_v42  ;;  %v3309_v57 = vrot.slane %v3308_v34, 2  ;;  %v3325_v49 = vrot.slane %v1919_v60, 4  ;;  %v2545_v16 = vrot.slane %v1789_v8, 4 }
 0x327   : > { %v3292_v23 = vadd.f32 %v3291_v13, %v3290_v31  ;;  %v2528_v18 = vadd.f32 %v2527_v38, %v1786_v61  ;;  %v3296_v10 = vadd.f32 %v3295_v3, %v1914_v6  ;;  %v3313_v27 = vrot.slane %v1917_v55, 4  ;;  %v1581_v31 = vpop.f32.mrf.mxu1 }
 0x328   : > { %v3305_v40 = vrot.slane %v3304_v7, 1  ;;  %v2558_v20 = vadd.f32 %v2557_v45, %v1791_v0  ;;  %v2563_v63 = vrot.slane %v1792_v52, 4  ;;  %v3326_v19 = vadd.f32 %v3325_v49, %v1919_v60 }
 0x329   : > { %v2529_v43 = vrot.slane %v2528_v18, 2  ;;  %v3297_v14 = vrot.slane %v3296_v10, 2  ;;  %v3331_v12 = vrot.slane %v1920_v54, 4  ;;  %v2525_v59 = vrot.slane %v2524_v15, 1  ;;  %v4794_v47 = vpop.f32.mrf.mxu1 }
 0x32a   : > { %v2542_v26 = vadd.f32 %v2541_v4, %v2540_v24  ;;  %v3310_v29 = vadd.f32 %v3309_v57, %v3308_v34  ;;  %v2546_v22 = vadd.f32 %v2545_v16, %v1789_v8  ;;  %v3293_v42 = vrot.slane %v3292_v23, 1  ;;  %v4666_v34 = vpop.f32.mrf.mxu0 }
 0x32b   : > { %v2530_v58 = vadd.f32 %v2529_v43, %v2528_v18  ;;  %v3314_v9 = vadd.f32 %v3313_v27, %v1917_v55  ;;  %v2538_v62 = vadd.f32 %v2537_v28, %v2536_v17  ;;  %v3298_v33 = vadd.f32 %v3297_v14, %v3296_v10  ;;  %v1594_v55 = vpop.f32.mrf.mxu1 }
 0x32c   : > { %v2564_v37 = vadd.f32 %v2563_v63, %v1792_v52  ;;  %v3306_v53 = vadd.f32 %v3305_v40, %v3304_v7  ;;  %v2559_v11 = vrot.slane %v2558_v20, 2  ;;  %v3327_v44 = vrot.slane %v3326_v19, 2  ;;  %v1082_v8 = vpop.f32.mrf.mxu0 }
 0x32d   : > { %v3332_v21 = vadd.f32 %v3331_v12, %v1920_v54  ;;  %v2526_v56 = vadd.f32 %v2525_v59, %v2524_v15  ;;  %v2543_v46 = vrot.slane %v2542_v26, 1  ;;  %v3311_v2 = vrot.slane %v3310_v29, 1  ;;  %v4795_v43 = vpop.f32.mrf.mxu1 }
 0x32e   : > { %v2547_v32 = vrot.slane %v2546_v22, 2  ;;  %v3294_v48 = vadd.f32 %v3293_v42, %v3292_v23  ;;  %v2531_v24 = vrot.slane %v2530_v58, 1  ;;  %v3315_v13 = vrot.slane %v3314_v9, 2  ;;  %v4667_v63 = vpop.f32.mrf.mxu0 }
 0x32f   : > { %v3580_v4 = vmul.f32 0.125, %v2538_v62  ;;  %v3299_v51 = vrot.slane %v3298_v33, 1  ;;  %v2565_v5 = vrot.slane %v2564_v37, 2  ;;  %v6192_v41 = vmul.f32 0.125, %v3306_v53 }
 0x330   : > { %v2560_v17 = vadd.f32 %v2559_v11, %v2558_v20  ;;  %v3328_v35 = vadd.f32 %v3327_v44, %v3326_v19  ;;  %v3333_v7 = vrot.slane %v3332_v21, 2  ;;  %v3578_v1 = vmul.f32 0.125, %v2526_v56  ;;  %v1085_v11 = vpop.f32.mrf.mxu0  ;;  %v1597_v44 = vpop.f32.mrf.mxu1 }
 0x331   : > { %v2544_v36 = vadd.f32 %v2543_v46, %v2542_v26  ;;  %v3312_v50 = vadd.f32 %v3311_v2, %v3310_v29  ;;  %v2548_v61 = vadd.f32 %v2547_v32, %v2546_v22  ;;  %v3706_v6 = vmul.f32 0.125, %v3294_v48 }
 0x332   : > { %v2532_v0 = vadd.f32 %v2531_v24, %v2530_v58  ;;  %v3316_v39 = vadd.f32 %v3315_v13, %v3314_v9  ;;  %v1070_v60 = vadd.f32 %v6140_v30, %v1069_v25  ;;  %v3300_v52 = vadd.f32 %v3299_v51, %v3298_v33 }
 0x333   : > { %v2566_v38 = vadd.f32 %v2565_v5, %v2564_v37  ;;  %v1582_v3 = vadd.f32 %v6140_v30, %v1581_v31  ;;  %v1091_v45 = vadd.f32 %v6140_v30, %v4666_v34  ;;  %v2561_v54 = vrot.slane %v2560_v17, 1 }
 0x334   : > { %v3329_v15 = vrot.slane %v3328_v35, 1  ;;  %v3334_v57 = vadd.f32 %v3333_v7, %v3332_v21  ;;  %v1790_v49 = vmax.f32 %v1070_v60, 0.0  ;;  %v3581_v16 = vmul.f32 0.125, %v2544_v36  ;;  %v4670_v36 = vpop.f32.mrf.mxu0 }
 0x335   : > { %v2549_v23 = vrot.slane %v2548_v61, 1  ;;  %v1918_v18 = vmax.f32 %v1582_v3, 0.0  ;;  %v1603_v10 = vadd.f32 %v6140_v30, %v4794_v47  ;;  %v3709_v27 = vmul.f32 0.125, %v3312_v50  ;;  %v4798_v50 = vpop.f32.mrf.mxu1 }
 0x336   : > { %v3579_v28 = vmul.f32 0.125, %v2532_v0  ;;  %v2551_v40 = vrot.slane %v1790_v49, 4  ;;  %v1795_v20 = vmax.f32 %v1091_v45, 0.0  ;;  %v3707_v14 = vmul.f32 0.125, %v3300_v52 }
 0x337   : > { %v3317_v19 = vrot.slane %v3316_v39, 1  ;;  %v2567_v12 = vrot.slane %v2566_v38, 1  ;;  %v3319_v59 = vrot.slane %v1918_v18, 4  ;;  %v2562_v26 = vadd.f32 %v2561_v54, %v2560_v17 }
 0x338   : > { %v3330_v29 = vadd.f32 %v3329_v15, %v3328_v35  ;;  %v3335_v22 = vrot.slane %v3334_v57, 1  ;;  %v2552_v42 = vadd.f32 %v2551_v40, %v1790_v49  ;;  %v2550_v58 = vadd.f32 %v2549_v23, %v2548_v61  ;;  %v1098_v23 = vpop.f32.mrf.mxu0 }
 0x339   : > { %v3320_v9 = vadd.f32 %v3319_v59, %v1918_v18  ;;  %v1923_v25 = vmax.f32 %v1603_v10, 0.0  ;;  %v1083_v31 = vadd.f32 %v6140_v30, %v1082_v8  ;;  %v4085_v62 = vsel %vm3994_vm0, %v3579_v28, %v3578_v1  ;;  %v1610_v18 = vpop.f32.mrf.mxu1 }
 0x33a   : > { %v2553_v33 = vrot.slane %v2552_v42, 2  ;;  %v2581_v37 = vrot.slane %v1795_v20, 4  ;;  %v1595_v53 = vadd.f32 %v6140_v30, %v1594_v55  ;;  %v4197_v21 = vsel %vm3994_vm0, %v3707_v14, %v3706_v6 }
 0x33b   : > { %v3321_v56 = vrot.slane %v3320_v9, 2  ;;  %v1094_v46 = vadd.f32 %v6140_v30, %v4667_v63  ;;  %v1606_v2 = vadd.f32 %v6140_v30, %v4795_v43  ;;  %v3584_v32 = vmul.f32 0.125, %v2562_v26 }
 0x33c   : > { %v3318_v48 = vadd.f32 %v3317_v19, %v3316_v39  ;;  %v2568_v24 = vadd.f32 %v2567_v12, %v2566_v38  ;;  %v2554_v13 = vadd.f32 %v2553_v33, %v2552_v42  ;;  %v4086_v34 = vsel %vm3996_vm1, %v3580_v4, %v4085_v62  ;;  %v4671_v42 = vpop.f32.mrf.mxu0 }
 0x33d   : > { %v3322_v47 = vadd.f32 %v3321_v56, %v3320_v9  ;;  %v3349_v51 = vrot.slane %v1923_v25, 4  ;;  %v1793_v5 = vmax.f32 %v1083_v31, 0.0  ;;  %v4198_v17 = vsel %vm3996_vm1, %v6192_v41, %v4197_v21 }
 0x33e   : > { %v2555_v35 = vrot.slane %v2554_v13, 1  ;;  %v2582_v7 = vadd.f32 %v2581_v37, %v1795_v20  ;;  %v1921_v1 = vmax.f32 %v1595_v53, 0.0  ;;  %v3582_v61 = vmul.f32 0.125, %v2550_v58  ;;  %v4799_v58 = vpop.f32.mrf.mxu1 }
 0x33f   : > { %v3323_v6 = vrot.slane %v3322_v47, 1  ;;  %v1796_v0 = vmax.f32 %v1094_v46, 0.0  ;;  %v1924_v60 = vmax.f32 %v1606_v2, 0.0  ;;  %v4087_v39 = vsel %vm3998_vm2, %v3581_v16, %v4086_v34 }
 0x340   : > { %v3710_v8 = vmul.f32 0.125, %v3318_v48  ;;  %v3336_v55 = vadd.f32 %v3335_v22, %v3334_v57  ;;  %v2556_v4 = vadd.f32 %v2555_v35, %v2554_v13  ;;  %v4199_v52 = vsel %vm3998_vm2, %v3709_v27, %v4198_v17 }
 0x341   : > { %v3324_v38 = vadd.f32 %v3323_v6, %v3322_v47  ;;  %v3350_v3 = vadd.f32 %v3349_v51, %v1923_v25  ;;  %v2569_v45 = vrot.slane %v1793_v5, 4  ;;  %v3712_v41 = vmul.f32 0.125, %v3330_v29 }
 0x342   : > { %v3583_v54 = vmul.f32 0.125, %v2556_v4  ;;  %v2583_v15 = vrot.slane %v2582_v7, 2  ;;  %v3337_v49 = vrot.slane %v1921_v1, 4  ;;  %v4088_v10 = vsel %vm4000_vm3, %v3582_v61, %v4087_v39 }
 0x343   : > { %v3711_v28 = vmul.f32 0.125, %v3324_v38  ;;  %v2587_v40 = vrot.slane %v1796_v0, 4  ;;  %v3355_v16 = vrot.slane %v1924_v60, 4  ;;  %v4200_v57 = vsel %vm4000_vm3, %v3710_v8, %v4199_v52 }
 0x344   : > { %v3585_v20 = vmul.f32 0.125, %v2568_v24  ;;  %v3713_v63 = vmul.f32 0.125, %v3336_v55  ;;  %v4089_v27 = vsel %vm4002_vm4, %v3583_v54, %v4088_v10  ;;  %v3351_v19 = vrot.slane %v3350_v3, 2 }
 0x345   : > { %v4090_v43 = vsel %vm4004_vm5, %v3584_v32, %v4089_v27  ;;  %v4201_v14 = vsel %vm4002_vm4, %v3711_v28, %v4200_v57  ;;  %v2570_v12 = vadd.f32 %v2569_v45, %v1793_v5  ;;  %v2584_v29 = vadd.f32 %v2583_v15, %v2582_v7 }
 0x346   : > { %v4091_v59 = vsel %vm4006_vm6, %v3585_v20, %v4090_v43  ;;  %v4202_v26 = vsel %vm4004_vm5, %v3712_v41, %v4201_v14  ;;  %v3338_v22 = vadd.f32 %v3337_v49, %v1921_v1  ;;  %v2588_v25 = vadd.f32 %v2587_v40, %v1796_v0 }
 0x347   : > { %4269 = vst [vmem:[%s5164_s14 + $0x60] sm:$0xff] %v4091_v59  ;;  %v4203_v9 = vsel %vm4006_vm6, %v3713_v63, %v4202_v26  ;;  %v3356_v31 = vadd.f32 %v3355_v16, %v1924_v60  ;;  %v1086_v62 = vadd.f32 %v6140_v30, %v1085_v11  ;;  %v1598_v33 = vadd.f32 %v6140_v30, %v1597_v44 }
 0x348   : > { %4285 = vst [vmem:[%s5164_s14 + $0xe0] sm:$0xff] %v4203_v9  ;;  %v1107_v37 = vadd.f32 %v6140_v30, %v4670_v36  ;;  %v1619_v53 = vadd.f32 %v6140_v30, %v4798_v50  ;;  %v1099_v21 = vadd.f32 %v6140_v30, %v1098_v23  ;;  %v1611_v46 = vadd.f32 %v6140_v30, %v1610_v18  ;;  %v1101_v23 = vpop.f32.mrf.mxu0 }
 0x349   : > { %v1794_v56 = vmax.f32 %v1086_v62, 0.0  ;;  %v1110_v2 = vadd.f32 %v6140_v30, %v4671_v42  ;;  %v1622_v32 = vadd.f32 %v6140_v30, %v4799_v58  ;;  %v2571_v48 = vrot.slane %v2570_v12, 2 }
 0x34a   : > { %v1922_v24 = vmax.f32 %v1598_v33, 0.0  ;;  %v1799_v13 = vmax.f32 %v1107_v37, 0.0  ;;  %v1927_v11 = vmax.f32 %v1619_v53, 0.0  ;;  %v1797_v47 = vmax.f32 %v1099_v21, 0.0  ;;  %v4674_v42 = vpop.f32.mrf.mxu0 }
 0x34b   : > { %v2575_v34 = vrot.slane %v1794_v56, 4  ;;  %v1925_v44 = vmax.f32 %v1611_v46, 0.0  ;;  %v1800_v51 = vmax.f32 %v1110_v2, 0.0  ;;  %v3352_v5 = vadd.f32 %v3351_v19, %v3350_v3  ;;  %v1613_v19 = vpop.f32.mrf.mxu1 }
 0x34c   : > { %v3339_v17 = vrot.slane %v3338_v22, 2  ;;  %v3343_v35 = vrot.slane %v1922_v24, 4  ;;  %v1928_v7 = vmax.f32 %v1622_v32, 0.0  ;;  %v2585_v1 = vrot.slane %v2584_v29, 1 }
 0x34d   : > { %v2589_v36 = vrot.slane %v2588_v25, 2  ;;  %v2576_v50 = vadd.f32 %v2575_v34, %v1794_v56  ;;  %v2605_v61 = vrot.slane %v1799_v13, 4  ;;  %v2572_v6 = vadd.f32 %v2571_v48, %v2570_v12 }
 0x34e   : > { %v3357_v0 = vrot.slane %v3356_v31, 2  ;;  %v3344_v60 = vadd.f32 %v3343_v35, %v1922_v24  ;;  %v3373_v39 = vrot.slane %v1927_v11, 4  ;;  %v2593_v55 = vrot.slane %v1797_v47, 4  ;;  %v1114_v24 = vpop.f32.mrf.mxu0 }
 0x34f   : > { %v2577_v8 = vrot.slane %v2576_v50, 2  ;;  %v3361_v4 = vrot.slane %v1925_v44, 4  ;;  %v2611_v52 = vrot.slane %v1800_v51, 4  ;;  %v3353_v38 = vrot.slane %v3352_v5, 1 }
 0x350   : > { %v3340_v45 = vadd.f32 %v3339_v17, %v3338_v22  ;;  %v3345_v41 = vrot.slane %v3344_v60, 2  ;;  %v3379_v54 = vrot.slane %v1928_v7, 4  ;;  %v2590_v3 = vadd.f32 %v2589_v36, %v2588_v25 }
 0x351   : > { %v2578_v15 = vadd.f32 %v2577_v8, %v2576_v50  ;;  %v2606_v49 = vadd.f32 %v2605_v61, %v1799_v13  ;;  %v2573_v18 = vrot.slane %v2572_v6, 1  ;;  %v3358_v10 = vadd.f32 %v3357_v0, %v3356_v31 }
 0x352   : > { %v3346_v28 = vadd.f32 %v3345_v41, %v3344_v60  ;;  %v3374_v40 = vadd.f32 %v3373_v39, %v1927_v11  ;;  %v2594_v16 = vadd.f32 %v2593_v55, %v1797_v47  ;;  %v3362_v57 = vadd.f32 %v3361_v4, %v1925_v44  ;;  %v4675_v39 = vpop.f32.mrf.mxu0 }
 0x353   : > { %v2612_v20 = vadd.f32 %v2611_v52, %v1800_v51  ;;  %v2586_v63 = vadd.f32 %v2585_v1, %v2584_v29  ;;  %v3354_v27 = vadd.f32 %v3353_v38, %v3352_v5  ;;  %v3341_v43 = vrot.slane %v3340_v45, 1  ;;  %v4802_v29 = vpop.f32.mrf.mxu1 }
 0x354   : > { %v3380_v14 = vadd.f32 %v3379_v54, %v1928_v7  ;;  %v2591_v12 = vrot.slane %v2590_v3, 1  ;;  %v2579_v59 = vrot.slane %v2578_v15, 1  ;;  %v3347_v26 = vrot.slane %v3346_v28, 1 }
 0x355   : > { %v2607_v22 = vrot.slane %v2606_v49, 2  ;;  %v2574_v58 = vadd.f32 %v2573_v18, %v2572_v6  ;;  %v3359_v9 = vrot.slane %v3358_v10, 1  ;;  %v3375_v25 = vrot.slane %v3374_v40, 2  ;;  %v1626_v50 = vpop.f32.mrf.mxu1 }
 0x356   : > { %v2595_v62 = vrot.slane %v2594_v16, 2  ;;  %v3363_v31 = vrot.slane %v3362_v57, 2  ;;  %v2613_v33 = vrot.slane %v2612_v20, 2  ;;  %v3588_v37 = vmul.f32 0.125, %v2586_v63 }
 0x357   : > { %v3716_v53 = vmul.f32 0.125, %v3354_v27  ;;  %v3342_v21 = vadd.f32 %v3341_v43, %v3340_v45  ;;  %v3381_v56 = vrot.slane %v3380_v14, 2  ;;  %v2592_v46 = vadd.f32 %v2591_v12, %v2590_v3  ;;  %v4803_v18 = vpop.f32.mrf.mxu1 }
 0x358   : > { %v2580_v2 = vadd.f32 %v2579_v59, %v2578_v15  ;;  %v3348_v32 = vadd.f32 %v3347_v26, %v3346_v28  ;;  %v2608_v48 = vadd.f32 %v2607_v22, %v2606_v49  ;;  %v3586_v13 = vmul.f32 0.125, %v2574_v58 }
 0x359   : > { %v3360_v11 = vadd.f32 %v3359_v9, %v3358_v10  ;;  %v1102_v34 = vadd.f32 %v6140_v30, %v1101_v23  ;;  %v1614_v47 = vadd.f32 %v6140_v30, %v1613_v19  ;;  %v3376_v44 = vadd.f32 %v3375_v25, %v3374_v40  ;;  %v1629_v9 = vpop.f32.mrf.mxu1 }
 0x35a   : > { %v2596_v51 = vadd.f32 %v2595_v62, %v2594_v16  ;;  %v3364_v5 = vadd.f32 %v3363_v31, %v3362_v57  ;;  %v2614_v17 = vadd.f32 %v2613_v33, %v2612_v20  ;;  %v3714_v35 = vmul.f32 0.125, %v3342_v21  ;;  %v6233_v57 = vpop.f32.mrf.mxu0 }
 0x35b   : > { %v3382_v7 = vadd.f32 %v3381_v56, %v3380_v14  ;;  %v1798_v1 = vmax.f32 %v1102_v34, 0.0  ;;  %v1926_v36 = vmax.f32 %v1614_v47, 0.0  ;;  %v3587_v61 = vmul.f32 0.125, %v2580_v2  ;;  %v4806_v47 = vpop.f32.mrf.mxu1 }
 0x35c   : > { %v3715_v6 = vmul.f32 0.125, %v3348_v32  ;;  %v2609_v0 = vrot.slane %v2608_v48, 1  ;;  %v1123_v60 = vadd.f32 %v6140_v30, %v4674_v42  ;;  %v3589_v8 = vmul.f32 0.125, %v2592_v46  ;;  %v4678_v21 = vpop.f32.mrf.mxu0 }
 0x35d   : > { %v2599_v55 = vrot.slane %v1798_v1, 4  ;;  %v3367_v4 = vrot.slane %v1926_v36, 4  ;;  %v1635_v52 = vadd.f32 %v6140_v30, %v4802_v29  ;;  %v3377_v38 = vrot.slane %v3376_v44, 1 }
 0x35e   : > { %v2597_v45 = vrot.slane %v2596_v51, 1  ;;  %v3365_v41 = vrot.slane %v3364_v5, 1  ;;  %v2615_v54 = vrot.slane %v2614_v17, 1  ;;  %v3717_v3 = vmul.f32 0.125, %v3360_v11 }
 0x35f   : > { %v3383_v15 = vrot.slane %v3382_v7, 1  ;;  %v2600_v49 = vadd.f32 %v2599_v55, %v1798_v1  ;;  %v3368_v23 = vadd.f32 %v3367_v4, %v1926_v36  ;;  %v4092_v10 = vsel %vm3994_vm0, %v3587_v61, %v3586_v13  ;;  %v1642_v4 = vpop.f32.mrf.mxu1 }
 0x360   : > { %v4204_v28 = vsel %vm3994_vm0, %v3715_v6, %v3714_v35  ;;  %v2610_v40 = vadd.f32 %v2609_v0, %v2608_v48  ;;  %v1803_v16 = vmax.f32 %v1123_v60, 0.0  ;;  %v1931_v27 = vmax.f32 %v1635_v52, 0.0  ;;  %v1130_v35 = vpop.f32.mrf.mxu0 }
 0x361   : > { %v2601_v20 = vrot.slane %v2600_v49, 2  ;;  %v3369_v63 = vrot.slane %v3368_v23, 2  ;;  %v1115_v43 = vadd.f32 %v6140_v30, %v1114_v24  ;;  %v3378_v14 = vadd.f32 %v3377_v38, %v3376_v44 }
 0x362   : > { %v2598_v19 = vadd.f32 %v2597_v45, %v2596_v51  ;;  %v3366_v12 = vadd.f32 %v3365_v41, %v3364_v5  ;;  %v2616_v59 = vadd.f32 %v2615_v54, %v2614_v17  ;;  %v4093_v26 = vsel %vm3996_vm1, %v3588_v37, %v4092_v10  ;;  %v4679_v54 = vpop.f32.mrf.mxu0  ;;  %v6256_v10 = vld [vmem:[%s6371_s3] ss:$0 sm:$0xff] }
 0x363   : > { %v2602_v22 = vadd.f32 %v2601_v20, %v2600_v49  ;;  %v3370_v42 = vadd.f32 %v3369_v63, %v3368_v23  ;;  %v1627_v58 = vadd.f32 %v6140_v30, %v1626_v50  ;;  %v4205_v25 = vsel %vm3996_vm1, %v3716_v53, %v4204_v28 }
 0x364   : > { %v3384_v62 = vadd.f32 %v3383_v15, %v3382_v7  ;;  %v2629_v31 = vrot.slane %v1803_v16, 4  ;;  %v1126_v33 = vadd.f32 %v6140_v30, %v4675_v39  ;;  %v3397_v46 = vrot.slane %v1931_v27, 4 }
 0x365   : > { %v2603_v56 = vrot.slane %v2602_v22, 1  ;;  %v3371_v29 = vrot.slane %v3370_v42, 1  ;;  %v1801_v2 = vmax.f32 %v1115_v43, 0.0  ;;  %v3590_v32 = vmul.f32 0.125, %v2598_v19 }
 0x366   : > { %v4094_v48 = vsel %vm3998_vm2, %v3589_v8, %v4093_v26  ;;  %v3718_v37 = vmul.f32 0.125, %v3366_v12  ;;  %v1638_v24 = vadd.f32 %v6140_v30, %v4803_v18  ;;  %v4206_v13 = vsel %vm3998_vm2, %v3717_v3, %v4205_v25 }
 0x367   : > { %v2604_v11 = vadd.f32 %v2603_v56, %v2602_v22  ;;  %v3372_v34 = vadd.f32 %v3371_v29, %v3370_v42  ;;  %v1929_v53 = vmax.f32 %v1627_v58, 0.0  ;;  %v3592_v44 = vmul.f32 0.125, %v2610_v40 }
 0x368   : > { %v3720_v51 = vmul.f32 0.125, %v3378_v14  ;;  %v2630_v5 = vadd.f32 %v2629_v31, %v1803_v16  ;;  %v1804_v17 = vmax.f32 %v1126_v33, 0.0  ;;  %v3398_v36 = vadd.f32 %v3397_v46, %v1931_v27  ;;  %v4807_v14 = vpop.f32.mrf.mxu1 }
 0x369   : > { %v3591_v7 = vmul.f32 0.125, %v2604_v11  ;;  %v3719_v1 = vmul.f32 0.125, %v3372_v34  ;;  %v2617_v50 = vrot.slane %v1801_v2, 4  ;;  %v4095_v61 = vsel %vm4000_vm3, %v3590_v32, %v4094_v48 }
 0x36a   : > { %v4207_v6 = vsel %vm4000_vm3, %v3718_v37, %v4206_v13  ;;  %v3593_v30 = vmul.f32 0.125, %v2616_v59  ;;  %v1932_v0 = vmax.f32 %v1638_v24, 0.0  ;;  %v3721_v60 = vmul.f32 0.125, %v3384_v62 }
 0x36b   : > { %v4096_v39 = vsel %vm4002_vm4, %v3591_v7, %v4095_v61  ;;  %v4208_v8 = vsel %vm4002_vm4, %v3719_v1, %v4207_v6  ;;  %v3385_v55 = vrot.slane %v1929_v53, 4  ;;  %v2631_v45 = vrot.slane %v2630_v5, 2 }
 0x36c   : > { %v4097_v52 = vsel %vm4004_vm5, %v3592_v44, %v4096_v39  ;;  %v4209_v38 = vsel %vm4004_vm5, %v3720_v51, %v4208_v8  ;;  %v2635_v41 = vrot.slane %v1804_v17, 4  ;;  %v3399_v49 = vrot.slane %v3398_v36, 2 }
 0x36d   : > { %v4098_v3 = vsel %vm4006_vm6, %v3593_v30, %v4097_v52  ;;  %v4210_v15 = vsel %vm4006_vm6, %v3721_v60, %v4209_v38  ;;  %v2618_v23 = vadd.f32 %v2617_v50, %v1801_v2  ;;  %v3403_v18 = vrot.slane %v1932_v0, 4  ;;  %v1133_v30 = vpop.f32.mrf.mxu0 }
 0x36e   : > { %4270 = vst [vmem:[%s5164_s14 + $0x68] sm:$0xff] %v4098_v3  ;;  %4286 = vst [vmem:[%s5164_s14 + $0xe8] sm:$0xff] %v4210_v15  ;;  %v1118_v28 = vadd.f32 %v6256_v10, %v6233_v57  ;;  %v1630_v40 = vadd.f32 %v6256_v10, %v1629_v9  ;;  %v1139_v16 = vadd.f32 %v6256_v10, %v4678_v21 }
 0x36f   : > { %v1651_v20 = vadd.f32 %v6256_v10, %v4806_v47  ;;  %v1131_v63 = vadd.f32 %v6256_v10, %v1130_v35  ;;  %v1643_v27 = vadd.f32 %v6256_v10, %v1642_v4  ;;  %v1142_v43 = vadd.f32 %v6256_v10, %v4679_v54 }
 0x370   : > { %v3386_v19 = vadd.f32 %v3385_v55, %v1929_v53  ;;  %v1802_v12 = vmax.f32 %v1118_v28, 0.0  ;;  %v1930_v59 = vmax.f32 %v1630_v40, 0.0  ;;  %v1807_v26 = vmax.f32 %v1139_v16, 0.0  ;;  %v1645_v55 = vpop.f32.mrf.mxu1 }
 0x371   : > { %v2632_v22 = vadd.f32 %v2631_v45, %v2630_v5  ;;  %v2636_v42 = vadd.f32 %v2635_v41, %v1804_v17  ;;  %v1805_v57 = vmax.f32 %v1131_v63, 0.0  ;;  %v1933_v58 = vmax.f32 %v1643_v27, 0.0 }
 0x372   : > { %v2623_v9 = vrot.slane %v1802_v12, 4  ;;  %v3391_v25 = vrot.slane %v1930_v59, 4  ;;  %v1935_v62 = vmax.f32 %v1651_v20, 0.0  ;;  %v1654_v31 = vadd.f32 %v6256_v10, %v4807_v14  ;;  %v4810_v63 = vpop.f32.mrf.mxu1 }
 0x373   : > { %v3400_v33 = vadd.f32 %v3399_v49, %v3398_v36  ;;  %v2619_v21 = vrot.slane %v2618_v23, 2  ;;  %v2653_v56 = vrot.slane %v1807_v26, 4  ;;  %v1808_v29 = vmax.f32 %v1142_v43, 0.0 }
 0x374   : > { %v3404_v46 = vadd.f32 %v3403_v18, %v1932_v0  ;;  %v2624_v2 = vadd.f32 %v2623_v9, %v1802_v12  ;;  %v3392_v32 = vadd.f32 %v3391_v25, %v1930_v59  ;;  %v2641_v48 = vrot.slane %v1805_v57, 4  ;;  %v4682_v18 = vpop.f32.mrf.mxu0 }
 0x375   : > { %v2633_v37 = vrot.slane %v2632_v22, 1  ;;  %v3387_v24 = vrot.slane %v3386_v19, 2  ;;  %v2637_v13 = vrot.slane %v2636_v42, 2  ;;  %v3409_v11 = vrot.slane %v1933_v58, 4 }
 0x376   : > { %v2625_v34 = vrot.slane %v2624_v2, 2  ;;  %v3393_v53 = vrot.slane %v3392_v32, 2  ;;  %v3421_v47 = vrot.slane %v1935_v62, 4  ;;  %v1936_v44 = vmax.f32 %v1654_v31, 0.0  ;;  %v1146_v25 = vpop.f32.mrf.mxu0 }
 0x377   : > { %v3401_v51 = vrot.slane %v3400_v33, 1  ;;  %v2620_v5 = vadd.f32 %v2619_v21, %v2618_v23  ;;  %v2654_v17 = vadd.f32 %v2653_v56, %v1807_v26  ;;  %v2659_v35 = vrot.slane %v1808_v29, 4  ;;  %v1658_v56 = vpop.f32.mrf.mxu1 }
 0x378   : > { %v3405_v7 = vrot.slane %v3404_v46, 2  ;;  %v2626_v1 = vadd.f32 %v2625_v34, %v2624_v2  ;;  %v2642_v36 = vadd.f32 %v2641_v48, %v1805_v57  ;;  %v3388_v50 = vadd.f32 %v3387_v24, %v3386_v19 }
 0x379   : > { %v3394_v61 = vadd.f32 %v3393_v53, %v3392_v32  ;;  %v3410_v6 = vadd.f32 %v3409_v11, %v1933_v58  ;;  %v2634_v0 = vadd.f32 %v2633_v37, %v2632_v22  ;;  %v2638_v60 = vadd.f32 %v2637_v13, %v2636_v42 }
 0x37a   : > { %v3422_v39 = vadd.f32 %v3421_v47, %v1935_v62  ;;  %v3427_v8 = vrot.slane %v1936_v44, 4  ;;  %v3402_v4 = vadd.f32 %v3401_v51, %v3400_v33  ;;  %v2621_v52 = vrot.slane %v2620_v5, 1 }
 0x37b   : > { %v2655_v38 = vrot.slane %v2654_v17, 2  ;;  %v2660_v45 = vadd.f32 %v2659_v35, %v1808_v29  ;;  %v3406_v41 = vadd.f32 %v3405_v7, %v3404_v46  ;;  %v2627_v54 = vrot.slane %v2626_v1, 1  ;;  %v4811_v7 = vpop.f32.mrf.mxu1 }
 0x37c   : > { %v2643_v3 = vrot.slane %v2642_v36, 2  ;;  %v3389_v15 = vrot.slane %v3388_v50, 1  ;;  %v3395_v49 = vrot.slane %v3394_v61, 1  ;;  %v3411_v23 = vrot.slane %v3410_v6, 2 }
 0x37d   : > { %v3596_v28 = vmul.f32 0.125, %v2634_v0  ;;  %v2639_v40 = vrot.slane %v2638_v60, 1  ;;  %v3423_v16 = vrot.slane %v3422_v39, 2  ;;  %v3428_v20 = vadd.f32 %v3427_v8, %v1936_v44  ;;  %v4683_v44 = vpop.f32.mrf.mxu0 }
 0x37e   : > { %v3724_v27 = vmul.f32 0.125, %v3402_v4  ;;  %v2622_v43 = vadd.f32 %v2621_v52, %v2620_v5  ;;  %v2656_v14 = vadd.f32 %v2655_v38, %v2654_v17  ;;  %v2661_v19 = vrot.slane %v2660_v45, 2 }
 0x37f   : > { %v3407_v12 = vrot.slane %v3406_v41, 1  ;;  %v2628_v59 = vadd.f32 %v2627_v54, %v2626_v1  ;;  %v2644_v26 = vadd.f32 %v2643_v3, %v2642_v36  ;;  %v1134_v22 = vadd.f32 %v6256_v10, %v1133_v30  ;;  %v1149_v52 = vpop.f32.mrf.mxu0  ;;  %v1661_v3 = vpop.f32.mrf.mxu1 }
 0x380   : > { %v3390_v42 = vadd.f32 %v3389_v15, %v3388_v50  ;;  %v3396_v57 = vadd.f32 %v3395_v49, %v3394_v61  ;;  %v3412_v58 = vadd.f32 %v3411_v23, %v3410_v6  ;;  %v1646_v9 = vadd.f32 %v6256_v10, %v1645_v55 }
 0x381   : > { %v2640_v62 = vadd.f32 %v2639_v40, %v2638_v60  ;;  %v3424_v31 = vadd.f32 %v3423_v16, %v3422_v39  ;;  %v3429_v33 = vrot.slane %v3428_v20, 2  ;;  %v1806_v21 = vmax.f32 %v1134_v22, 0.0 }
 0x382   : > { %v3594_v29 = vmul.f32 0.125, %v2622_v43  ;;  %v2657_v46 = vrot.slane %v2656_v14, 1  ;;  %v2662_v2 = vadd.f32 %v2661_v19, %v2660_v45  ;;  %v1934_v32 = vmax.f32 %v1646_v9, 0.0 }
 0x383   : > { %v3408_v48 = vadd.f32 %v3407_v12, %v3406_v41  ;;  %v3595_v37 = vmul.f32 0.125, %v2628_v59  ;;  %v2645_v24 = vrot.slane %v2644_v26, 1  ;;  %v2647_v13 = vrot.slane %v1806_v21, 4  ;;  %v4686_v59 = vpop.f32.mrf.mxu0 }
 0x384   : > { %v3722_v11 = vmul.f32 0.125, %v3390_v42  ;;  %v3723_v34 = vmul.f32 0.125, %v3396_v57  ;;  %v3413_v53 = vrot.slane %v3412_v58, 1  ;;  %v3415_v47 = vrot.slane %v1934_v32, 4  ;;  %v4814_v57 = vpop.f32.mrf.mxu1 }
 0x385   : > { %v3425_v51 = vrot.slane %v3424_v31, 1  ;;  %v3430_v5 = vadd.f32 %v3429_v33, %v3428_v20  ;;  %v2648_v17 = vadd.f32 %v2647_v13, %v1806_v21  ;;  %v1155_v35 = vadd.f32 %v6256_v10, %v4682_v18 }
 0x386   : > { %v3597_v1 = vmul.f32 0.125, %v2640_v62  ;;  %v2658_v36 = vadd.f32 %v2657_v46, %v2656_v14  ;;  %v2663_v50 = vrot.slane %v2662_v2, 1  ;;  %v3416_v61 = vadd.f32 %v3415_v47, %v1934_v32  ;;  %v1162_v32 = vpop.f32.mrf.mxu0 }
 0x387   : > { %v4099_v6 = vsel %vm3994_vm0, %v3595_v37, %v3594_v29  ;;  %v2646_v30 = vadd.f32 %v2645_v24, %v2644_v26  ;;  %v2649_v0 = vrot.slane %v2648_v17, 2  ;;  %v1667_v60 = vadd.f32 %v6256_v10, %v4810_v63 }
 0x388   : > { %v3725_v39 = vmul.f32 0.125, %v3408_v48  ;;  %v4211_v8 = vsel %vm3994_vm0, %v3723_v34, %v3722_v11  ;;  %v3414_v55 = vadd.f32 %v3413_v53, %v3412_v58  ;;  %v3417_v4 = vrot.slane %v3416_v61, 2  ;;  %v1674_v11 = vpop.f32.mrf.mxu1 }
 0x389   : > { %v3426_v38 = vadd.f32 %v3425_v51, %v3424_v31  ;;  %v3431_v45 = vrot.slane %v3430_v5, 1  ;;  %v2650_v41 = vadd.f32 %v2649_v0, %v2648_v17  ;;  %v1811_v54 = vmax.f32 %v1155_v35, 0.0 }
 0x38a   : > { %v4100_v15 = vsel %vm3996_vm1, %v3596_v28, %v4099_v6  ;;  %v3600_v49 = vmul.f32 0.125, %v2658_v36  ;;  %v2664_v23 = vadd.f32 %v2663_v50, %v2662_v2  ;;  %v3418_v18 = vadd.f32 %v3417_v4, %v3416_v61  ;;  %v4687_v50 = vpop.f32.mrf.mxu0 }
 0x38b   : > { %v4212_v40 = vsel %vm3996_vm1, %v3724_v27, %v4211_v8  ;;  %v3598_v16 = vmul.f32 0.125, %v2646_v30  ;;  %v2651_v20 = vrot.slane %v2650_v41, 1  ;;  %v1939_v63 = vmax.f32 %v1667_v60, 0.0  ;;  %v4815_v60 = vpop.f32.mrf.mxu1 }
 0x38c   : > { %v3726_v43 = vmul.f32 0.125, %v3414_v55  ;;  %v3419_v14 = vrot.slane %v3418_v18, 1  ;;  %v1147_v19 = vadd.f32 %v6256_v10, %v1146_v25  ;;  %v1659_v12 = vadd.f32 %v6256_v10, %v1658_v56 }
 0x38d   : > { %v4101_v26 = vsel %vm3998_vm2, %v3597_v1, %v4100_v15  ;;  %v2652_v22 = vadd.f32 %v2651_v20, %v2650_v41  ;;  %v2677_v42 = vrot.slane %v1811_v54, 4  ;;  %v1158_v28 = vadd.f32 %v6256_v10, %v4683_v44 }
 0x38e   : > { %v3728_v58 = vmul.f32 0.125, %v3426_v38  ;;  %v4213_v27 = vsel %vm3998_vm2, %v3725_v39, %v4212_v40  ;;  %v3432_v9 = vadd.f32 %v3431_v45, %v3430_v5  ;;  %v3420_v62 = vadd.f32 %v3419_v14, %v3418_v18 }
 0x38f   : > { %v3601_v31 = vmul.f32 0.125, %v2664_v23  ;;  %v3599_v33 = vmul.f32 0.125, %v2652_v22  ;;  %v3445_v21 = vrot.slane %v1939_v63, 4  ;;  %v1670_v25 = vadd.f32 %v6256_v10, %v4811_v7 }
 0x390   : > { %v4102_v56 = vsel %vm4000_vm3, %v3598_v16, %v4101_v26  ;;  %v3727_v29 = vmul.f32 0.125, %v3420_v62  ;;  %v1809_v46 = vmax.f32 %v1147_v19, 0.0  ;;  %v1937_v2 = vmax.f32 %v1659_v12, 0.0 }
 0x391   : > { %v4214_v48 = vsel %vm4000_vm3, %v3726_v43, %v4213_v27  ;;  %v4103_v37 = vsel %vm4002_vm4, %v3599_v33, %v4102_v56  ;;  %v2678_v24 = vadd.f32 %v2677_v42, %v1811_v54  ;;  %v1812_v13 = vmax.f32 %v1158_v28, 0.0 }
 0x392   : > { %v3729_v34 = vmul.f32 0.125, %v3432_v9  ;;  %v4104_v53 = vsel %vm4004_vm5, %v3600_v49, %v4103_v37  ;;  %v4215_v47 = vsel %vm4002_vm4, %v3727_v29, %v4214_v48  ;;  %v3446_v5 = vadd.f32 %v3445_v21, %v1939_v63 }
 0x393   : > { %v4105_v44 = vsel %vm4006_vm6, %v3601_v31, %v4104_v53  ;;  %v4216_v51 = vsel %vm4004_vm5, %v3728_v58, %v4215_v47  ;;  %v1940_v17 = vmax.f32 %v1670_v25, 0.0  ;;  %v2665_v7 = vrot.slane %v1809_v46, 4 }
 0x394   : > { %4271 = vst [vmem:[%s5164_s14 + $0x70] sm:$0xff] %v4105_v44  ;;  %v4217_v35 = vsel %vm4006_vm6, %v3729_v34, %v4216_v51  ;;  %v3433_v1 = vrot.slane %v1937_v2, 4  ;;  %v1150_v36 = vadd.f32 %v6256_v10, %v1149_v52  ;;  %v2679_v61 = vrot.slane %v2678_v24, 2 }
 0x395   : > { %4287 = vst [vmem:[%s5164_s14 + $0xf0] sm:$0xff] %v4217_v35  ;;  %v2683_v6 = vrot.slane %v1812_v13, 4  ;;  %v1662_v30 = vadd.f32 %v6256_v10, %v1661_v3  ;;  %v1163_v0 = vadd.f32 %v6256_v10, %v1162_v32  ;;  %v1171_v8 = vadd.f32 %v6256_v10, %v4686_v59 }
 0x396   : > { %v1810_v39 = vmax.f32 %v1150_v36, 0.0  ;;  %v1683_v55 = vadd.f32 %v6256_v10, %v4814_v57  ;;  %v1675_v4 = vadd.f32 %v6256_v10, %v1674_v11  ;;  %v3447_v38 = vrot.slane %v3446_v5, 2  ;;  %v1677_v36 = vpop.f32.mrf.mxu1 }
 0x397   : > { %v3451_v45 = vrot.slane %v1940_v17, 4  ;;  %v1938_v41 = vmax.f32 %v1662_v30, 0.0  ;;  %v1174_v52 = vadd.f32 %v6256_v10, %v4687_v50  ;;  %v1813_v15 = vmax.f32 %v1163_v0, 0.0 }
 0x398   : > { %v2671_v54 = vrot.slane %v1810_v39, 4  ;;  %v1941_v49 = vmax.f32 %v1675_v4, 0.0  ;;  %v1686_v3 = vadd.f32 %v6256_v10, %v4815_v60  ;;  %v2680_v23 = vadd.f32 %v2679_v61, %v2678_v24 }
 0x399   : > { %v2666_v18 = vadd.f32 %v2665_v7, %v1809_v46  ;;  %v3434_v40 = vadd.f32 %v3433_v1, %v1937_v2  ;;  %v3439_v16 = vrot.slane %v1938_v41, 4  ;;  %v2684_v20 = vadd.f32 %v2683_v6, %v1812_v13  ;;  %v1165_v1 = vpop.f32.mrf.mxu0 }
 0x39a   : > { %v2672_v63 = vadd.f32 %v2671_v54, %v1810_v39  ;;  %v1815_v43 = vmax.f32 %v1171_v8, 0.0  ;;  %v1943_v14 = vmax.f32 %v1683_v55, 0.0  ;;  %v3452_v19 = vadd.f32 %v3451_v45, %v1940_v17 }
 0x39b   : > { %v3440_v12 = vadd.f32 %v3439_v16, %v1938_v41  ;;  %v1816_v59 = vmax.f32 %v1174_v52, 0.0  ;;  %v2689_v22 = vrot.slane %v1813_v15, 4  ;;  %v3457_v42 = vrot.slane %v1941_v49, 4 }
 0x39c   : > { %v2673_v26 = vrot.slane %v2672_v63, 2  ;;  %v1944_v28 = vmax.f32 %v1686_v3, 0.0  ;;  %v3448_v57 = vadd.f32 %v3447_v38, %v3446_v5  ;;  %v2667_v58 = vrot.slane %v2666_v18, 2 }
 0x39d   : > { %v3435_v27 = vrot.slane %v3434_v40, 2  ;;  %v3441_v9 = vrot.slane %v3440_v12, 2  ;;  %v2681_v62 = vrot.slane %v2680_v23, 1  ;;  %v2685_v31 = vrot.slane %v2684_v20, 2 }
 0x39e   : > { %v2701_v33 = vrot.slane %v1815_v43, 4  ;;  %v3469_v21 = vrot.slane %v1943_v14, 4  ;;  %v2674_v25 = vadd.f32 %v2673_v26, %v2672_v63  ;;  %v2690_v29 = vadd.f32 %v2689_v22, %v1813_v15 }
 0x39f   : > { %v3442_v56 = vadd.f32 %v3441_v9, %v3440_v12  ;;  %v3458_v46 = vadd.f32 %v3457_v42, %v1941_v49  ;;  %v2707_v2 = vrot.slane %v1816_v59, 4  ;;  %v3475_v32 = vrot.slane %v1944_v28, 4 }
 0x3a0   : > { %v3449_v48 = vrot.slane %v3448_v57, 1  ;;  %v2668_v37 = vadd.f32 %v2667_v58, %v2666_v18  ;;  %v3436_v24 = vadd.f32 %v3435_v27, %v3434_v40  ;;  %v3453_v13 = vrot.slane %v3452_v19, 2 }
 0x3a1   : > { %v2682_v11 = vadd.f32 %v2681_v62, %v2680_v23  ;;  %v2686_v34 = vadd.f32 %v2685_v31, %v2684_v20  ;;  %v2702_v53 = vadd.f32 %v2701_v33, %v1815_v43  ;;  %v3470_v47 = vadd.f32 %v3469_v21, %v1943_v14 }
 0x3a2   : > { %v2675_v44 = vrot.slane %v2674_v25, 1  ;;  %v3443_v51 = vrot.slane %v3442_v56, 1  ;;  %v2691_v5 = vrot.slane %v2690_v29, 2  ;;  %v3459_v17 = vrot.slane %v3458_v46, 2 }
 0x3a3   : > { %v2708_v35 = vadd.f32 %v2707_v2, %v1816_v59  ;;  %v3476_v7 = vadd.f32 %v3475_v32, %v1944_v28  ;;  %v3450_v50 = vadd.f32 %v3449_v48, %v3448_v57  ;;  %v2669_v61 = vrot.slane %v2668_v37, 1 }
 0x3a4   : > { %v3437_v6 = vrot.slane %v3436_v24, 1  ;;  %v3454_v30 = vadd.f32 %v3453_v13, %v3452_v19  ;;  %v3604_v0 = vmul.f32 0.125, %v2682_v11  ;;  %v2687_v60 = vrot.slane %v2686_v34, 1 }
 0x3a5   : > { %v2703_v39 = vrot.slane %v2702_v53, 2  ;;  %v3471_v8 = vrot.slane %v3470_v47, 2  ;;  %v2676_v55 = vadd.f32 %v2675_v44, %v2674_v25  ;;  %v3444_v4 = vadd.f32 %v3443_v51, %v3442_v56 }
 0x3a6   : > { %v1166_v38 = vadd.f32 %v6256_v10, %v1165_v1  ;;  %v1678_v45 = vadd.f32 %v6256_v10, %v1677_v36  ;;  %v2692_v41 = vadd.f32 %v2691_v5, %v2690_v29  ;;  %v3460_v52 = vadd.f32 %v3459_v17, %v3458_v46 }
 0x3a7   : > { %v2709_v54 = vrot.slane %v2708_v35, 2  ;;  %v3477_v15 = vrot.slane %v3476_v7, 2  ;;  %v2670_v49 = vadd.f32 %v2669_v61, %v2668_v37  ;;  %v3438_v3 = vadd.f32 %v3437_v6, %v3436_v24 }
 0x3a8   : > { %v1814_v23 = vmax.f32 %v1166_v38, 0.0  ;;  %v1942_v18 = vmax.f32 %v1678_v45, 0.0  ;;  %v3732_v40 = vmul.f32 0.125, %v3450_v50  ;;  %v3455_v16 = vrot.slane %v3454_v30, 1 }
 0x3a9   : > { %v2704_v20 = vadd.f32 %v2703_v39, %v2702_v53  ;;  %v3472_v63 = vadd.f32 %v3471_v8, %v3470_v47  ;;  %v3603_v43 = vmul.f32 0.125, %v2676_v55  ;;  %v3731_v14 = vmul.f32 0.125, %v3444_v4 }
 0x3aa   : > { %v2695_v19 = vrot.slane %v1814_v23, 4  ;;  %v3463_v12 = vrot.slane %v1942_v18, 4  ;;  %v2693_v59 = vrot.slane %v2692_v41, 1  ;;  %v3461_v26 = vrot.slane %v3460_v52, 1 }
 0x3ab   : > { %v2710_v22 = vadd.f32 %v2709_v54, %v2708_v35  ;;  %v3478_v10 = vadd.f32 %v3477_v15, %v3476_v7  ;;  %v3602_v42 = vmul.f32 0.125, %v2670_v49  ;;  %v3730_v28 = vmul.f32 0.125, %v3438_v3 }
 0x3ac   : > { %v2696_v57 = vadd.f32 %v2695_v19, %v1814_v23  ;;  %v3464_v58 = vadd.f32 %v3463_v12, %v1942_v18  ;;  %v2688_v27 = vadd.f32 %v2687_v60, %v2686_v34  ;;  %v3456_v9 = vadd.f32 %v3455_v16, %v3454_v30 }
 0x3ad   : > { %v2705_v62 = vrot.slane %v2704_v20, 1  ;;  %v3473_v31 = vrot.slane %v3472_v63, 1  ;;  %v4106_v33 = vsel %vm3994_vm0, %v3603_v43, %v3602_v42  ;;  %v4218_v21 = vsel %vm3994_vm0, %v3731_v14, %v3730_v28 }
 0x3ae   : > { %v2697_v25 = vrot.slane %v2696_v57, 2  ;;  %v3465_v56 = vrot.slane %v3464_v58, 2  ;;  %v2694_v29 = vadd.f32 %v2693_v59, %v2692_v41  ;;  %v3462_v46 = vadd.f32 %v3461_v26, %v3460_v52 }
 0x3af   : > { %v2711_v2 = vrot.slane %v2710_v22, 1  ;;  %v3479_v32 = vrot.slane %v3478_v10, 1  ;;  %v3605_v24 = vmul.f32 0.125, %v2688_v27  ;;  %v3733_v13 = vmul.f32 0.125, %v3456_v9 }
 0x3b0   : > { %v2698_v48 = vadd.f32 %v2697_v25, %v2696_v57  ;;  %v3466_v37 = vadd.f32 %v3465_v56, %v3464_v58  ;;  %v4107_v11 = vsel %vm3996_vm1, %v3604_v0, %v4106_v33  ;;  %v4219_v34 = vsel %vm3996_vm1, %v3732_v40, %v4218_v21 }
 0x3b1   : > { %v2706_v53 = vadd.f32 %v2705_v62, %v2704_v20  ;;  %v3474_v47 = vadd.f32 %v3473_v31, %v3472_v63  ;;  %v3606_v5 = vmul.f32 0.125, %v2694_v29  ;;  %v3734_v17 = vmul.f32 0.125, %v3462_v46 }
 0x3b2   : > { %v2699_v44 = vrot.slane %v2698_v48, 1  ;;  %v3467_v51 = vrot.slane %v3466_v37, 1  ;;  %v2712_v35 = vadd.f32 %v2711_v2, %v2710_v22  ;;  %v3480_v7 = vadd.f32 %v3479_v32, %v3478_v10 }
 0x3b3   : > { %v4108_v1 = vsel %vm3998_vm2, %v3605_v24, %v4107_v11  ;;  %v4220_v36 = vsel %vm3998_vm2, %v3733_v13, %v4219_v34  ;;  %v3608_v0 = vmul.f32 0.125, %v2706_v53  ;;  %v3736_v60 = vmul.f32 0.125, %v3474_v47 }
 0x3b4   : > { %v2700_v50 = vadd.f32 %v2699_v44, %v2698_v48  ;;  %v3468_v61 = vadd.f32 %v3467_v51, %v3466_v37  ;;  %v4109_v39 = vsel %vm4000_vm3, %v3606_v5, %v4108_v1  ;;  %v4221_v8 = vsel %vm4000_vm3, %v3734_v17, %v4220_v36 }
 0x3b5   : > { %v3609_v55 = vmul.f32 0.125, %v2712_v35  ;;  %v3737_v4 = vmul.f32 0.125, %v3480_v7 }
 0x3b6   : > { %v3607_v6 = vmul.f32 0.125, %v2700_v50  ;;  %v3735_v30 = vmul.f32 0.125, %v3468_v61 }
 0x3b8   : > { %v4110_v38 = vsel %vm4002_vm4, %v3607_v6, %v4109_v39  ;;  %v4222_v45 = vsel %vm4002_vm4, %v3735_v30, %v4221_v8 }
 0x3b9   : > { %v4111_v41 = vsel %vm4004_vm5, %v3608_v0, %v4110_v38  ;;  %v4223_v52 = vsel %vm4004_vm5, %v3736_v60, %v4222_v45 }
 0x3ba   : > { %v4112_v54 = vsel %vm4006_vm6, %v3609_v55, %v4111_v41  ;;  %v4224_v15 = vsel %vm4006_vm6, %v3737_v4, %v4223_v52 }
 0x3bb   : > { %4272 = vst [vmem:[%s5164_s14 + $0x78] sm:$0xff] %v4112_v54  ;;  %4288 = vst [vmem:[%s5164_s14 + $0xf8] sm:$0xff] %v4224_v15 }
 0x3bc   : > { %4985 = shalt.err (!%p4982_p12)
}
 0x3bd   : > { %s4986_s11 = scalar_lea.hbm %s6316_s29, 4096  ;;  %s4990_s7 = scalar_lea.hbm %s6372_s4, 8192 }
 0x3be   : > { %p4987_p13 = scmp.ne.s32.totalorder %s6316_s29, %s4986_s11  ;;  %p4991_p2 = scmp.lt.s32.totalorder %s6316_s29, %s6372_s4 }
 0x3bf   : > { %p4992_p3 = scmp.lt.s32.totalorder %s4990_s7, %s4986_s11 }
 0x3c0   : > { %p4988_p0 = pnand %p4987_p13, %p5132_p5 }
 0x3c1   : > { %p4993_p4 = por %p4992_p3, %p4991_p2 }
 0x3c2   : > { %p4989_p1 = pneg %p4988_p0 }
 0x3c4   : > { %p4994_p7 = pnand %p4993_p4, %p4989_p1 }
 0x3c6   : > { %4997 = shalt.err (!%p4994_p7)
}
 0x3c7   : > { %s5064_s10 = smov 128   ;;  %s5065_s13 = smov 8  }
 0x3c8   : > { %4836 = dma.vmem_to_hbm [thread:$0]  (%p5132_p5), %s6318_s22, 4096, %s6316_s29, %s6328_s12, %s5064_s10, %s5064_s10, %s5065_s13  }
 0x3c9 PF: > { %p4848_p6 = scmp.ge.s32.totalorder %s5048_s21, 2  ;;  %s4318_s16 = sand.u32 1, %s5036_s18  }
 0x3ca   : > { %p6413_p8 = scmp.ne.s32.totalorder %s6379_s28, 0  ;;  %s4319_s17 = scalar_lea.sflag [#allocation8], %s4318_s16 }
 0x3cc   : > { %p4843_p9 = pnand %p4848_p6, %p6413_p8 }
 0x3ce   : > { %p4844_p10 = pneg %p4843_p9 }
 0x3d0   : > { %5031 = dma.done.wait (%p4844_p10), %s4319_s17, 4096  }
 0x3d1   : > { %5033 = vsyncadd (%p4844_p10), %s4319_s17, 4294963200  ;;  %p19_p11 = scmp.ge.s32.totalorder %s5119_s23, 4   ;;  %s6414_s18 = smov %s5040_s19 }
 0x3d2   : > { %s6415_s19 = smov %s5044_s20  ;;  %s6416_s20 = smov %s5130_s26 }
 0x3d3   : > { %s6417_s21 = smov %s5119_s23  ;;  %21 = sbr.rel (!%p19_p11) target bundleno = 9 (0x9), region = 107 }
 0x3d8   :  { %4324 = vsyncpa [#allocation7], 1 }
 0x3d9   :  { %4326 = vsyncpa [#allocation7 + $0x1], 1 }
 0x3da   :  { %4327 = vsyncpa [#allocation8], 1 }
 0x3db   :  { %4329 = vsyncpa [#allocation8 + $0x1], 1 }
 0x3dc   :  { %4330 = vsyncmov [#allocation3] }
 0x3df   :  { %s4331_s21 = vpop.sfrf %4330 }
 0x3e0   :  { %p4406_p5 = scmp.ne.s32.totalorder %s4331_s21, 0 }
 0x3e2   :  { %4335 = shalt.err (%p4406_p5)  }

</bundles_post_ra>
